<compile_context>
chip_gen: v7x
topology: tpu7x:2x2x1
jax: 0.10.0
libtpu: 0.0.40
codegen_flags: <defaults>
</compile_context>

<pallas_src>
import jax
import jax.numpy as jnp
from jax.experimental import pallas as pl
from jax.experimental.pallas import tpu as pltpu


def _round_up(n, m):
    return ((n + m - 1) // m) * m


def pbigan_kernel(x_ref, mask_ref, zgen_ref, wenc_ref, benc_ref, wdec_ref, bdec_ref,
                  zT_ref, xrecon_ref, xgen_ref, loss_ref):
    """One batch tile: mask, encoder matmul, two decoder matmuls, sigmoid, masked BCE partials."""
    x = x_ref[...].astype(jnp.float32)        # (TN, D)
    m = mask_ref[...].astype(jnp.float32)     # (TN, D), binary {0, 1}
    xm = x * m
    # TODO(synk): pmz() is undefined in the source module; treated as identity on the mask.

    # ----- encoder: z_T = (x * mask) @ W_enc + b_enc -----
    z_T = jnp.dot(xm, wenc_ref[...], preferred_element_type=jnp.float32) + benc_ref[...]
    zT_ref[...] = z_T

    w_dec = wdec_ref[...]
    b_dec = bdec_ref[...]

    # ----- decoder on z_gen: x_gen = sigmoid(z_gen @ W_dec + b_dec) -----
    gen_logit = jnp.dot(zgen_ref[...].astype(jnp.float32), w_dec,
                        preferred_element_type=jnp.float32) + b_dec
    xgen_ref[...] = jax.nn.sigmoid(gen_logit).astype(xgen_ref.dtype)

    # ----- decoder on z_T: recon logits, sigmoid reuses the BCE exp -----
    logit = jnp.dot(z_T, w_dec, preferred_element_type=jnp.float32) + b_dec
    e = jnp.exp(-jnp.abs(logit))                       # shared by sigmoid and log1p
    inv_1pe = pl.reciprocal(1.0 + e, approx=True)      # EUP vrcp, cheap
    # sigmoid(l) = where(l >= 0, 1, e) / (1 + e)  -> one exp serves recon + BCE
    x_recon = jnp.where(logit >= 0.0, 1.0, e) * inv_1pe
    xrecon_ref[...] = x_recon.astype(xrecon_ref.dtype)

    # ----- masked BCE-with-logits partial sums -----
    # BCE(l, t) = max(l, 0) - l*t + log1p(exp(-|l|)).  For a binary mask this
    # (with the trailing *mask) equals PyTorch's
    # bce_with_logits(logit*mask, x*mask, reduction='none') * mask, without the
    # redundant pre-mask multiply on the logits (masked terms zero out anyway).
    t = xm
    bce = jnp.maximum(logit, 0.0) - logit * t + jnp.log1p(e)
    masked = bce * m                                    # padded rows: mask==0 -> 0
    tn, d = masked.shape
    # Fold the tile into (TN//8, 8, D) and reduce the leading axis: pure VALU
    # adds, result is a sublane/lane-dense (8, D) slab (no masked partial stores).
    loss_ref[...] = jnp.sum(masked.reshape(tn // 8, 8, d), axis=0)


def pbigan_forward(x, mask, z_gen, params, *, tile_rows=512,
                   stream_dtype=jnp.bfloat16, mask_dtype=jnp.int8,
                   vmem_limit_bytes=48 * 1024 * 1024):
    """x, mask: (N, C, H, W); z_gen: (N, Z). Returns (z_T, z_gen, x_recon, x_gen, recon_loss).

    x / x_recon / x_gen stream in `stream_dtype` (default bf16) and the binary
    mask streams as `mask_dtype` (default int8); kernel math is f32.
    """
    N, C, H, W = x.shape
    D = C * H * W
    Z = params["W_enc"].shape[1]

    # Batch tile: multiple of 32 so f32 (8), bf16 (16) and int8 (32) sublane
    # packing are all satisfied; capped at tile_rows so double-buffered streams
    # stay comfortably within scoped VMEM on v5e / v6e / v7x.
    TN = min(_round_up(tile_rows, 32), _round_up(N, 32))
    num_tiles = pl.cdiv(N, TN)
    N_pad = num_tiles * TN

    x_flat = x.reshape(N, D).astype(stream_dtype)
    m_flat = mask.reshape(N, D).astype(mask_dtype)       # binary mask streamed narrow
    z_gen_p = z_gen.astype(jnp.float32)
    if N_pad != N:
        pad = N_pad - N
        x_flat = jnp.pad(x_flat, ((0, pad), (0, 0)))
        m_flat = jnp.pad(m_flat, ((0, pad), (0, 0)))     # zero mask -> zero loss contribution
        z_gen_p = jnp.pad(z_gen_p, ((0, pad), (0, 0)))

    in_specs = [
        pl.BlockSpec((TN, D), lambda i: (i, 0)),    # x tile       (stream_dtype)
        pl.BlockSpec((TN, D), lambda i: (i, 0)),    # mask tile    (mask_dtype)
        pl.BlockSpec((TN, Z), lambda i: (i, 0)),    # z_gen tile   (f32)
        pl.BlockSpec((D, Z), lambda i: (0, 0)),     # W_enc (VMEM-resident)
        pl.BlockSpec((1, Z), lambda i: (0, 0)),     # b_enc (resident)
        pl.BlockSpec((Z, D), lambda i: (0, 0)),     # W_dec (resident)
        pl.BlockSpec((1, D), lambda i: (0, 0)),     # b_dec (resident)
    ]
    out_specs = (
        pl.BlockSpec((TN, Z), lambda i: (i, 0)),    # z_T (f32; last dim == full Z)
        pl.BlockSpec((TN, D), lambda i: (i, 0)),    # x_recon (stream_dtype)
        pl.BlockSpec((TN, D), lambda i: (i, 0)),    # x_gen   (stream_dtype)
        pl.BlockSpec((8, D), lambda i: (i, 0)),     # per-tile loss partials (8, D)
    )
    out_shapes = (
        jax.ShapeDtypeStruct((N_pad, Z), jnp.float32),
        jax.ShapeDtypeStruct((N_pad, D), stream_dtype),
        jax.ShapeDtypeStruct((N_pad, D), stream_dtype),
        jax.ShapeDtypeStruct((num_tiles * 8, D), jnp.float32),
    )

    z_T_pad, x_recon_flat, x_gen_flat, loss_part = pl.pallas_call(
        pbigan_kernel,
        out_shape=out_shapes,
        grid=(num_tiles,),
        in_specs=in_specs,
        out_specs=out_specs,
        compiler_params=pltpu.CompilerParams(
            dimension_semantics=("parallel",),       # no carried state -> v7x megacore-shardable
            vmem_limit_bytes=vmem_limit_bytes,
        ),
    )(x_flat, m_flat, z_gen_p,
      params["W_enc"], params["b_enc"], params["W_dec"], params["b_dec"])

    z_T = z_T_pad[:N]
    # Keep x_recon / x_gen in stream_dtype (no extra f32 upcast pass over HBM).
    x_recon = x_recon_flat[:N].reshape(N, C, H, W)
    x_gen = x_gen_flat[:N].reshape(N, C, H, W)
    # sum((1,2,3)).mean() over the batch == (sum of all masked BCE terms) / N
    recon_loss = jnp.sum(loss_part) / jnp.float32(N)
    # Mirror PyTorch return signature: (z_T, z_gen, x_recon, x_gen, recon_loss)
    return z_T, z_gen, x_recon, x_gen, recon_loss


def make_params(key, D, Z):
    k1, k2, k3, k4 = jax.random.split(key, 4)
    return {
        "W_enc": 0.05 * jax.random.normal(k1, (D, Z), jnp.float32),
        "b_enc": 0.05 * jax.random.normal(k2, (1, Z), jnp.float32),
        "W_dec": 0.05 * jax.random.normal(k3, (Z, D), jnp.float32),
        "b_dec": 0.05 * jax.random.normal(k4, (1, D), jnp.float32),
    }


if __name__ == "__main__":
    N, C, H, W, Z = 2, 4, 16, 16, 32
    D = C * H * W

    key = jax.random.PRNGKey(0)
    kx, km, kz, kp = jax.random.split(key, 4)

    x = jax.random.uniform(kx, (N, C, H, W), jnp.float32)            # data in [0,1] (BCE target)
    mask = (jax.random.uniform(km, (N, C, H, W)) > 0.5).astype(jnp.float32)
    z_gen = jax.random.normal(kz, (N, Z), jnp.float32)               # torch.empty_like(z_T).normal_()
    params = make_params(kp, D, Z)

    z_T, z_gen_out, x_recon, x_gen, recon_loss = pbigan_forward(x, mask, z_gen, params)
    jax.block_until_ready((z_T, z_gen_out, x_recon, x_gen, recon_loss))

    assert z_T.shape == (N, Z)
    assert z_gen_out.shape == (N, Z)
    assert x_recon.shape == (N, C, H, W)
    assert x_gen.shape == (N, C, H, W)
    assert recon_loss.shape == ()
    assert bool(jnp.isfinite(recon_loss))
    assert bool(jnp.all(jnp.isfinite(z_T)))
    assert bool(jnp.all(jnp.isfinite(x_recon.astype(jnp.float32))))
    assert bool(jnp.all(jnp.isfinite(x_gen.astype(jnp.float32))))
    print("KERNEL_OK")
</pallas_src>

<mosaic_0001>
module attributes {stable_mosaic.version = 11 : i64} {
  func.func @pbigan_kernel(%arg0: i32, %arg1: memref<32x1024xbf16, #tpu.memory_space<vmem>>, %arg2: memref<32x1024xi8, #tpu.memory_space<vmem>>, %arg3: memref<32x32xf32, #tpu.memory_space<vmem>>, %arg4: memref<1024x32xf32, #tpu.memory_space<vmem>>, %arg5: memref<1x32xf32, #tpu.memory_space<vmem>>, %arg6: memref<32x1024xf32, #tpu.memory_space<vmem>>, %arg7: memref<1x1024xf32, #tpu.memory_space<vmem>>, %arg8: memref<32x32xf32, #tpu.memory_space<vmem>>, %arg9: memref<32x1024xbf16, #tpu.memory_space<vmem>>, %arg10: memref<32x1024xbf16, #tpu.memory_space<vmem>>, %arg11: memref<8x1024xf32, #tpu.memory_space<vmem>>) attributes {dimension_semantics = [#tpu.dimension_semantics<parallel>], iteration_bounds = array<i64: 1>, scalar_prefetch = 0 : i64, scratch_operands = 0 : i64, tpu.core_type = #tpu.core_type<tc>, window_params = [{transform_indices = @transform_0, window_bounds = array<i64: 32, 1024>}, {transform_indices = @transform_1, window_bounds = array<i64: 32, 1024>}, {transform_indices = @transform_2, window_bounds = array<i64: 32, 32>}, {pipeline_mode = #tpu.pipeline_mode<synchronous>, transform_indices = @transform_3, window_bounds = array<i64: 1024, 32>}, {pipeline_mode = #tpu.pipeline_mode<synchronous>, transform_indices = @transform_4, window_bounds = array<i64: 1, 32>}, {pipeline_mode = #tpu.pipeline_mode<synchronous>, transform_indices = @transform_5, window_bounds = array<i64: 32, 1024>}, {pipeline_mode = #tpu.pipeline_mode<synchronous>, transform_indices = @transform_6, window_bounds = array<i64: 1, 1024>}, {transform_indices = @transform_7, window_bounds = array<i64: 32, 32>}, {transform_indices = @transform_8, window_bounds = array<i64: 32, 1024>}, {transform_indices = @transform_9, window_bounds = array<i64: 32, 1024>}, {transform_indices = @transform_10, window_bounds = array<i64: 8, 1024>}]} {
    %c0 = arith.constant 0 : index
    %c0_0 = arith.constant 0 : index
    %0 = vector.load %arg1[%c0, %c0_0] : memref<32x1024xbf16, #tpu.memory_space<vmem>>, vector<32x1024xbf16>
    %1 = arith.extf %0 : vector<32x1024xbf16> to vector<32x1024xf32>
    %c0_1 = arith.constant 0 : index
    %c0_2 = arith.constant 0 : index
    %2 = vector.load %arg2[%c0_1, %c0_2] : memref<32x1024xi8, #tpu.memory_space<vmem>>, vector<32x1024xi8>
    %3 = arith.sitofp %2 : vector<32x1024xi8> to vector<32x1024xf32>
    %4 = arith.mulf %1, %3 : vector<32x1024xf32>
    %c0_3 = arith.constant 0 : index
    %c0_4 = arith.constant 0 : index
    %5 = vector.load %arg4[%c0_3, %c0_4] : memref<1024x32xf32, #tpu.memory_space<vmem>>, vector<1024x32xf32>
    %cst = arith.constant dense<0.000000e+00> : vector<32x32xf32>
    %6 = tpu.matmul %4, %5, %cst {dimension_numbers = #tpu.dot_dimension_numbers<[1], [0], [0], [1], [0, 0, 1, 1], [], []>} : vector<32x1024xf32>, vector<1024x32xf32>, vector<32x32xf32> -> vector<32x32xf32>
    %c0_5 = arith.constant 0 : index
    %c0_6 = arith.constant 0 : index
    %7 = vector.load %arg5[%c0_5, %c0_6] : memref<1x32xf32, #tpu.memory_space<vmem>>, vector<1x32xf32>
    %8 = vector.broadcast %7 : vector<1x32xf32> to vector<32x32xf32>
    %9 = arith.addf %6, %8 : vector<32x32xf32>
    %c0_7 = arith.constant 0 : index
    %c0_8 = arith.constant 0 : index
    %10 = vector.load %arg8[%c0_7, %c0_8] : memref<32x32xf32, #tpu.memory_space<vmem>>, vector<32x32xf32>
    tpu.vector_store %arg8[%c0_7, %c0_8], %9 {strides = array<i32>} : memref<32x32xf32, #tpu.memory_space<vmem>>, vector<32x32xf32>,
    %c0_9 = arith.constant 0 : index
    %c0_10 = arith.constant 0 : index
    %11 = vector.load %arg6[%c0_9, %c0_10] : memref<32x1024xf32, #tpu.memory_space<vmem>>, vector<32x1024xf32>
    %c0_11 = arith.constant 0 : index
    %c0_12 = arith.constant 0 : index
    %12 = vector.load %arg7[%c0_11, %c0_12] : memref<1x1024xf32, #tpu.memory_space<vmem>>, vector<1x1024xf32>
    %c0_13 = arith.constant 0 : index
    %c0_14 = arith.constant 0 : index
    %13 = vector.load %arg3[%c0_13, %c0_14] : memref<32x32xf32, #tpu.memory_space<vmem>>, vector<32x32xf32>
    %cst_15 = arith.constant dense<0.000000e+00> : vector<32x1024xf32>
    %14 = tpu.matmul %13, %11, %cst_15 {dimension_numbers = #tpu.dot_dimension_numbers<[1], [0], [0], [1], [0, 0, 1, 1], [], []>} : vector<32x32xf32>, vector<32x1024xf32>, vector<32x1024xf32> -> vector<32x1024xf32>
    %15 = vector.broadcast %12 : vector<1x1024xf32> to vector<32x1024xf32>
    %16 = arith.addf %14, %15 : vector<32x1024xf32>
    %17 = arith.negf %16 : vector<32x1024xf32>
    %18 = math.exp %17 : vector<32x1024xf32>
    %cst_16 = arith.constant 1.000000e+00 : f32
    %19 = vector.broadcast %cst_16 : f32 to vector<32x1024xf32>
    %20 = arith.addf %19, %18 : vector<32x1024xf32>
    %21 = arith.divf %19, %20 : vector<32x1024xf32>
    %22 = arith.truncf %21 : vector<32x1024xf32> to vector<32x1024xbf16>
    %c0_17 = arith.constant 0 : index
    %c0_18 = arith.constant 0 : index
    %23 = vector.load %arg10[%c0_17, %c0_18] : memref<32x1024xbf16, #tpu.memory_space<vmem>>, vector<32x1024xbf16>
    tpu.vector_store %arg10[%c0_17, %c0_18], %22 {strides = array<i32>} : memref<32x1024xbf16, #tpu.memory_space<vmem>>, vector<32x1024xbf16>,
    %cst_19 = arith.constant dense<0.000000e+00> : vector<32x1024xf32>
    %24 = tpu.matmul %9, %11, %cst_19 {dimension_numbers = #tpu.dot_dimension_numbers<[1], [0], [0], [1], [0, 0, 1, 1], [], []>} : vector<32x32xf32>, vector<32x1024xf32>, vector<32x1024xf32> -> vector<32x1024xf32>
    %25 = vector.broadcast %12 : vector<1x1024xf32> to vector<32x1024xf32>
    %26 = arith.addf %24, %25 : vector<32x1024xf32>
    %27 = math.absf %26 : vector<32x1024xf32>
    %cst_20 = arith.constant 0.000000e+00 : f32
    %28 = vector.broadcast %cst_20 : f32 to vector<32x1024xf32>
    %29 = arith.subf %28, %27 : vector<32x1024xf32>
    %30 = math.exp %29 : vector<32x1024xf32>
    %cst_21 = arith.constant 1.000000e+00 : f32
    %31 = vector.broadcast %cst_21 : f32 to vector<32x1024xf32>
    %32 = arith.addf %31, %30 : vector<32x1024xf32>
    %33 = tpu.reciprocal %32 {approx = true} : vector<32x1024xf32> -> vector<32x1024xf32>
    %cst_22 = arith.constant 0.000000e+00 : f32
    %34 = vector.broadcast %cst_22 : f32 to vector<32x1024xf32>
    %35 = arith.cmpf oge, %26, %34 : vector<32x1024xf32>
    %cst_23 = arith.constant 1.000000e+00 : f32
    %36 = vector.broadcast %cst_23 : f32 to vector<32x1024xf32>
    %37 = arith.select %35, %36, %30 : vector<32x1024xi1>, vector<32x1024xf32>
    %38 = arith.mulf %37, %33 : vector<32x1024xf32>
    %39 = arith.truncf %38 : vector<32x1024xf32> to vector<32x1024xbf16>
    %c0_24 = arith.constant 0 : index
    %c0_25 = arith.constant 0 : index
    %40 = vector.load %arg9[%c0_24, %c0_25] : memref<32x1024xbf16, #tpu.memory_space<vmem>>, vector<32x1024xbf16>
    tpu.vector_store %arg9[%c0_24, %c0_25], %39 {strides = array<i32>} : memref<32x1024xbf16, #tpu.memory_space<vmem>>, vector<32x1024xbf16>,
    %cst_26 = arith.constant 0.000000e+00 : f32
    %41 = vector.broadcast %cst_26 : f32 to vector<32x1024xf32>
    %42 = arith.maximumf %26, %41 : vector<32x1024xf32>
    %43 = arith.mulf %26, %4 : vector<32x1024xf32>
    %44 = arith.subf %42, %43 : vector<32x1024xf32>
    %45 = math.log1p %30 : vector<32x1024xf32>
    %46 = arith.addf %44, %45 : vector<32x1024xf32>
    %47 = arith.mulf %46, %3 : vector<32x1024xf32>
    %48 = vector.shape_cast %47 : vector<32x1024xf32> to vector<4x8x1024xf32>
    %cst_27 = arith.constant dense<0.000000e+00> : vector<8x1024xf32>
    %49 = vector.multi_reduction <add>, %48, %cst_27 [0] : vector<4x8x1024xf32> to vector<8x1024xf32>
    %c0_28 = arith.constant 0 : index
    %c0_29 = arith.constant 0 : index
    %50 = vector.load %arg11[%c0_28, %c0_29] : memref<8x1024xf32, #tpu.memory_space<vmem>>, vector<8x1024xf32>
    tpu.vector_store %arg11[%c0_28, %c0_29], %49 {strides = array<i32>} : memref<8x1024xf32, #tpu.memory_space<vmem>>, vector<8x1024xf32>,
    return
  }
  func.func @transform_0(%arg0: i32) -> (i32, i32) {
    %c0_i32 = arith.constant 0 : i32
    %c0_i32_0 = arith.constant 0 : i32
    return %arg0, %c0_i32 : i32, i32
  }
  func.func @transform_1(%arg0: i32) -> (i32, i32) {
    %c0_i32 = arith.constant 0 : i32
    %c0_i32_0 = arith.constant 0 : i32
    return %arg0, %c0_i32 : i32, i32
  }
  func.func @transform_2(%arg0: i32) -> (i32, i32) {
    %c0_i32 = arith.constant 0 : i32
    %c0_i32_0 = arith.constant 0 : i32
    return %arg0, %c0_i32 : i32, i32
  }
  func.func @transform_3(%arg0: i32) -> (i32, i32) {
    %c0_i32 = arith.constant 0 : i32
    %c0_i32_0 = arith.constant 0 : i32
    %c0_i32_1 = arith.constant 0 : i32
    return %c0_i32, %c0_i32_0 : i32, i32
  }
  func.func @transform_4(%arg0: i32) -> (i32, i32) {
    %c0_i32 = arith.constant 0 : i32
    %c0_i32_0 = arith.constant 0 : i32
    %c0_i32_1 = arith.constant 0 : i32
    return %c0_i32, %c0_i32_0 : i32, i32
  }
  func.func @transform_5(%arg0: i32) -> (i32, i32) {
    %c0_i32 = arith.constant 0 : i32
    %c0_i32_0 = arith.constant 0 : i32
    %c0_i32_1 = arith.constant 0 : i32
    return %c0_i32, %c0_i32_0 : i32, i32
  }
  func.func @transform_6(%arg0: i32) -> (i32, i32) {
    %c0_i32 = arith.constant 0 : i32
    %c0_i32_0 = arith.constant 0 : i32
    %c0_i32_1 = arith.constant 0 : i32
    return %c0_i32, %c0_i32_0 : i32, i32
  }
  func.func @transform_7(%arg0: i32) -> (i32, i32) {
    %c0_i32 = arith.constant 0 : i32
    %c0_i32_0 = arith.constant 0 : i32
    return %arg0, %c0_i32 : i32, i32
  }
  func.func @transform_8(%arg0: i32) -> (i32, i32) {
    %c0_i32 = arith.constant 0 : i32
    %c0_i32_0 = arith.constant 0 : i32
    return %arg0, %c0_i32 : i32, i32
  }
  func.func @transform_9(%arg0: i32) -> (i32, i32) {
    %c0_i32 = arith.constant 0 : i32
    %c0_i32_0 = arith.constant 0 : i32
    return %arg0, %c0_i32 : i32, i32
  }
  func.func @transform_10(%arg0: i32) -> (i32, i32) {
    %c0_i32 = arith.constant 0 : i32
    %c0_i32_0 = arith.constant 0 : i32
    return %arg0, %c0_i32 : i32, i32
  }
}

</mosaic_0001>

<bundles_post_ra>
// kernel: tpu_custom_call.1
= control target key start
LH: loop header
LB: loop body
LE: loop exit
PB: predicated region body
PF: predicated region fallthrough
CT: control target
= control target key end

     0   :  { %16 = vsyncpa [#allocation3], 0  ;;  %s5735_s0 = inlined_call_operand.vmem [shape: bf16[32,1024], index: 0, kind: input, shape index: {}]   ;;  %s5736_s1 = inlined_call_operand.vmem [shape: s8[32,1024], index: 1, kind: input, shape index: {}]   ;;  %s5737_s2 = inlined_call_operand.vmem [shape: f32[32,32], index: 2, kind: input, shape index: {}]   ;;  %s5738_s3 = inlined_call_operand.vmem [shape: f32[1024,32], index: 3, kind: input, shape index: {}]   ;;  %s5739_s4 = inlined_call_operand.vmem [shape: f32[1,32], index: 4, kind: input, shape index: {}]   ;;  %s5740_s5 = inlined_call_operand.vmem [shape: f32[32,1024], index: 5, kind: input, shape index: {}]   ;;  %s5741_s6 = inlined_call_operand.vmem [shape: f32[1,1024], index: 6, kind: input, shape index: {}]   ;;  %s5742_s7 = inlined_call_operand.hbm [shape: f32[32,32], index: 7, kind: output, shape index: {0}]   ;;  %s5743_s8 = inlined_call_operand.hbm [shape: bf16[32,1024], index: 8, kind: output, shape index: {1}]   ;;  %s5744_s9 = inlined_call_operand.hbm [shape: bf16[32,1024], index: 9, kind: output, shape index: {2}]   ;;  %s5745_s10 = inlined_call_operand.hbm [shape: f32[8,1024], index: 10, kind: output, shape index: {3}]  }
   0x1   :  { %17 = vsyncpa [#allocation5], 0  ;;  %v201_v0 = vld [vmem:[%s5738_s3 + $0x80] sm:$0xff]  ;;  %v202_v1 = vld [vmem:[%s5738_s3 + $0x88] sm:$0xff] }
   0x2   :  { %v185_v2 = vld [vmem:[%s5738_s3] sm:$0xff]  ;;  %v3029_v3 = vpack.c.bf16 %v202_v1, %v201_v0  ;;  %v186_v4 = vld [vmem:[%s5738_s3 + $0x8] sm:$0xff]  ;;  %v203_v11 = vld [vmem:[%s5738_s3 + $0x90] sm:$0xff] }
   0x3   :  { %v233_v5 = vld [vmem:[%s5738_s3 + $0x180] sm:$0xff]  ;;  %v234_v6 = vld [vmem:[%s5738_s3 + $0x188] sm:$0xff]  ;;  %v3031_v7 = vpack.c.bf16 %v186_v4, %v185_v2  ;;  %v204_v13 = vld [vmem:[%s5738_s3 + $0x98] sm:$0xff] }
   0x4   :  { %v3061_v8 = vpack.c.bf16 %v234_v6, %v233_v5  ;;  %v217_v9 = vld [vmem:[%s5738_s3 + $0x100] sm:$0xff]  ;;  %v218_v10 = vld [vmem:[%s5738_s3 + $0x108] sm:$0xff]  ;;  %3030 = vmatprep.subr.bf16.mxu0 %v3029_v3  ;;  %v187_v14 = vld [vmem:[%s5738_s3 + $0x10] sm:$0xff]  ;;  %v3033_v16 = vpack.c.bf16 %v204_v13, %v203_v11 }
   0x5   :  { %v3063_v12 = vpack.c.bf16 %v218_v10, %v217_v9  ;;  %v188_v15 = vld [vmem:[%s5738_s3 + $0x18] sm:$0xff]  ;;  %3032 = vmatpush3.bf16.msra.mxu0 %v3031_v7  ;;  %v235_v18 = vld [vmem:[%s5738_s3 + $0x190] sm:$0xff]  ;;  %v205_v23 = vld [vmem:[%s5738_s3 + $0xa0] sm:$0xff] }
   0x6   :  { %3062 = vmatprep.subr.bf16.mxu1 %v3061_v8  ;;  %v3035_v17 = vpack.c.bf16 %v188_v15, %v187_v14  ;;  %v236_v19 = vld [vmem:[%s5738_s3 + $0x198] sm:$0xff]  ;;  %v219_v20 = vld [vmem:[%s5738_s3 + $0x110] sm:$0xff]  ;;  %v206_v24 = vld [vmem:[%s5738_s3 + $0xa8] sm:$0xff]  ;;  %3034 = vmatprep.subr.bf16.mxu0 %v3033_v16 }
   0x7   :  { %3064 = vmatpush3.bf16.msra.mxu1 %v3063_v12  ;;  %v3065_v21 = vpack.c.bf16 %v236_v19, %v235_v18  ;;  %v220_v22 = vld [vmem:[%s5738_s3 + $0x118] sm:$0xff]  ;;  %v3037_v26 = vpack.c.bf16 %v206_v24, %v205_v23  ;;  %v189_v27 = vld [vmem:[%s5738_s3 + $0x20] sm:$0xff]  ;;  %v190_v28 = vld [vmem:[%s5738_s3 + $0x28] sm:$0xff] }
   0x8   :  { %v3067_v25 = vpack.c.bf16 %v220_v22, %v219_v20  ;;  %v237_v29 = vld [vmem:[%s5738_s3 + $0x1a0] sm:$0xff]  ;;  %v238_v30 = vld [vmem:[%s5738_s3 + $0x1a8] sm:$0xff]  ;;  %v3039_v33 = vpack.c.bf16 %v190_v28, %v189_v27  ;;  %v207_v35 = vld [vmem:[%s5738_s3 + $0xb0] sm:$0xff] }
   0x9   :  { %3066 = vmatprep.subr.bf16.mxu1 %v3065_v21  ;;  %v221_v31 = vld [vmem:[%s5738_s3 + $0x120] sm:$0xff]  ;;  %v222_v32 = vld [vmem:[%s5738_s3 + $0x128] sm:$0xff]  ;;  %3036 = vmatpush3.bf16.msra.mxu0 %v3035_v17  ;;  %v3069_v34 = vpack.c.bf16 %v238_v30, %v237_v29  ;;  %v208_v36 = vld [vmem:[%s5738_s3 + $0xb8] sm:$0xff] }
   0xa   :  { %v191_v37 = vld [vmem:[%s5738_s3 + $0x30] sm:$0xff]  ;;  %3038 = vmatprep.subr.bf16.mxu0 %v3037_v26  ;;  %v3071_v38 = vpack.c.bf16 %v222_v32, %v221_v31  ;;  %v3041_v39 = vpack.c.bf16 %v208_v36, %v207_v35  ;;  %v192_v40 = vld [vmem:[%s5738_s3 + $0x38] sm:$0xff]  ;;  %v209_v46 = vld [vmem:[%s5738_s3 + $0xc0] sm:$0xff] }
   0xb   :  { %3068 = vmatpush3.bf16.msra.mxu1 %v3067_v25  ;;  %v239_v41 = vld [vmem:[%s5738_s3 + $0x1b0] sm:$0xff]  ;;  %v240_v42 = vld [vmem:[%s5738_s3 + $0x1b8] sm:$0xff]  ;;  %v210_v47 = vld [vmem:[%s5738_s3 + $0xc8] sm:$0xff]  ;;  %v3043_v48 = vpack.c.bf16 %v192_v40, %v191_v37 }
   0xc   :  { %3070 = vmatprep.subr.bf16.mxu1 %v3069_v34  ;;  %v3073_v43 = vpack.c.bf16 %v240_v42, %v239_v41  ;;  %v223_v44 = vld [vmem:[%s5738_s3 + $0x130] sm:$0xff]  ;;  %v224_v45 = vld [vmem:[%s5738_s3 + $0x138] sm:$0xff]  ;;  %v241_v49 = vld [vmem:[%s5738_s3 + $0x1c0] sm:$0xff]  ;;  %v3045_v52 = vpack.c.bf16 %v210_v47, %v209_v46 }
   0xd   :  { %3040 = vmatpush3.bf16.msra.mxu0 %v3039_v33  ;;  %v242_v50 = vld [vmem:[%s5738_s3 + $0x1c8] sm:$0xff]  ;;  %v3075_v51 = vpack.c.bf16 %v224_v45, %v223_v44  ;;  %v193_v53 = vld [vmem:[%s5738_s3 + $0x40] sm:$0xff]  ;;  %v211_v58 = vld [vmem:[%s5738_s3 + $0xd0] sm:$0xff] }
   0xe   :  { %3042 = vmatprep.subr.bf16.mxu0 %v3041_v39  ;;  %v194_v54 = vld [vmem:[%s5738_s3 + $0x48] sm:$0xff]  ;;  %v225_v55 = vld [vmem:[%s5738_s3 + $0x140] sm:$0xff]  ;;  %v3077_v56 = vpack.c.bf16 %v242_v50, %v241_v49  ;;  %v212_v59 = vld [vmem:[%s5738_s3 + $0xd8] sm:$0xff] }
   0xf   :  { %3072 = vmatpush3.bf16.msra.mxu1 %v3071_v38  ;;  %v226_v57 = vld [vmem:[%s5738_s3 + $0x148] sm:$0xff]  ;;  %v243_v60 = vld [vmem:[%s5738_s3 + $0x1d0] sm:$0xff]  ;;  %v244_v61 = vld [vmem:[%s5738_s3 + $0x1d8] sm:$0xff]  ;;  %v3047_v62 = vpack.c.bf16 %v194_v54, %v193_v53  ;;  %v3049_v0 = vpack.c.bf16 %v212_v59, %v211_v58 }
  0x10   :  { %3074 = vmatprep.subr.bf16.mxu1 %v3073_v43  ;;  %v3079_v63 = vpack.c.bf16 %v226_v57, %v225_v55  ;;  %v195_v1 = vld [vmem:[%s5738_s3 + $0x50] sm:$0xff]  ;;  %v196_v2 = vld [vmem:[%s5738_s3 + $0x58] sm:$0xff]  ;;  %v3081_v4 = vpack.c.bf16 %v244_v61, %v243_v60  ;;  %v213_v6 = vld [vmem:[%s5738_s3 + $0xe0] sm:$0xff] }
  0x11   :  { %3044 = vmatpush3.bf16.msra.mxu0 %v3043_v48  ;;  %v227_v3 = vld [vmem:[%s5738_s3 + $0x150] sm:$0xff]  ;;  %v228_v5 = vld [vmem:[%s5738_s3 + $0x158] sm:$0xff]  ;;  %v214_v7 = vld [vmem:[%s5738_s3 + $0xe8] sm:$0xff]  ;;  %v3051_v11 = vpack.c.bf16 %v196_v2, %v195_v1 }
  0x12   :  { %3046 = vmatprep.subr.bf16.mxu0 %v3045_v52  ;;  %v197_v8 = vld [vmem:[%s5738_s3 + $0x60] sm:$0xff]  ;;  %v246_v10 = vld [vmem:[%s5738_s3 + $0x1e8] sm:$0xff]  ;;  %v3083_v15 = vpack.c.bf16 %v228_v5, %v227_v3  ;;  %v3053_v16 = vpack.c.bf16 %v214_v7, %v213_v6  ;;  %v215_v17 = vld [vmem:[%s5738_s3 + $0xf0] sm:$0xff] }
  0x13   :  { %3076 = vmatpush3.bf16.msra.mxu1 %v3075_v51  ;;  %v245_v9 = vld [vmem:[%s5738_s3 + $0x1e0] sm:$0xff]  ;;  %v198_v12 = vld [vmem:[%s5738_s3 + $0x68] sm:$0xff]  ;;  %v216_v21 = vld [vmem:[%s5738_s3 + $0xf8] sm:$0xff] }
  0x14   :  { %3078 = vmatprep.subr.bf16.mxu1 %v3077_v56  ;;  %v229_v13 = vld [vmem:[%s5738_s3 + $0x160] sm:$0xff]  ;;  %v230_v14 = vld [vmem:[%s5738_s3 + $0x168] sm:$0xff]  ;;  %v3085_v20 = vpack.c.bf16 %v246_v10, %v245_v9  ;;  %v247_v22 = vld [vmem:[%s5738_s3 + $0x1f0] sm:$0xff]  ;;  %v3055_v30 = vpack.c.bf16 %v198_v12, %v197_v8  ;;  %v3057_v38 = vpack.c.bf16 %v216_v21, %v215_v17 }
  0x15   :  { %3048 = vmatpush3.bf16.msra.mxu0 %v3047_v62  ;;  %v3882_v18 = vld [vmem:[%s5735_s0] sm:$0xff]  ;;  %v3887_v19 = vld [vmem:[%s5736_s1 + $0x8] sm:$0xff]  ;;  %v248_v26 = vld [vmem:[%s5738_s3 + $0x1f8] sm:$0xff]  ;;  %v3087_v37 = vpack.c.bf16 %v230_v14, %v229_v13 }
  0x16   :  { %3050 = vmatprep.subr.bf16.mxu0 %v3049_v0  ;;  %v50_v23 = vunpack.c.h.bf16 %v3882_v18  ;;  %v90_v24 = vunpack.c.0.s8 %v3887_v19  ;;  %v3900_v25 = vld [vmem:[%s5736_s1] sm:$0xff]  ;;  %v3909_v28 = vld [vmem:[%s5735_s0 + $0x8] sm:$0xff]  ;;  %v3914_v29 = vld [vmem:[%s5736_s1 + $0x18] sm:$0xff]  ;;  %v3089_v42 = vpack.c.bf16 %v248_v26, %v247_v22  ;;  %v49_v49 = vunpack.c.l.bf16 %v3882_v18 }
  0x17   :  { %3080 = vmatpush3.bf16.msra.mxu1 %v3079_v63  ;;  %v89_v27 = vunpack.c.0.s8 %v3900_v25  ;;  %v199_v31 = vld [vmem:[%s5738_s3 + $0x70] sm:$0xff]  ;;  %v200_v32 = vld [vmem:[%s5738_s3 + $0x78] sm:$0xff]  ;;  %v52_v35 = vunpack.c.h.bf16 %v3909_v28  ;;  %v92_v36 = vunpack.c.0.s8 %v3914_v29  ;;  %v265_v40 = vld [vmem:[%s5738_s3 + $0x280] sm:$0xff]  ;;  %v98_v54 = vunpack.c.1.s8 %v3887_v19 }
  0x18   :  { %3082 = vmatprep.subr.bf16.mxu1 %v3081_v4  ;;  %v3925_v33 = vld [vmem:[%s5738_s3 + $0x170] sm:$0xff]  ;;  %v3927_v34 = vcvt.s32.f32 %v90_v24  ;;  %v232_v39 = vld [vmem:[%s5738_s3 + $0x178] sm:$0xff]  ;;  %v266_v44 = vld [vmem:[%s5738_s3 + $0x288] sm:$0xff]  ;;  %v3059_v55 = vpack.c.bf16 %v200_v32, %v199_v31  ;;  %v51_v56 = vunpack.c.l.bf16 %v3909_v28  ;;  %v97_v4 = vunpack.c.1.s8 %v3900_v25 }
  0x19   :  { %3052 = vmatpush3.bf16.msra.mxu0 %v3051_v11  ;;  %v3940_v41 = vld [vmem:[%s5736_s1 + $0x10] sm:$0xff]  ;;  %v3948_v45 = vcvt.s32.f32 %v92_v36  ;;  %v3953_v46 = vld [vmem:[%s5738_s3 + $0x200] sm:$0xff]  ;;  %v3958_v47 = vld [vmem:[%s5738_s3 + $0x208] sm:$0xff]  ;;  %v3962_v50 = vcvt.s32.f32 %v89_v27  ;;  %v3091_v62 = vpack.c.bf16 %v232_v39, %v3925_v33  ;;  %v3093_v63 = vpack.c.bf16 %v266_v44, %v265_v40 }
  0x1a   :  { %3054 = vmatprep.subr.bf16.mxu0 %v3053_v16  ;;  %v3943_v43 = vmul.f32 %v3927_v34, %v50_v23  ;;  %v91_v48 = vunpack.c.0.s8 %v3940_v41  ;;  %v297_v51 = vld [vmem:[%s5738_s3 + $0x380] sm:$0xff]  ;;  %v298_v52 = vld [vmem:[%s5738_s3 + $0x388] sm:$0xff]  ;;  %v267_v60 = vld [vmem:[%s5738_s3 + $0x290] sm:$0xff]  ;;  %v100_v9 = vunpack.c.1.s8 %v3914_v29  ;;  %v3095_v11 = vpack.c.bf16 %v3958_v47, %v3953_v46 }
  0x1b   :  { %3084 = vmatpush3.bf16.msra.mxu1 %v3083_v15  ;;  %5806 = vst [vmem:[#allocation12_spill] sm:$0xff] %v3948_v45  ;;  %v3973_v53 = vld [vmem:[%s5738_s3 + $0x300] sm:$0xff]  ;;  %v3979_v57 = vmul.f32 %v3948_v45, %v52_v35  ;;  %v282_v59 = vld [vmem:[%s5738_s3 + $0x308] sm:$0xff]  ;;  %v268_v61 = vld [vmem:[%s5738_s3 + $0x298] sm:$0xff]  ;;  %v3125_v5 = vpack.c.bf16 %v298_v52, %v297_v51  ;;  %v4028_v10 = vmul.f32 %v3962_v50, %v49_v49  ;;  %v4047_v15 = vcvt.s32.f32 %v98_v54 }
  0x1c   :  { %3086 = vmatprep.subr.bf16.mxu1 %v3085_v20  ;;  %384 = vmatprep.mubr.f32.mxu0 %v3943_v43  ;;  %v3981_v58 = vcvt.s32.f32 %v91_v48  ;;  %v3996_v0 = vld [vmem:[%s5738_s3 + $0x210] sm:$0xff]  ;;  %v4001_v1 = vld [vmem:[%s5738_s3 + $0x218] sm:$0xff]  ;;  %v4024_v8 = vld [vmem:[%s5738_s3 + $0x2a0] sm:$0xff]  ;;  %v3127_v17 = vpack.c.bf16 %v282_v59, %v3973_v53  ;;  %v99_v22 = vunpack.c.1.s8 %v3940_v41  ;;  %v106_v23 = vunpack.c.2.s8 %v3887_v19 }
  0x1d   :  { %3056 = vmatpush3.bf16.msra.mxu0 %v3055_v30  ;;  %v299_v2 = vld [vmem:[%s5738_s3 + $0x390] sm:$0xff]  ;;  %v300_v3 = vld [vmem:[%s5738_s3 + $0x398] sm:$0xff]  ;;  %469 = vmatprep.mubr.f32.mxu1 %v3979_v57  ;;  %v4035_v12 = vld [vmem:[%s5738_s3 + $0x2a8] sm:$0xff]  ;;  %5807 = vst [vmem:[#allocation13_spill] sm:$0xff] %v4047_v15  ;;  %v3097_v24 = vpack.c.bf16 %v268_v61, %v267_v60  ;;  %v4085_v30 = vcvt.s32.f32 %v97_v4  ;;  %v105_v31 = vunpack.c.2.s8 %v3900_v25  ;;  %v108_v32 = vunpack.c.2.s8 %v3914_v29 }
  0x1e   :  { %3058 = vmatprep.subr.bf16.mxu0 %v3057_v38  ;;  %v4014_v6 = vld [vmem:[%s5738_s3 + $0x310] sm:$0xff]  ;;  %v4019_v7 = vld [vmem:[%s5738_s3 + $0x318] sm:$0xff]  ;;  %v4040_v13 = vld [vmem:[%s5738_s3 + $0x220] sm:$0xff]  ;;  %v4050_v16 = vmul.f32 %v3981_v58, %v51_v56  ;;  %v3099_v33 = vpack.c.bf16 %v4001_v1, %v3996_v0  ;;  %v3129_v35 = vpack.c.bf16 %v300_v3, %v299_v2  ;;  %v3101_v38 = vpack.c.bf16 %v4035_v12, %v4024_v8 }
  0x1f   :  { %3088 = vmatpush3.bf16.msra.mxu1 %v3087_v37  ;;  %v4045_v14 = vld [vmem:[%s5738_s3 + $0x228] sm:$0xff]  ;;  %v4056_v18 = vld [vmem:[%s5738_s3 + $0x3a0] sm:$0xff]  ;;  %v4078_v27 = vld [vmem:[%s5738_s3 + $0x2b0] sm:$0xff]  ;;  %v3131_v36 = vpack.c.bf16 %v4019_v7, %v4014_v6  ;;  %v4093_v37 = vcvt.s32.f32 %v100_v9  ;;  %v4111_v48 = vcvt.s32.f32 %v99_v22  ;;  %v4113_v49 = vcvt.s32.f32 %v106_v23 }
  0x20   :  { %3090 = vmatprep.subr.bf16.mxu1 %v3089_v42  ;;  %v4061_v20 = vld [vmem:[%s5738_s3 + $0x3a8] sm:$0xff]  ;;  %v4066_v21 = vld [vmem:[%s5738_s3 + $0x320] sm:$0xff]  ;;  %v4083_v28 = vld [vmem:[%s5738_s3 + $0x2b8] sm:$0xff]  ;;  %v3103_v39 = vpack.c.bf16 %v4045_v14, %v4040_v13  ;;  %v107_v42 = vunpack.c.2.s8 %v3940_v41  ;;  %v4118_v54 = vcvt.s32.f32 %v105_v31  ;;  %v115_v9 = vunpack.c.3.s8 %v3940_v41 }
  0x21   :  { %3060 = vmatpush3.bf16.msra.mxu0 %v3059_v55  ;;  %v4073_v26 = vld [vmem:[%s5738_s3 + $0x328] sm:$0xff]  ;;  %5808 = vst [vmem:[#allocation14_spill] sm:$0xff] %v4093_v37  ;;  %v3133_v40 = vpack.c.bf16 %v4061_v20, %v4056_v18  ;;  %v3105_v46 = vpack.c.bf16 %v4083_v28, %v4078_v27  ;;  %v37_v47 = vld [vmem:[%s5735_s0 + $0x20] sm:$0xff]  ;;  %5809 = vst [vmem:[#allocation15_spill] sm:$0xff] %v4113_v49  ;;  %v4120_v55 = vcvt.s32.f32 %v108_v32 }
  0x22   :  { %3094 = vmatprep.subr.bf16.mxu0 %v3093_v63  ;;  %v3135_v44 = vpack.c.bf16 %v4073_v26, %v4066_v21  ;;  %v58_v51 = vunpack.c.h.bf16 %v37_v47  ;;  %v57_v52 = vunpack.c.l.bf16 %v37_v47  ;;  %v38_v53 = vld [vmem:[%s5735_s0 + $0x28] sm:$0xff]  ;;  %5810 = vst [vmem:[#allocation16_spill] sm:$0xff] %v4118_v54  ;;  %v4125_v56 = vld [vmem:[%s5738_s3 + $0x230] sm:$0xff]  ;;  %v4130_v59 = vld [vmem:[%s5738_s3 + $0x238] sm:$0xff]  ;;  %v113_v63 = vunpack.c.3.s8 %v3900_v25 }
  0x23   :  { %3092 = vmatpush3.bf16.msra.mxu1 %v3091_v62  ;;  %5811 = vst [vmem:[#allocation17_spill] sm:$0xff] %v4120_v55  ;;  %v60_v60 = vunpack.c.h.bf16 %v38_v53  ;;  %v59_v61 = vunpack.c.l.bf16 %v38_v53  ;;  %v114_v62 = vunpack.c.3.s8 %v3887_v19  ;;  %v303_v0 = vld [vmem:[%s5738_s3 + $0x3b0] sm:$0xff]  ;;  %v304_v1 = vld [vmem:[%s5738_s3 + $0x3b8] sm:$0xff]  ;;  %v41_v19 = vld [vmem:[%s5735_s0 + $0x40] sm:$0xff]  ;;  %v4149_v4 = vcvt.s32.f32 %v107_v42 }
  0x24   :  { %3126 = vmatprep.subr.bf16.mxu1 %v3125_v5  ;;  %385 = vmatmul.mubr.f32.vlgmr.msra.gmra.mrb[0].mxu0 %v4028_v10  ;;  %v4141_v2 = vmul.f32 %v4047_v15, %v58_v51  ;;  %v4144_v3 = vmul.f32 %v4085_v30, %v57_v52  ;;  %v116_v25 = vunpack.c.3.s8 %v3914_v29  ;;  %v66_v7 = vunpack.c.h.bf16 %v41_v19  ;;  %v42_v8 = vld [vmem:[%s5735_s0 + $0x48] sm:$0xff]  ;;  %v287_v29 = vld [vmem:[%s5738_s3 + $0x330] sm:$0xff]  ;;  %v288_v12 = vld [vmem:[%s5738_s3 + $0x338] sm:$0xff] }
  0x25   :  { %3096 = vmatpush3.bf16.msra.mxu0 %v3095_v11  ;;  %5812 = vst [vmem:[#allocation18_spill] sm:$0xff] %v4149_v4  ;;  %v4153_v5 = vmul.f32 %v4093_v37, %v60_v60  ;;  %v4156_v6 = vmul.f32 %v4111_v48, %v59_v61  ;;  %v3107_v11 = vpack.c.bf16 %v4130_v59, %v4125_v56  ;;  %v65_v13 = vunpack.c.l.bf16 %v41_v19  ;;  %v273_v41 = vld [vmem:[%s5738_s3 + $0x2c0] sm:$0xff]  ;;  %v274_v20 = vld [vmem:[%s5738_s3 + $0x2c8] sm:$0xff]  ;;  %v276_v27 = vld [vmem:[%s5738_s3 + $0x2d8] sm:$0xff] }
  0x26   :  { %470 = vmatmul.mubr.f32.vlgmr.msra.gmra.mrb[0].mxu1 %v4050_v16  ;;  %3098 = vmatprep.subr.bf16.mxu0 %v3097_v24  ;;  %v68_v14 = vunpack.c.h.bf16 %v42_v8  ;;  %v3137_v18 = vpack.c.bf16 %v304_v1, %v303_v0  ;;  %v4178_v22 = vmul.f32 %v4113_v49, %v66_v7  ;;  %v45_v23 = vld [vmem:[%s5735_s0 + $0x60] sm:$0xff]  ;;  %v4183_v24 = vcvt.s32.f32 %v114_v62  ;;  %v258_v51 = vld [vmem:[%s5738_s3 + $0x248] sm:$0xff]  ;;  %v307_v28 = vld [vmem:[%s5738_s3 + $0x3d0] sm:$0xff] }
  0x27   :  { %3128 = vmatpush3.bf16.msra.mxu1 %v3127_v17  ;;  %v67_v17 = vunpack.c.l.bf16 %v42_v8  ;;  %389 = vmatprep.mubr.f32.mxu0 %v4141_v2  ;;  %v4185_v31 = vcvt.s32.f32 %v113_v63  ;;  %v305_v32 = vld [vmem:[%s5738_s3 + $0x3c0] sm:$0xff]  ;;  %v4204_v42 = vcvt.s32.f32 %v116_v25  ;;  %v73_v53 = vunpack.c.l.bf16 %v45_v23  ;;  %v290_v62 = vld [vmem:[%s5738_s3 + $0x348] sm:$0xff]  ;;  %v275_v63 = vld [vmem:[%s5738_s3 + $0x2d0] sm:$0xff] }
  0x28   :  { %3130 = vmatprep.subr.bf16.mxu1 %v3129_v35  ;;  %5813 = vst [vmem:[#allocation19_spill] sm:$0xff] %v4178_v22  ;;  %5814 = vst [vmem:[#allocation20_spill] sm:$0xff] %v4183_v24  ;;  %390 = vmatmul.mubr.f32.gmra.mrb[2].mxu0 %v4144_v3  ;;  %v4196_v35 = vmul.f32 %v4118_v54, %v65_v13  ;;  %v257_v47 = vld [vmem:[%s5738_s3 + $0x240] sm:$0xff]  ;;  %v4216_v59 = vcvt.s32.f32 %v115_v9  ;;  %v3109_v60 = vpack.c.bf16 %v274_v20, %v273_v41  ;;  %v308_v0 = vld [vmem:[%s5738_s3 + $0x3d8] sm:$0xff] }
  0x29   :  { %3100 = vmatpush3.bf16.msra.mxu0 %v3099_v33  ;;  %5815 = vst [vmem:[#allocation21_spill] sm:$0xff] %v4185_v31  ;;  %v306_v33 = vld [vmem:[%s5738_s3 + $0x3c8] sm:$0xff]  ;;  %474 = vmatprep.mubr.f32.mxu1 %v4153_v5  ;;  %5817 = vst [vmem:[#allocation23_spill] sm:$0xff] %v4204_v42  ;;  %v4214_v52 = vmul.f32 %v4149_v4, %v67_v17  ;;  %v289_v61 = vld [vmem:[%s5738_s3 + $0x340] sm:$0xff]  ;;  %v4254_v1 = vmul.f32 %v4185_v31, %v73_v53 }
  0x2a   :  { %3102 = vmatprep.subr.bf16.mxu0 %v3101_v38  ;;  %v74_v38 = vunpack.c.h.bf16 %v45_v23  ;;  %475 = vmatmul.mubr.f32.gmra.mrb[2].mxu1 %v4156_v6  ;;  %5818 = vst [vmem:[#allocation24_spill] sm:$0xff] %v4216_v59  ;;  %v3141_v26 = vpack.c.bf16 %v306_v33, %v305_v32  ;;  %v4262_v25 = vld [vmem:[%s5736_s1 + $0x28] sm:$0xff]  ;;  %v4267_v7 = vld [vmem:[%s5735_s0 + $0x18] sm:$0xff]  ;;  %v3111_v8 = vpack.c.bf16 %v258_v51, %v257_v47  ;;  %v259_v9 = vld [vmem:[%s5738_s3 + $0x250] sm:$0xff] }
  0x2b   :  { %3132 = vmatpush3.bf16.msra.mxu1 %v3131_v36  ;;  %v4199_v36 = vmul.f32 %v4120_v55, %v68_v14  ;;  %394 = vmatprep.mubr.f32.mxu0 %v4178_v22  ;;  %5820 = vst [vmem:[#allocation26_spill] sm:$0xff] %v4254_v1  ;;  %v94_v14 = vunpack.c.0.s8 %v4262_v25  ;;  %v3143_v17 = vpack.c.bf16 %v290_v62, %v289_v61  ;;  %v291_v41 = vld [vmem:[%s5738_s3 + $0x350] sm:$0xff]  ;;  %v292_v20 = vld [vmem:[%s5738_s3 + $0x358] sm:$0xff]  ;;  %v277_v23 = vld [vmem:[%s5738_s3 + $0x2e0] sm:$0xff]  ;;  %v56_v32 = vunpack.c.h.bf16 %v4267_v7 }
  0x2c   :  { %3134 = vmatprep.subr.bf16.mxu1 %v3133_v40  ;;  %v46_v40 = vld [vmem:[%s5735_s0 + $0x68] sm:$0xff]  ;;  %395 = vmatmul.mubr.f32.gmra.mrb[4].mxu0 %v4196_v35  ;;  %v4304_v47 = vld [vmem:[%s5736_s1 + $0x20] sm:$0xff]  ;;  %v4311_v53 = vld [vmem:[%s5736_s1 + $0x30] sm:$0xff]  ;;  %v3147_v62 = vpack.c.bf16 %v292_v20, %v291_v41 }
  0x2d   :  { %5816 = vst [vmem:[#allocation22_spill] sm:$0xff] %v4199_v36  ;;  %3104 = vmatpush3.bf16.msra.mxu0 %v3103_v39  ;;  %v76_v56 = vunpack.c.h.bf16 %v46_v40  ;;  %v3139_v39 = vpack.c.bf16 %v288_v12, %v287_v29  ;;  %v75_v21 = vunpack.c.l.bf16 %v46_v40  ;;  %479 = vmatprep.mubr.f32.mxu1 %v4199_v36  ;;  %v260_v29 = vld [vmem:[%s5738_s3 + $0x258] sm:$0xff]  ;;  %v278_v40 = vld [vmem:[%s5738_s3 + $0x2e8] sm:$0xff]  ;;  %v4306_v51 = vcvt.s32.f32 %v94_v14 }
  0x2e   :  { %3106 = vmatprep.subr.bf16.mxu0 %v3105_v46  ;;  %v4246_v46 = vld [vmem:[%s5735_s0 + $0x10] sm:$0xff]  ;;  %480 = vmatmul.mubr.f32.gmra.mrb[4].mxu1 %v4214_v52  ;;  %v3115_v61 = vpack.c.bf16 %v260_v29, %v259_v9  ;;  %v280_v9 = vld [vmem:[%s5738_s3 + $0x2f8] sm:$0xff]  ;;  %v93_v29 = vunpack.c.0.s8 %v4304_v47 }
  0x2f   :  { %3136 = vmatpush3.bf16.msra.mxu1 %v3135_v44  ;;  %v4241_v44 = vmul.f32 %v4183_v24, %v74_v38  ;;  %v4257_v19 = vmul.f32 %v4204_v42, %v76_v56  ;;  %v4277_v12 = vmul.f32 %v4216_v59, %v75_v21  ;;  %v54_v13 = vunpack.c.h.bf16 %v4246_v46  ;;  %5823 = vst [vmem:[#allocation29_spill] sm:$0xff] %v4306_v51  ;;  %v309_v56 = vld [vmem:[%s5738_s3 + $0x3e0] sm:$0xff]  ;;  %v262_v21 = vld [vmem:[%s5738_s3 + $0x268] sm:$0xff] }
  0x30   :  { %3138 = vmatprep.subr.bf16.mxu1 %v3137_v18  ;;  %v3113_v18 = vpack.c.bf16 %v276_v27, %v275_v63  ;;  %v3145_v38 = vpack.c.bf16 %v308_v0, %v307_v28  ;;  %v261_v63 = vld [vmem:[%s5738_s3 + $0x260] sm:$0xff]  ;;  %v3117_v28 = vpack.c.bf16 %v278_v40, %v277_v23  ;;  %v294_v0 = vld [vmem:[%s5738_s3 + $0x368] sm:$0xff] }
  0x31   :  { %5819 = vst [vmem:[#allocation25_spill] sm:$0xff] %v4241_v44  ;;  %5821 = vst [vmem:[#allocation27_spill] sm:$0xff] %v4257_v19  ;;  %3108 = vmatpush3.bf16.msra.mxu0 %v3107_v11  ;;  %v4284_v11 = vld [vmem:[%s5736_s1 + $0x38] sm:$0xff]  ;;  %399 = vmatprep.mubr.f32.mxu0 %v4241_v44  ;;  %v4334_v27 = vmul.f32 %v4306_v51, %v54_v13  ;;  %v95_v13 = vunpack.c.0.s8 %v4311_v53 }
  0x32   :  { %5822 = vst [vmem:[#allocation28_spill] sm:$0xff] %v4277_v12  ;;  %3110 = vmatprep.subr.bf16.mxu0 %v3109_v60  ;;  %v96_v33 = vunpack.c.0.s8 %v4284_v11  ;;  %400 = vmatmul.mubr.f32.gmra.mrb[6].mxu0 %v4254_v1 }
  0x33   :  { %3140 = vmatpush3.bf16.msra.mxu1 %v3139_v39  ;;  %v310_v39 = vld [vmem:[%s5738_s3 + $0x3e8] sm:$0xff]  ;;  %484 = vmatprep.mubr.f32.mxu1 %v4257_v19  ;;  %5825 = vst [vmem:[#allocation31_spill] sm:$0xff] %v4334_v27 }
  0x34   :  { %3142 = vmatprep.subr.bf16.mxu1 %v3141_v26  ;;  %v4321_v60 = vcvt.s32.f32 %v96_v33  ;;  %v293_v26 = vld [vmem:[%s5738_s3 + $0x360] sm:$0xff]  ;;  %485 = vmatmul.mubr.f32.gmra.mrb[6].mxu1 %v4277_v12 }
  0x35   :  { %3112 = vmatpush3.bf16.msra.mxu0 %v3111_v8  ;;  %v279_v8 = vld [vmem:[%s5738_s3 + $0x2f0] sm:$0xff]  ;;  %554 = vmatprep.mubr.f32.mxu0 %v4334_v27 }
  0x36   :  { %5824 = vst [vmem:[#allocation30_spill] sm:$0xff] %v4321_v60  ;;  %3114 = vmatprep.subr.bf16.mxu0 %v3113_v18  ;;  %v4348_v14 = vmul.f32 %v4321_v60, %v56_v32  ;;  %v102_v18 = vunpack.c.1.s8 %v4262_v25 }
  0x37   :  { %3144 = vmatpush3.bf16.msra.mxu1 %v3143_v17  ;;  %v3149_v17 = vpack.c.bf16 %v310_v39, %v309_v56 }
  0x38   :  { %5826 = vst [vmem:[#allocation32_spill] sm:$0xff] %v4348_v14  ;;  %3146 = vmatprep.subr.bf16.mxu1 %v3145_v38 }
  0x39   :  { %18 = vsyncpa [#allocation8], 0  ;;  %v311_v41 = vld [vmem:[%s5738_s3 + $0x3f0] sm:$0xff]  ;;  %v312_v20 = vld [vmem:[%s5738_s3 + $0x3f8] sm:$0xff]  ;;  %639 = vmatprep.mubr.f32.mxu1 %v4348_v14  ;;  %v101_v32 = vunpack.c.1.s8 %v4304_v47  ;;  %3116 = vmatpush3.bf16.msra.mxu0 %v3115_v61  ;;  %v3119_v33 = vpack.c.bf16 %v262_v21, %v261_v63  ;;  %v3151_v38 = vpack.c.bf16 %v294_v0, %v293_v26  ;;  %v3121_v40 = vpack.c.bf16 %v280_v9, %v279_v8 }
  0x3a   :  { %v39_v23 = vld [vmem:[%s5735_s0 + $0x30] sm:$0xff]  ;;  %v264_v39 = vld [vmem:[%s5738_s3 + $0x278] sm:$0xff]  ;;  %v104_v60 = vunpack.c.1.s8 %v4284_v11  ;;  %3118 = vmatprep.subr.bf16.mxu0 %v3117_v28  ;;  %v53_v63 = vunpack.c.l.bf16 %v4246_v46  ;;  %v4377_v21 = vcvt.s32.f32 %v93_v29  ;;  %v55_v26 = vunpack.c.l.bf16 %v4267_v7  ;;  %v666_v46 = vld [vmem:[%s5740_s5 + $0x8] sm:$0xff] }
  0x3b   :  { %v263_v56 = vld [vmem:[%s5738_s3 + $0x270] sm:$0xff]  ;;  %3148 = vmatpush3.bf16.msra.mxu1 %v3147_v62  ;;  %v296_v61 = vld [vmem:[%s5738_s3 + $0x378] sm:$0xff]  ;;  %v4380_v0 = vcvt.s32.f32 %v95_v13  ;;  %v3153_v28 = vpack.c.bf16 %v312_v20, %v311_v41  ;;  %v62_v8 = vunpack.c.h.bf16 %v39_v23  ;;  %v4387_v9 = vcvt.s32.f32 %v102_v18  ;;  %v674_v13 = vld [vmem:[%s5740_s5 + $0x48] sm:$0xff] }
  0x3c   :  { %v295_v51 = vld [vmem:[%s5738_s3 + $0x370] sm:$0xff]  ;;  %5827 = vst [vmem:[#allocation33_spill] sm:$0xff] %v4377_v21  ;;  %v4385_v62 = vld [vmem:[%s5735_s0 + $0x38] sm:$0xff]  ;;  %3150 = vmatprep.subr.bf16.mxu1 %v3149_v17  ;;  %v3123_v29 = vpack.c.bf16 %v264_v39, %v263_v56  ;;  %v61_v14 = vunpack.c.l.bf16 %v39_v23  ;;  %v4392_v27 = vcvt.s32.f32 %v101_v32  ;;  %v103_v7 = vunpack.c.1.s8 %v4311_v53 }
  0x3d   :  { %5828 = vst [vmem:[#allocation34_spill] sm:$0xff] %v4380_v0  ;;  %5829 = vst [vmem:[#allocation35_spill] sm:$0xff] %v4387_v9  ;;  %v668_v17 = vld [vmem:[%s5740_s5 + $0x18] sm:$0xff]  ;;  %3120 = vmatpush3.bf16.msra.mxu0 %v3119_v33  ;;  %v3155_v41 = vpack.c.bf16 %v296_v61, %v295_v51  ;;  %v64_v20 = vunpack.c.h.bf16 %v4385_v62  ;;  %v4405_v23 = vcvt.s32.f32 %v104_v60  ;;  %v4410_v32 = vld [vmem:[%s5735_s0 + $0x50] sm:$0xff]  ;;  %v110_v56 = vunpack.c.2.s8 %v4262_v25 }
  0x3e   :  { %5830 = vst [vmem:[#allocation36_spill] sm:$0xff] %v4392_v27  ;;  %v676_v18 = vld [vmem:[%s5740_s5 + $0x58] sm:$0xff]  ;;  %3122 = vmatprep.subr.bf16.mxu0 %v3121_v40  ;;  %v4414_v39 = vmul.f32 %v4377_v21, %v53_v63  ;;  %v4417_v42 = vmul.f32 %v4380_v0, %v55_v26  ;;  %v63_v51 = vunpack.c.l.bf16 %v4385_v62  ;;  %v112_v33 = vunpack.c.2.s8 %v4284_v11  ;;  %v665_v26 = vld [vmem:[%s5740_s5] sm:$0xff]  ;;  %v690_v0 = vld [vmem:[%s5740_s5 + $0xc8] sm:$0xff] }
  0x3f   :  { %5831 = vst [vmem:[#allocation37_spill] sm:$0xff] %v4405_v23  ;;  %3152 = vmatpush3.bf16.msra.mxu1 %v3151_v38  ;;  %v4423_v60 = vld [vmem:[%s5735_s0 + $0x58] sm:$0xff]  ;;  %v4427_v61 = vmul.f32 %v4387_v9, %v62_v8  ;;  %v109_v38 = vunpack.c.2.s8 %v4304_v47  ;;  %v4430_v40 = vpack.c.bf16 %v674_v13, %v666_v46  ;;  %v4432_v63 = vpack.c.bf16 %v676_v18, %v668_v17  ;;  %v673_v62 = vld [vmem:[%s5740_s5 + $0x40] sm:$0xff]  ;;  %v675_v17 = vld [vmem:[%s5740_s5 + $0x50] sm:$0xff] }
  0x40   :  { %5832 = vst [vmem:[#allocation38_spill] sm:$0xff] %v4414_v39  ;;  %5833 = vst [vmem:[#allocation39_spill] sm:$0xff] %v4417_v42  ;;  %3154 = vmatprep.subr.bf16.mxu1 %v3153_v28  ;;  %v667_v28 = vld [vmem:[%s5740_s5 + $0x10] sm:$0xff]  ;;  %v4444_v8 = vmul.f32 %v4392_v27, %v61_v14  ;;  %v4446_v9 = vcvt.s32.f32 %v103_v7  ;;  %v70_v46 = vunpack.c.h.bf16 %v4410_v32  ;;  %v69_v13 = vunpack.c.l.bf16 %v4410_v32  ;;  %v682_v18 = vld [vmem:[%s5740_s5 + $0x88] sm:$0xff] }
  0x41   :  { %5834 = vst [vmem:[#allocation40_spill] sm:$0xff] %v4427_v61  ;;  %3124 = vmatpush3.bf16.msra.mxu0 %v3123_v29  ;;  %v4460_v14 = vmul.f32 %v4405_v23, %v64_v20  ;;  %v4462_v7 = vcvt.s32.f32 %v110_v56  ;;  %v111_v32 = vunpack.c.2.s8 %v4311_v53  ;;  %v47_v27 = vld [vmem:[%s5735_s0 + $0x70] sm:$0xff]  ;;  %v118_v21 = vunpack.c.3.s8 %v4262_v25  ;;  %v684_v24 = vld [vmem:[%s5740_s5 + $0x98] sm:$0xff] }
  0x42   :  { %5835 = vst [vmem:[#allocation41_spill] sm:$0xff] %v4444_v8  ;;  %5836 = vst [vmem:[#allocation42_spill] sm:$0xff] %v4446_v9  ;;  %v692_v29 = vld [vmem:[%s5740_s5 + $0xd8] sm:$0xff]  ;;  %v72_v20 = vunpack.c.h.bf16 %v4423_v60  ;;  %v4476_v56 = vcvt.s32.f32 %v112_v33  ;;  %v120_v23 = vunpack.c.3.s8 %v4284_v11  ;;  %3158 = vmatprep.subr.bf16.mxu0 %v4430_v40  ;;  %v4480_v59 = vpack.c.bf16 %v673_v62, %v665_v26 }
  0x43   :  { %5837 = vst [vmem:[#allocation43_spill] sm:$0xff] %v4460_v14  ;;  %5838 = vst [vmem:[#allocation44_spill] sm:$0xff] %v4462_v7  ;;  %3156 = vmatpush3.bf16.msra.mxu1 %v3155_v41  ;;  %v4482_v25 = vcvt.s32.f32 %v109_v38  ;;  %v71_v31 = vunpack.c.l.bf16 %v4423_v60  ;;  %v48_v19 = vld [vmem:[%s5735_s0 + $0x78] sm:$0xff]  ;;  %v4489_v41 = vpack.c.bf16 %v675_v17, %v667_v28  ;;  %v4491_v33 = vpack.c.bf16 %v690_v0, %v682_v18 }
  0x44   :  { %5839 = vst [vmem:[#allocation45_spill] sm:$0xff] %v4476_v56  ;;  %3166 = vmatprep.subr.bf16.mxu1 %v4432_v63  ;;  %555 = vmatmul.mubr.f32.vlgmr.msra.gmra.mrb[8].mxu0 %v4414_v39  ;;  %v4495_v11 = vmul.f32 %v4446_v9, %v63_v51  ;;  %v78_v26 = vunpack.c.h.bf16 %v47_v27  ;;  %v117_v38 = vunpack.c.3.s8 %v4304_v47  ;;  %v4498_v62 = vpack.c.bf16 %v692_v29, %v684_v24 }
  0x45   :  { %5840 = vst [vmem:[#allocation46_spill] sm:$0xff] %v4482_v25  ;;  %559 = vmatprep.mubr.f32.mxu0 %v4427_v61  ;;  %v4503_v60 = vmul.f32 %v4462_v7, %v70_v46  ;;  %v4505_v28 = vcvt.s32.f32 %v111_v32  ;;  %v4507_v0 = vcvt.s32.f32 %v118_v21  ;;  %v119_v17 = vunpack.c.3.s8 %v4311_v53  ;;  %3160 = vmatpush1.bf16.msra.mxu0 %v4480_v59  ;;  %v687_v7 = vld [vmem:[%s5740_s5 + $0xb0] sm:$0xff] }
  0x46   :  { %5841 = vst [vmem:[#allocation47_spill] sm:$0xff] %v4495_v11  ;;  %640 = vmatmul.mubr.f32.vlgmr.msra.gmra.mrb[8].mxu1 %v4417_v42  ;;  %v4512_v51 = vmul.f32 %v4476_v56, %v72_v20  ;;  %v80_v24 = vunpack.c.h.bf16 %v48_v19  ;;  %v4514_v47 = vcvt.s32.f32 %v120_v23  ;;  %3162 = vmatprep.subr.bf16.mxu0 %v4491_v33  ;;  %v4521_v21 = vmul.f32 %v4482_v25, %v69_v13  ;;  %v689_v20 = vld [vmem:[%s5740_s5 + $0xc0] sm:$0xff] }
  0x47   :  { %5842 = vst [vmem:[#allocation48_spill] sm:$0xff] %v4503_v60  ;;  %5843 = vst [vmem:[#allocation49_spill] sm:$0xff] %v4505_v28  ;;  %644 = vmatprep.mubr.f32.mxu1 %v4460_v14  ;;  %3168 = vmatpush1.bf16.msra.mxu1 %v4489_v41  ;;  %v77_v53 = vunpack.c.l.bf16 %v47_v27  ;;  %v4523_v46 = vcvt.s32.f32 %v117_v38  ;;  %v4529_v23 = vmul.f32 %v4505_v28, %v71_v31  ;;  %v79_v32 = vunpack.c.l.bf16 %v48_v19  ;;  %v681_v19 = vld [vmem:[%s5740_s5 + $0x80] sm:$0xff] }
  0x48   :  { %5844 = vst [vmem:[#allocation50_spill] sm:$0xff] %v4507_v0  ;;  %5845 = vst [vmem:[#allocation51_spill] sm:$0xff] %v4512_v51  ;;  %560 = vmatmul.mubr.f32.gmra.mrb[10].mxu0 %v4444_v8  ;;  %3170 = vmatprep.subr.bf16.mxu1 %v4498_v62  ;;  %v4532_v18 = vmul.f32 %v4507_v0, %v78_v26  ;;  %v4534_v29 = vcvt.s32.f32 %v119_v17  ;;  %v4538_v27 = vmul.f32 %v4514_v47, %v80_v24  ;;  %v683_v26 = vld [vmem:[%s5740_s5 + $0x90] sm:$0xff]  ;;  %vm660_vm0 = vcmask 261120   ;;  %v693_v56 = vld [vmem:[%s5740_s5 + $0xe0] sm:$0xff] }
  0x49   :  { %5846 = vst [vmem:[#allocation52_spill] sm:$0xff] %v4514_v47  ;;  %5847 = vst [vmem:[#allocation53_spill] sm:$0xff] %v4521_v21  ;;  %564 = vmatprep.mubr.f32.mxu0 %v4503_v60  ;;  %v4542_v13 = vmul.f32 %v4523_v46, %v77_v53  ;;  %v4561_v38 = vpack.c.bf16 %v689_v20, %v681_v19  ;;  %v691_v17 = vld [vmem:[%s5740_s5 + $0xd0] sm:$0xff]  ;;  %v5760_v53 = vmov 0.0   ;;  %v670_v19 = vld [vmem:[%s5740_s5 + $0x28] sm:$0xff] }
  0x4a   :  { %5848 = vst [vmem:[#allocation54_spill] sm:$0xff] %v4523_v46  ;;  %645 = vmatmul.mubr.f32.gmra.mrb[10].mxu1 %v4495_v11  ;;  %5849 = vst [vmem:[#allocation55_spill] sm:$0xff] %v4529_v23  ;;  %v4547_v31 = vmul.f32 %v4534_v29, %v79_v32  ;;  %v4566_v24 = vpack.c.bf16 %v691_v17, %v683_v26  ;;  %v698_v32 = vld [vmem:[%s5737_s2] sm:$0xff]  ;;  %v678_v20 = vld [vmem:[%s5740_s5 + $0x68] sm:$0xff] }
  0x4b   :  { %5850 = vst [vmem:[#allocation56_spill] sm:$0xff] %v4532_v18  ;;  %5851 = vst [vmem:[#allocation57_spill] sm:$0xff] %v4534_v29  ;;  %649 = vmatprep.mubr.f32.mxu1 %v4512_v51  ;;  %3164 = vmatpush1.bf16.msra.mxu0 %v4561_v38  ;;  %v3173_v26 = vpack.c.bf16 %v678_v20, %v670_v19  ;;  %v672_v17 = vld [vmem:[%s5740_s5 + $0x38] sm:$0xff]  ;;  %v669_v47 = vld [vmem:[%s5740_s5 + $0x20] sm:$0xff]  ;;  %v5855_v29 = vmov 0.0  }
  0x4c   :  { %5852 = vst [vmem:[#allocation58_spill] sm:$0xff] %v4538_v27  ;;  %565 = vmatmul.mubr.f32.gmra.mrb[12].mxu0 %v4521_v21  ;;  %5853 = vst [vmem:[#allocation59_spill] sm:$0xff] %v4542_v13  ;;  %3172 = vmatpush1.bf16.msra.mxu1 %v4566_v24  ;;  %v671_v19 = vld [vmem:[%s5740_s5 + $0x30] sm:$0xff]  ;;  %v686_v46 = vld [vmem:[%s5740_s5 + $0xa8] sm:$0xff] }
  0x4d   :  { %569 = vmatprep.mubr.f32.mxu0 %v4532_v18  ;;  %5854 = vst [vmem:[#allocation60_spill] sm:$0xff] %v4547_v31  ;;  %v679_v20 = vld [vmem:[%s5740_s5 + $0x70] sm:$0xff]  ;;  %3174 = vmatprep.subr.bf16.mxu0 %v3173_v26 }
  0x4e   :  { %650 = vmatmul.mubr.f32.gmra.mrb[12].mxu1 %v4529_v23 }
  0x4f   :  { %654 = vmatprep.mubr.f32.mxu1 %v4538_v27  ;;  %v677_v27 = vld [vmem:[%s5740_s5 + $0x60] sm:$0xff] }
  0x50   :  { %570 = vmatmul.mubr.f32.gmra.mrb[14].mxu0 %v4542_v13  ;;  %v4603_v18 = vpack.c.bf16 %v677_v27, %v669_v47  ;;  %v688_v47 = vld [vmem:[%s5740_s5 + $0xb8] sm:$0xff]  ;;  %v685_v13 = vld [vmem:[%s5740_s5 + $0xa0] sm:$0xff] }
  0x51   :  { %819 = vmatprep.mubr.f32.mxu0 %v5760_v53  ;;  %v696_v27 = vld [vmem:[%s5740_s5 + $0xf8] sm:$0xff] }
  0x52   :  { %655 = vmatmul.mubr.f32.gmra.mrb[14].mxu1 %v4547_v31  ;;  %v694_v31 = vld [vmem:[%s5740_s5 + $0xe8] sm:$0xff] }
  0x53   :  { %908 = vmatprep.mubr.f32.mxu1 %v5760_v53  ;;  %v680_v53 = vld [vmem:[%s5740_s5 + $0x78] sm:$0xff] }
  0x54   :  { %2725 = vmatmul.mubr.msk.f32.vlgmr.msra.gmra.mrb[16].mxu0 %vm660_vm0, %v698_v32  ;;  %v3181_v0 = vpack.c.bf16 %v680_v53, %v672_v17  ;;  %v4605_v53 = vpack.c.bf16 %v679_v20, %v671_v19  ;;  %v699_v17 = vld [vmem:[%s5737_s2 + $0x8] sm:$0xff]  ;;  %v4624_v19 = vpack.c.bf16 %v694_v31, %v686_v46  ;;  %v4626_v20 = vpack.c.bf16 %v696_v27, %v688_v47  ;;  %v695_v31 = vld [vmem:[%s5740_s5 + $0xf0] sm:$0xff] }
  0x55   :  { %825 = vmatprep.mubr.f32.mxu0 %v5855_v29  ;;  %3176 = vmatpush1.bf16.msra.mxu0 %v4603_v18  ;;  %v4639_v46 = vpack.c.bf16 %v693_v56, %v685_v13  ;;  %v700_v47 = vld [vmem:[%s5737_s2 + $0x10] sm:$0xff]  ;;  %v4649_v27 = vpack.c.bf16 %v695_v31, %v687_v7  ;;  %v701_v7 = vld [vmem:[%s5737_s2 + $0x18] sm:$0xff] }
  0x56   :  { %2729 = vmatmul.mubr.msk.f32.vlgmr.msra.gmra.mrb[16].mxu1 %vm660_vm0, %v698_v32  ;;  %3182 = vmatprep.subr.bf16.mxu1 %v3181_v0 }
  0x57   :  { %914 = vmatprep.mubr.f32.mxu1 %v5855_v29  ;;  %3184 = vmatpush1.bf16.msra.mxu1 %v4605_v53 }
  0x58   :  { %2726 = vmatmul.mubr.msk.f32.gmra.mrb[18].mxu0 %vm660_vm0, %v699_v17  ;;  %3178 = vmatprep.subr.bf16.mxu0 %v4624_v19 }
  0x59   :  { %831 = vmatprep.mubr.f32.mxu0 %v5855_v29  ;;  %3186 = vmatprep.subr.bf16.mxu1 %v4626_v20 }
  0x5a   :  { %2730 = vmatmul.mubr.msk.f32.gmra.mrb[18].mxu1 %vm660_vm0, %v699_v17  ;;  %3180 = vmatpush1.bf16.msra.mxu0 %v4639_v46 }
  0x5b   :  { %920 = vmatprep.mubr.f32.mxu1 %v5855_v29  ;;  %3188 = vmatpush1.bf16.msra.mxu1 %v4649_v27 }
  0x5c   :  { %2727 = vmatmul.mubr.msk.f32.gmra.mrb[20].mxu0 %vm660_vm0, %v700_v47  ;;  %3190 = vmatprep.subr.bf16.mxu0 %v4430_v40  ;;  %v2724_v40 = vld [vmem:[%s5739_s4] ss:$0 sm:$0xff] }
  0x5d   :  { %837 = vmatprep.mubr.f32.mxu0 %v5855_v29  ;;  %3198 = vmatprep.subr.bf16.mxu1 %v4432_v63 }
  0x5e   :  { %2731 = vmatmul.mubr.msk.f32.gmra.mrb[20].mxu1 %vm660_vm0, %v700_v47 }
  0x5f   :  { %926 = vmatprep.mubr.f32.mxu1 %v5855_v29 }
  0x60   :  { %2728 = vmatmul.mubr.msk.f32.gmra.mrb[22].mxu0 %vm660_vm0, %v701_v7 }
  0x61   :  { %997 = vmatprep.mubr.f32.mxu0 %v5855_v29 }
  0x62   :  { %2732 = vmatmul.mubr.msk.f32.gmra.mrb[22].mxu1 %vm660_vm0, %v701_v7 }
  0x63   :  { %1086 = vmatprep.mubr.f32.mxu1 %v5855_v29 }
  0x64   :  { %2733 = vmatmul.mubr.msk.f32.vlgmr.msra.gmra.mrb[24].mxu0 %vm660_vm0, %v698_v32 }
  0x65   :  { %3192 = vmatpush1.bf16.msra.mxu0 %v4480_v59  ;;  %1003 = vmatprep.mubr.f32.mxu0 %v5855_v29 }
  0x66   :  { %2737 = vmatmul.mubr.msk.f32.vlgmr.msra.gmra.mrb[24].mxu1 %vm660_vm0, %v698_v32  ;;  %3194 = vmatprep.subr.bf16.mxu0 %v4491_v33 }
  0x67   :  { %3200 = vmatpush1.bf16.msra.mxu1 %v4489_v41  ;;  %1092 = vmatprep.mubr.f32.mxu1 %v5855_v29 }
  0x68   :  { %3202 = vmatprep.subr.bf16.mxu1 %v4498_v62  ;;  %2734 = vmatmul.mubr.msk.f32.gmra.mrb[26].mxu0 %vm660_vm0, %v699_v17 }
  0x69   :  { %1009 = vmatprep.mubr.f32.mxu0 %v5855_v29  ;;  %3196 = vmatpush1.bf16.msra.mxu0 %v4561_v38 }
  0x6a   :  { %2738 = vmatmul.mubr.msk.f32.gmra.mrb[26].mxu1 %vm660_vm0, %v699_v17  ;;  %3206 = vmatprep.subr.bf16.mxu0 %v3173_v26 }
  0x6b   :  { %1098 = vmatprep.mubr.f32.mxu1 %v5855_v29  ;;  %3204 = vmatpush1.bf16.msra.mxu1 %v4566_v24 }
  0x6c   :  { %3214 = vmatprep.subr.bf16.mxu1 %v3181_v0  ;;  %2735 = vmatmul.mubr.msk.f32.gmra.mrb[28].mxu0 %vm660_vm0, %v700_v47 }
  0x6d   :  { %1015 = vmatprep.mubr.f32.mxu0 %v5855_v29 }
  0x6e   :  { %2739 = vmatmul.mubr.msk.f32.gmra.mrb[28].mxu1 %vm660_vm0, %v700_v47 }
  0x6f   :  { %1104 = vmatprep.mubr.f32.mxu1 %v5855_v29 }
  0x70   :  { %2736 = vmatmul.mubr.msk.f32.gmra.mrb[30].mxu0 %vm660_vm0, %v701_v7 }
  0x71   :  { %1491 = vmatprep.mubr.f32.mxu0 %v5855_v29 }
  0x72   :  { %2740 = vmatmul.mubr.msk.f32.gmra.mrb[30].mxu1 %vm660_vm0, %v701_v7 }
  0x73   :  { %1580 = vmatprep.mubr.f32.mxu1 %v5855_v29 }
  0xf7   :  { %v2885_v59 = vpop.f32.mrb[0].mxu0 }
  0xf8   :  { %v2886_v63 = vpop.f32.mrb[1].mxu0 }
  0xf9   :  { %v2929_v56 = vpop.f32.mrb[0].mxu1  ;;  %v2887_v41 = vadd.f32 %v2886_v63, %v2885_v59 }
  0xfa   :  { %v2930_v33 = vpop.f32.mrb[1].mxu1 }
  0xfb   :  { %v2931_v62 = vadd.f32 %v2930_v33, %v2929_v56  ;;  %v387_v0 = vadd.f32 %v2887_v41, %v2724_v40  ;;  %v2888_v38 = vpop.f32.mrb[2].mxu0 }
  0xfc   :  { %v2889_v24 = vpop.f32.mrb[3].mxu0 }
  0xfd   :  { %v472_v13 = vadd.f32 %v2931_v62, %v387_v0  ;;  %v2932_v32 = vpop.f32.mrb[2].mxu1  ;;  %v2890_v26 = vadd.f32 %v2889_v24, %v2888_v38 }
  0xfe   :  { %v2933_v17 = vpop.f32.mrb[3].mxu1 }
  0xff   :  { %v2934_v31 = vadd.f32 %v2933_v17, %v2932_v32  ;;  %v392_v47 = vadd.f32 %v2890_v26, %v2724_v40  ;;  %v2891_v7 = vpop.f32.mrb[4].mxu0 }
 0x100   :  { %v2892_v28 = vpop.f32.mrb[5].mxu0 }
 0x101   :  { %v2935_v51 = vpop.f32.mrb[4].mxu1  ;;  %v477_v60 = vadd.f32 %v2934_v31, %v392_v47  ;;  %v2893_v23 = vadd.f32 %v2892_v28, %v2891_v7 }
 0x102   :  { %v2936_v25 = vpop.f32.mrb[5].mxu1 }
 0x103   :  { %v2937_v9 = vadd.f32 %v2936_v25, %v2935_v51  ;;  %v397_v21 = vadd.f32 %v2893_v23, %v2724_v40 }
 0x105   :  { %v2894_v59 = vpop.f32.mrb[6].mxu0  ;;  %v482_v41 = vadd.f32 %v2937_v9, %v397_v21 }
 0x106   :  { %v2895_v63 = vpop.f32.mrb[7].mxu0 }
 0x107   :  { %v2938_v56 = vpop.f32.mrb[6].mxu1  ;;  %v2896_v33 = vadd.f32 %v2895_v63, %v2894_v59 }
 0x108   :  { %v2939_v62 = vpop.f32.mrb[7].mxu1 }
 0x109   :  { %v2940_v0 = vadd.f32 %v2939_v62, %v2938_v56  ;;  %v402_v14 = vadd.f32 %v2896_v33, %v2724_v40 }
 0x10b   :  { %v487_v38 = vadd.f32 %v2940_v0, %v402_v14 }
 0x117   :  { %v2973_v24 = vpop.f32.mrb[8].mxu0 }
 0x118   :  { %v2974_v32 = vpop.f32.mrb[9].mxu0 }
 0x119   :  { %v3017_v26 = vpop.f32.mrb[8].mxu1  ;;  %v2975_v17 = vadd.f32 %v2974_v32, %v2973_v24 }
 0x11a   :  { %v3018_v61 = vpop.f32.mrb[9].mxu1 }
 0x11b   :  { %v3019_v11 = vadd.f32 %v3018_v61, %v3017_v26  ;;  %v557_v31 = vadd.f32 %v2975_v17, %v472_v13  ;;  %v2976_v28 = vpop.f32.mrb[10].mxu0 }
 0x11c   :  { %v2977_v47 = vpop.f32.mrb[11].mxu0 }
 0x11d   :  { %v3020_v25 = vpop.f32.mrb[10].mxu1  ;;  %v642_v51 = vadd.f32 %v3019_v11, %v557_v31  ;;  %v2978_v23 = vadd.f32 %v2977_v47, %v2976_v28 }
 0x11e   :  { %v3021_v7 = vpop.f32.mrb[11].mxu1 }
 0x11f   :  { %v3022_v8 = vadd.f32 %v3021_v7, %v3020_v25  ;;  %661 = vst.msk [vmem:[#allocation2] sm:$0xff] %vm660_vm0, %v642_v51  ;;  %v562_v9 = vadd.f32 %v2978_v23, %v477_v60  ;;  %v2979_v21 = vpop.f32.mrb[12].mxu0  ;;  %2789 = vmatmul.mubr.msk.f32.vlgmr.msra.gmra.mrb[32].mxu0 %vm660_vm0, %v642_v51  ;;  %2793 = vmatmul.mubr.msk.f32.vlgmr.msra.gmra.mrb[32].mxu1 %vm660_vm0, %v642_v51 }
 0x120   :  { %3208 = vmatpush1.bf16.msra.mxu0 %v4603_v18  ;;  %3216 = vmatpush1.bf16.msra.mxu1 %v4605_v53  ;;  %v2980_v61 = vpop.f32.mrb[13].mxu0 }
 0x121   :  { %v3023_v14 = vpop.f32.mrb[12].mxu1  ;;  %v647_v40 = vadd.f32 %v3022_v8, %v562_v9  ;;  %v2981_v13 = vadd.f32 %v2980_v61, %v2979_v21  ;;  %1497 = vmatprep.mubr.f32.mxu0 %v5855_v29  ;;  %1586 = vmatprep.mubr.f32.mxu1 %v5855_v29 }
 0x122   :  { %v3024_v11 = vpop.f32.mrb[13].mxu1  ;;  %3210 = vmatprep.subr.bf16.mxu0 %v4624_v19  ;;  %3218 = vmatprep.subr.bf16.mxu1 %v4626_v20 }
 0x123   :  { %v3025_v59 = vadd.f32 %v3024_v11, %v3023_v14  ;;  %662 = vst.msk [vmem:[#allocation2 + $0x8] sm:$0xff] %vm660_vm0, %v647_v40  ;;  %v567_v60 = vadd.f32 %v2981_v13, %v482_v41  ;;  %v2982_v18 = vpop.f32.mrb[14].mxu0  ;;  %2790 = vmatmul.mubr.msk.f32.gmra.mrb[34].mxu0 %vm660_vm0, %v647_v40  ;;  %2794 = vmatmul.mubr.msk.f32.gmra.mrb[34].mxu1 %vm660_vm0, %v647_v40 }
 0x124   :  { %v2983_v8 = vpop.f32.mrb[15].mxu0  ;;  %1503 = vmatprep.mubr.f32.mxu0 %v5855_v29  ;;  %1592 = vmatprep.mubr.f32.mxu1 %v5855_v29 }
 0x125   :  { %v3026_v53 = vpop.f32.mrb[14].mxu1  ;;  %v652_v63 = vadd.f32 %v3025_v59, %v567_v60  ;;  %v2984_v56 = vadd.f32 %v2983_v8, %v2982_v18  ;;  %3212 = vmatpush1.bf16.msra.mxu0 %v4639_v46  ;;  %3220 = vmatpush1.bf16.msra.mxu1 %v4649_v27  ;;  %v703_v46 = vlaneseq }
 0x126   :  { %v3027_v33 = vpop.f32.mrb[15].mxu1 }
 0x127   :  { %v3028_v19 = vadd.f32 %v3027_v33, %v3026_v53  ;;  %663 = vst.msk [vmem:[#allocation2 + $0x10] sm:$0xff] %vm660_vm0, %v652_v63  ;;  %v572_v20 = vadd.f32 %v2984_v56, %v487_v38  ;;  %2791 = vmatmul.mubr.msk.f32.gmra.mrb[36].mxu0 %vm660_vm0, %v652_v63  ;;  %2795 = vmatmul.mubr.msk.f32.gmra.mrb[36].mxu1 %vm660_vm0, %v652_v63  ;;  %v4733_v27 = vshrl.u32 %v703_v46, 7  ;;  %v4740_v38 = vld [vmem:[%s5741_s6] sm:$0xff]  ;;  %v821_v28 = vpop.f32.mrb[16].mxu0  ;;  %s3645_s6 = smov [#allocation2]  }
 0x128   :  { %1509 = vmatprep.mubr.f32.mxu0 %v5855_v29  ;;  %1598 = vmatprep.mubr.f32.mxu1 %v5855_v29  ;;  %v823_v23 = vpop.f32.mrb[17].mxu0  ;;  %s2668_s18 = sshll.u32 %s3645_s6, 4  ;;  %s2669_s18 = int_to_ptr.vmem [resolvable:$true] %s2668_s18 }
 0x129   :  { %v657_v41 = vadd.f32 %v3028_v19, %v572_v20  ;;  %v705_v62 = vsub.s32 0, %v4733_v27  ;;  %v713_v0 = vsub.s32 2, %v4733_v27  ;;  %v709_v24 = vsub.s32 1, %v4733_v27  ;;  %v910_v47 = vpop.f32.mrb[16].mxu1  ;;  %s3550_s19 = scalar_lea.vmem %s2669_s18, 512  ;;  %p3555_p1 = scmp.lt.s32.totalorder %s2669_s18, %s2669_s18 }
 0x12a   :  { %v912_v7 = vpop.f32.mrb[17].mxu1  ;;  %p3551_p0 = scmp.ne.s32.totalorder %s2669_s18, %s3550_s19  ;;  %p3556_p2 = scmp.lt.s32.totalorder %s3550_s19, %s3550_s19 }
 0x12b   :  { %664 = vst.msk [vmem:[#allocation2 + $0x18] sm:$0xff] %vm660_vm0, %v657_v41  ;;  %2792 = vmatmul.mubr.msk.f32.gmra.mrb[38].mxu0 %vm660_vm0, %v657_v41  ;;  %2796 = vmatmul.mubr.msk.f32.gmra.mrb[38].mxu1 %vm660_vm0, %v657_v41  ;;  %v4745_v32 = vrot.slane %v4740_v38, %v705_v62  ;;  %v4748_v26 = vrot.slane %v4740_v38, %v713_v0  ;;  %v827_v11 = vpop.f32.mrb[18].mxu0 }
 0x12c   :  { %1669 = vmatprep.mubr.f32.mxu0 %v5855_v29  ;;  %1758 = vmatprep.mubr.f32.mxu1 %v5855_v29  ;;  %v4751_v17 = vrot.slane %v4740_v38, %v709_v24  ;;  %v829_v8 = vpop.f32.mrb[19].mxu0  ;;  %p3557_p3 = por %p3556_p2, %p3555_p1 }
 0x12d   :  { %v822_v25 = vadd.f32 %v821_v28, %v4745_v32  ;;  %v916_v59 = vpop.f32.mrb[18].mxu1  ;;  %v828_v60 = vadd.f32 %v827_v11, %v4745_v32 }
 0x12e   :  { %5856 = vst [vmem:[#allocation61_spill] sm:$0xff] %v4751_v17  ;;  %v824_v9 = vadd.f32 %v823_v23, %v4751_v17  ;;  %v917_v18 = vadd.f32 %v916_v59, %v4748_v26  ;;  %v918_v53 = vpop.f32.mrb[19].mxu1  ;;  %p3558_p4 = pnand %p3557_p3, %p3551_p0 }
 0x12f   :  { %2797 = vmatmul.mubr.msk.f32.vlgmr.msra.gmra.mrb[40].mxu0 %vm660_vm0, %v642_v51  ;;  %2801 = vmatmul.mubr.msk.f32.vlgmr.msra.gmra.mrb[40].mxu1 %vm660_vm0, %v642_v51  ;;  %v911_v51 = vadd.f32 %v910_v47, %v4748_v26  ;;  %v2741_v61 = vmul.f32 -1.442695, %v822_v25  ;;  %v2749_v33 = vmul.f32 -1.442695, %v828_v60  ;;  %v833_v46 = vpop.f32.mrb[20].mxu0 }
 0x130   :  { %1675 = vmatprep.mubr.f32.mxu0 %v5855_v29  ;;  %1764 = vmatprep.mubr.f32.mxu1 %v5855_v29  ;;  %v2751_v19 = vmul.f32 -1.442695, %v917_v18  ;;  %v834_v0 = vadd.f32 %v833_v46, %v4745_v32 }
 0x131   :  { %v2743_v14 = vmul.f32 -1.442695, %v911_v51  ;;  %3230 = vpow2.f32 %v2741_v61  ;;  %v922_v62 = vpop.f32.mrb[20].mxu1 }
 0x132   :  { %v923_v24 = vadd.f32 %v922_v62, %v4748_v26  ;;  %v924_v28 = vpop.f32.mrb[21].mxu1  ;;  %v2757_v51 = vmul.f32 -1.442695, %v834_v0 }
 0x133   :  { %2798 = vmatmul.mubr.msk.f32.gmra.mrb[42].mxu0 %vm660_vm0, %v647_v40  ;;  %2802 = vmatmul.mubr.msk.f32.gmra.mrb[42].mxu1 %vm660_vm0, %v647_v40  ;;  %v2742_v40 = vmul.f32 -1.442695, %v824_v9  ;;  %3232 = vpow2.f32 %v2743_v14 }
 0x134   :  { %1681 = vmatprep.mubr.f32.mxu0 %v5855_v29  ;;  %1770 = vmatprep.mubr.f32.mxu1 %v5855_v29  ;;  %v2759_v23 = vmul.f32 -1.442695, %v923_v24  ;;  %v729_v24 = vsub.s32 6, %v4733_v27 }
 0x135   :  { %3234 = vpow2.f32 %v2742_v40  ;;  %v928_v61 = vpop.f32.mrb[22].mxu1 }
 0x137   :  { %2799 = vmatmul.mubr.msk.f32.gmra.mrb[44].mxu0 %vm660_vm0, %v652_v63  ;;  %2803 = vmatmul.mubr.msk.f32.gmra.mrb[44].mxu1 %vm660_vm0, %v652_v63  ;;  %v830_v63 = vadd.f32 %v829_v8, %v4751_v17 }
 0x138   :  { %1687 = vmatprep.mubr.f32.mxu0 %v5855_v29  ;;  %1776 = vmatprep.mubr.f32.mxu1 %v5855_v29  ;;  %v717_v29 = vsub.s32 3, %v4733_v27 }
 0x139   :  { %v2750_v20 = vmul.f32 -1.442695, %v830_v63 }
 0x13a   :  { %v4754_v31 = vrot.slane %v4740_v38, %v717_v29  ;;  %v835_v29 = vpop.f32.mrb[21].mxu0 }
 0x13b   :  { %2800 = vmatmul.mubr.msk.f32.gmra.mrb[46].mxu0 %vm660_vm0, %v657_v41  ;;  %2804 = vmatmul.mubr.msk.f32.gmra.mrb[46].mxu1 %vm660_vm0, %v657_v41  ;;  %v836_v47 = vadd.f32 %v835_v29, %v4751_v17  ;;  %v3231_v11 = vpop.eup %3230 }
 0x13c   :  { %v913_v21 = vadd.f32 %v912_v7, %v4754_v31  ;;  %v919_v56 = vadd.f32 %v918_v53, %v4754_v31  ;;  %v925_v25 = vadd.f32 %v924_v28, %v4754_v31  ;;  %v1207_v60 = vadd.f32 1.0, %v3231_v11 }
 0x13d   :  { %v2758_v7 = vmul.f32 -1.442695, %v836_v47  ;;  %v3233_v59 = vpop.eup %3232  ;;  %v725_v47 = vsub.s32 5, %v4733_v27 }
 0x13e   :  { %v2744_v13 = vmul.f32 -1.442695, %v913_v21  ;;  %v2752_v41 = vmul.f32 -1.442695, %v919_v56  ;;  %v2760_v9 = vmul.f32 -1.442695, %v925_v25 }
 0x13f   :  { %v839_v21 = vpop.f32.mrb[22].mxu0  ;;  %v3235_v18 = vpop.eup %3234  ;;  %v1209_v8 = vadd.f32 1.0, %v3233_v59 }
 0x140   :  { %3236 = vpow2.f32 %v2744_v13  ;;  %v840_v14 = vadd.f32 %v839_v21, %v4745_v32  ;;  %v841_v40 = vpop.f32.mrb[23].mxu0  ;;  %v930_v13 = vpop.f32.mrb[23].mxu1  ;;  %v1208_v56 = vadd.f32 1.0, %v3235_v18 }
 0x141   :  { %3238 = vpow2.f32 %v2749_v33  ;;  %v999_v53 = vpop.f32.mrb[24].mxu0 }
 0x142   :  { %3240 = vpow2.f32 %v2751_v19  ;;  %v2765_v33 = vmul.f32 -1.442695, %v840_v14  ;;  %v721_v19 = vsub.s32 4, %v4733_v27 }
 0x143   :  { %3242 = vpow2.f32 %v2750_v20  ;;  %v1088_v20 = vpop.f32.mrb[24].mxu1 }
 0x144   :  { %3244 = vpow2.f32 %v2752_v41  ;;  %v1001_v41 = vpop.f32.mrb[25].mxu0  ;;  %v1090_v62 = vpop.f32.mrb[25].mxu1 }
 0x145   :  { %3246 = vpow2.f32 %v2757_v51  ;;  %v1005_v25 = vpop.f32.mrb[26].mxu0  ;;  %v1094_v21 = vpop.f32.mrb[26].mxu1 }
 0x146   :  { %3248 = vpow2.f32 %v2759_v23  ;;  %v1007_v14 = vpop.f32.mrb[27].mxu0  ;;  %v1096_v18 = vpop.f32.mrb[27].mxu1 }
 0x147   :  { %3250 = vpow2.f32 %v2758_v7  ;;  %v4773_v7 = vrot.slane %v4740_v38, %v721_v19 }
 0x148   :  { %3252 = vpow2.f32 %v2760_v9  ;;  %v733_v9 = vsub.s32 7, %v4733_v27  ;;  %v931_v27 = vadd.f32 %v930_v13, %v4754_v31 }
 0x149   :  { %3254 = vrcp.f32 %v1207_v60  ;;  %5857 = vst [vmem:[#allocation62_spill] sm:$0xff] %v4773_v7  ;;  %v929_v60 = vadd.f32 %v928_v61, %v4748_v26 }
 0x14a   :  { %v3237_v63 = vpop.eup %3236  ;;  %3256 = vrcp.f32 %v1209_v8 }
 0x14b   :  { %v1210_v46 = vadd.f32 1.0, %v3237_v63  ;;  %v3239_v0 = vpop.eup %3238  ;;  %3258 = vrcp.f32 %v1208_v56  ;;  %v842_v56 = vadd.f32 %v841_v40, %v4751_v17  ;;  %v4789_v40 = vpop.f32.mrb[28].mxu1  ;;  %v2767_v13 = vmul.f32 -1.442695, %v929_v60 }
 0x14c   :  { %v3241_v29 = vpop.eup %3240  ;;  %v1215_v28 = vadd.f32 1.0, %v3239_v0  ;;  %v4783_v0 = vrot.slane %v4740_v38, %v725_v47 }
 0x14d   :  { %3260 = vrcp.f32 %v1210_v46  ;;  %v3243_v51 = vpop.eup %3242  ;;  %v1217_v23 = vadd.f32 1.0, %v3241_v29  ;;  %v1011_v29 = vpop.f32.mrb[28].mxu0 }
 0x14e   :  { %3262 = vpow2.f32 %v2765_v33  ;;  %v3245_v11 = vpop.eup %3244  ;;  %v1216_v59 = vadd.f32 1.0, %v3243_v51  ;;  %v4779_v33 = vrot.slane %v4740_v38, %v729_v24  ;;  %5859 = vst [vmem:[#allocation64_spill] sm:$0xff] %v4783_v0  ;;  %v1000_v51 = vadd.f32 %v999_v53, %v4773_v7  ;;  %v4791_v24 = vpop.f32.mrb[29].mxu0 }
 0x14f   :  { %3264 = vrcp.f32 %v1215_v28  ;;  %v3247_v8 = vpop.eup %3246  ;;  %v1218_v63 = vadd.f32 1.0, %v3245_v11  ;;  %v4797_v39 = vpop.f32.mrb[30].mxu0 }
 0x150   :  { %3266 = vrcp.f32 %v1217_v23  ;;  %5858 = vst [vmem:[#allocation63_spill] sm:$0xff] %v4779_v33  ;;  %v3249_v19 = vpop.eup %3248  ;;  %v1223_v46 = vadd.f32 1.0, %v3247_v8  ;;  %v4787_v23 = vrot.slane %v4740_v38, %v733_v9  ;;  %v4793_v8 = vpop.f32.mrb[29].mxu1  ;;  %v2768_v38 = vmul.f32 -1.442695, %v931_v27 }
 0x151   :  { %3268 = vrcp.f32 %v1216_v59  ;;  %v3251_v28 = vpop.eup %3250  ;;  %v1225_v61 = vadd.f32 1.0, %v3249_v19  ;;  %v1089_v19 = vadd.f32 %v1088_v20, %v4779_v33  ;;  %v1002_v9 = vadd.f32 %v1001_v41, %v4783_v0  ;;  %v4799_v55 = vpop.f32.mrb[30].mxu1 }
 0x152   :  { %3270 = vrcp.f32 %v1218_v63  ;;  %5860 = vst [vmem:[#allocation65_spill] sm:$0xff] %v4787_v23  ;;  %v3253_v11 = vpop.eup %3252  ;;  %v1224_v59 = vadd.f32 1.0, %v3251_v28  ;;  %v2766_v63 = vmul.f32 -1.442695, %v842_v56  ;;  %v2745_v60 = vmul.f32 -1.442695, %v1000_v51 }
 0x153   :  { %3272 = vrcp.f32 %v1223_v46  ;;  %v3255_v47 = vpop.eup %3254  ;;  %v1226_v42 = vadd.f32 1.0, %v3253_v11  ;;  %v1091_v28 = vadd.f32 %v1090_v62, %v4787_v23  ;;  %v4802_v44 = vpop.f32.mrb[31].mxu0  ;;  %v1006_v27 = vadd.f32 %v1005_v25, %v4773_v7 }
 0x154   :  { %3274 = vrcp.f32 %v1225_v61  ;;  %v3257_v53 = vpop.eup %3256  ;;  %v4804_v61 = vpop.f32.mrb[31].mxu1  ;;  %v1095_v12 = vadd.f32 %v1094_v21, %v4779_v33  ;;  %v2746_v62 = vmul.f32 -1.442695, %v1002_v9  ;;  %v1008_v51 = vadd.f32 %v1007_v14, %v4783_v0 }
 0x155   :  { %3276 = vrcp.f32 %v1224_v59  ;;  %v3259_v46 = vpop.eup %3258  ;;  %v2747_v59 = vmul.f32 -1.442695, %v1089_v19 }
 0x156   :  { %3278 = vrcp.f32 %v1226_v42  ;;  %v2821_v20 = vpack.c.bf16 %v3259_v46, %v3255_v47  ;;  %v2748_v47 = vmul.f32 -1.442695, %v1091_v28  ;;  %v2755_v46 = vmul.f32 -1.442695, %v1095_v12 }
 0x157   :  { %v3261_v56 = vpop.eup %3260  ;;  %3280 = vpow2.f32 %v2767_v13  ;;  %v1097_v13 = vadd.f32 %v1096_v18, %v4787_v23  ;;  %v2754_v9 = vmul.f32 -1.442695, %v1008_v51 }
 0x158   :  { %v3263_v11 = vpop.eup %3262  ;;  %v2822_v41 = vpack.c.bf16 %v3261_v56, %v3257_v53  ;;  %3282 = vpow2.f32 %v2766_v63  ;;  %1399 = vst [vmem:[#allocation6] sm:$0xff] %v2821_v20  ;;  %v2753_v53 = vmul.f32 -1.442695, %v1006_v27  ;;  %v1012_v63 = vadd.f32 %v1011_v29, %v4773_v7 }
 0x159   :  { %v3265_v49 = vpop.eup %3264  ;;  %v1231_v42 = vadd.f32 1.0, %v3263_v11  ;;  %3284 = vpow2.f32 %v2768_v38 }
 0x15a   :  { %v3267_v1 = vpop.eup %3266  ;;  %1400 = vst [vmem:[#allocation6 + $0x8] sm:$0xff] %v2822_v41  ;;  %3286 = vpow2.f32 %v2745_v60  ;;  %v2756_v60 = vmul.f32 -1.442695, %v1097_v13  ;;  %v2761_v18 = vmul.f32 -1.442695, %v1012_v63 }
 0x15b   :  { %v3269_v25 = vpop.eup %3268  ;;  %3288 = vrcp.f32 %v1231_v42 }
 0x15c   :  { %v3271_v19 = vpop.eup %3270  ;;  %v2825_v21 = vpack.c.bf16 %v3269_v25, %v3265_v49  ;;  %3290 = vpow2.f32 %v2747_v59  ;;  %v1101_v49 = vadd.f32 %v4789_v40, %v4779_v33 }
 0x15d   :  { %v3273_v56 = vpop.eup %3272  ;;  %v2826_v38 = vpack.c.bf16 %v3271_v19, %v3267_v1  ;;  %3292 = vpow2.f32 %v2746_v62 }
 0x15e   :  { %v3275_v14 = vpop.eup %3274  ;;  %1403 = vst [vmem:[#allocation6 + $0x20] sm:$0xff] %v2825_v21  ;;  %3294 = vpow2.f32 %v2748_v47  ;;  %v2763_v51 = vmul.f32 -1.442695, %v1101_v49  ;;  %v1107_v49 = vadd.f32 %v4799_v55, %v4779_v33 }
 0x15f   :  { %v3277_v28 = vpop.eup %3276  ;;  %1404 = vst [vmem:[#allocation6 + $0x28] sm:$0xff] %v2826_v38  ;;  %3296 = vpow2.f32 %v2753_v53 }
 0x160   :  { %v3279_v20 = vpop.eup %3278  ;;  %v2829_v27 = vpack.c.bf16 %v3277_v28, %v3273_v56  ;;  %3298 = vpow2.f32 %v2755_v46  ;;  %v1014_v56 = vadd.f32 %v4791_v24, %v4783_v0 }
 0x161   :  { %v3281_v29 = vpop.eup %3280  ;;  %v2830_v12 = vpack.c.bf16 %v3279_v20, %v3275_v14  ;;  %3300 = vpow2.f32 %v2754_v9  ;;  %v1103_v14 = vadd.f32 %v4793_v8, %v4787_v23  ;;  %v1020_v8 = vadd.f32 %v4802_v44, %v4783_v0 }
 0x162   :  { %v3283_v1 = vpop.eup %3282  ;;  %1407 = vst [vmem:[#allocation6 + $0x40] sm:$0xff] %v2829_v27  ;;  %v1233_v11 = vadd.f32 1.0, %v3281_v29  ;;  %3302 = vpow2.f32 %v2756_v60 }
 0x163   :  { %v3285_v41 = vpop.eup %3284  ;;  %1408 = vst [vmem:[#allocation6 + $0x48] sm:$0xff] %v2830_v12  ;;  %v1232_v59 = vadd.f32 1.0, %v3283_v1  ;;  %3304 = vpow2.f32 %v2761_v18  ;;  %v1018_v18 = vadd.f32 %v4797_v39, %v4773_v7  ;;  %v2762_v12 = vmul.f32 -1.442695, %v1014_v56 }
 0x164   :  { %v3287_v42 = vpop.eup %3286  ;;  %3306 = vrcp.f32 %v1233_v11  ;;  %v1234_v62 = vadd.f32 1.0, %v3285_v41  ;;  %v2764_v11 = vmul.f32 -1.442695, %v1103_v14  ;;  %v1109_v39 = vadd.f32 %v4804_v61, %v4787_v23 }
 0x165   :  { %v3289_v47 = vpop.eup %3288  ;;  %3308 = vrcp.f32 %v1232_v59  ;;  %v1211_v13 = vadd.f32 1.0, %v3287_v42  ;;  %v2769_v59 = vmul.f32 -1.442695, %v1018_v18 }
 0x166   :  { %v3291_v25 = vpop.eup %3290  ;;  %3310 = vrcp.f32 %v1234_v62  ;;  %v2772_v44 = vmul.f32 -1.442695, %v1109_v39 }
 0x167   :  { %v3293_v40 = vpop.eup %3292  ;;  %3312 = vrcp.f32 %v1211_v13  ;;  %v1213_v53 = vadd.f32 1.0, %v3291_v25 }
 0x168   :  { %v3295_v63 = vpop.eup %3294  ;;  %v1212_v19 = vadd.f32 1.0, %v3293_v40  ;;  %3314 = vpow2.f32 %v2763_v51  ;;  %v2771_v51 = vmul.f32 -1.442695, %v1107_v49  ;;  %v2770_v40 = vmul.f32 -1.442695, %v1020_v8 }
 0x169   :  { %v3297_v21 = vpop.eup %3296  ;;  %3316 = vrcp.f32 %v1213_v53  ;;  %v1214_v46 = vadd.f32 1.0, %v3295_v63 }
 0x16a   :  { %v3299_v38 = vpop.eup %3298  ;;  %3318 = vrcp.f32 %v1212_v19  ;;  %v1219_v9 = vadd.f32 1.0, %v3297_v21 }
 0x16b   :  { %v3301_v60 = vpop.eup %3300  ;;  %3320 = vrcp.f32 %v1214_v46  ;;  %v1221_v28 = vadd.f32 1.0, %v3299_v38 }
 0x16c   :  { %v3303_v20 = vpop.eup %3302  ;;  %3322 = vrcp.f32 %v1219_v9  ;;  %v1220_v27 = vadd.f32 1.0, %v3301_v60 }
 0x16d   :  { %v3305_v29 = vpop.eup %3304  ;;  %3324 = vrcp.f32 %v1221_v28  ;;  %v1222_v24 = vadd.f32 1.0, %v3303_v20 }
 0x16e   :  { %v3307_v1 = vpop.eup %3306  ;;  %3326 = vrcp.f32 %v1220_v27  ;;  %v1227_v38 = vadd.f32 1.0, %v3305_v29 }
 0x16f   :  { %v3309_v41 = vpop.eup %3308  ;;  %3328 = vrcp.f32 %v1222_v24 }
 0x170   :  { %v3311_v42 = vpop.eup %3310  ;;  %v2833_v62 = vpack.c.bf16 %v3309_v41, %v3289_v47  ;;  %3330 = vpow2.f32 %v2762_v12 }
 0x171   :  { %v3313_v55 = vpop.eup %3312  ;;  %v2834_v13 = vpack.c.bf16 %v3311_v42, %v3307_v1  ;;  %3332 = vpow2.f32 %v2764_v11 }
 0x172   :  { %v3315_v25 = vpop.eup %3314  ;;  %1411 = vst [vmem:[#allocation6 + $0x60] sm:$0xff] %v2833_v62  ;;  %3334 = vpow2.f32 %v2769_v59 }
 0x173   :  { %v3317_v53 = vpop.eup %3316  ;;  %1412 = vst [vmem:[#allocation6 + $0x68] sm:$0xff] %v2834_v13  ;;  %3336 = vpow2.f32 %v2771_v51  ;;  %v1229_v60 = vadd.f32 1.0, %v3315_v25 }
 0x174   :  { %v3319_v63 = vpop.eup %3318  ;;  %3338 = vpow2.f32 %v2770_v40 }
 0x175   :  { %v3321_v19 = vpop.eup %3320  ;;  %v2823_v21 = vpack.c.bf16 %v3319_v63, %v3313_v55  ;;  %3340 = vpow2.f32 %v2772_v44 }
 0x176   :  { %v3323_v46 = vpop.eup %3322  ;;  %v2824_v61 = vpack.c.bf16 %v3321_v19, %v3317_v53  ;;  %3342 = vrcp.f32 %v1227_v38 }
 0x177   :  { %v3325_v47 = vpop.eup %3324  ;;  %1401 = vst [vmem:[#allocation6 + $0x10] sm:$0xff] %v2823_v21  ;;  %3344 = vrcp.f32 %v1229_v60 }
 0x178   :  { %v3327_v56 = vpop.eup %3326  ;;  %1402 = vst [vmem:[#allocation6 + $0x18] sm:$0xff] %v2824_v61 }
 0x179   :  { %v3329_v9 = vpop.eup %3328  ;;  %v2827_v14 = vpack.c.bf16 %v3327_v56, %v3323_v46 }
 0x17a   :  { %v2828_v28 = vpack.c.bf16 %v3329_v9, %v3325_v47  ;;  %v3331_v18 = vpop.eup %3330 }
 0x17b   :  { %1405 = vst [vmem:[#allocation6 + $0x30] sm:$0xff] %v2827_v14  ;;  %v3333_v20 = vpop.eup %3332  ;;  %v1228_v27 = vadd.f32 1.0, %v3331_v18 }
 0x17c   :  { %1406 = vst [vmem:[#allocation6 + $0x38] sm:$0xff] %v2828_v28  ;;  %v3335_v49 = vpop.eup %3334  ;;  %v1230_v24 = vadd.f32 1.0, %v3333_v20 }
 0x17d   :  { %v3337_v12 = vpop.eup %3336  ;;  %3346 = vrcp.f32 %v1228_v27  ;;  %v1235_v1 = vadd.f32 1.0, %v3335_v49 }
 0x17e   :  { %3348 = vrcp.f32 %v1230_v24  ;;  %v1237_v11 = vadd.f32 1.0, %v3337_v12  ;;  %v3339_v8 = vpop.eup %3338 }
 0x17f   :  { %v3341_v29 = vpop.eup %3340  ;;  %3350 = vrcp.f32 %v1235_v1  ;;  %v1236_v41 = vadd.f32 1.0, %v3339_v8 }
 0x180   :  { %3352 = vrcp.f32 %v1237_v11  ;;  %v1238_v59 = vadd.f32 1.0, %v3341_v29  ;;  %v3343_v39 = vpop.eup %3342 }
 0x181   :  { %3354 = vrcp.f32 %v1236_v41  ;;  %v3345_v42 = vpop.eup %3344 }
 0x182   :  { %3356 = vrcp.f32 %v1238_v59 }
 0x187   :  { %v3347_v62 = vpop.eup %3346 }
 0x188   :  { %v3349_v51 = vpop.eup %3348  ;;  %v2831_v55 = vpack.c.bf16 %v3347_v62, %v3343_v39 }
 0x189   :  { %v2832_v13 = vpack.c.bf16 %v3349_v51, %v3345_v42  ;;  %v3351_v25 = vpop.eup %3350 }
 0x18a   :  { %1409 = vst [vmem:[#allocation6 + $0x50] sm:$0xff] %v2831_v55  ;;  %v3353_v40 = vpop.eup %3352 }
 0x18b   :  { %1410 = vst [vmem:[#allocation6 + $0x58] sm:$0xff] %v2832_v13  ;;  %v3355_v53 = vpop.eup %3354 }
 0x18c   :  { %v3357_v44 = vpop.eup %3356  ;;  %v2835_v63 = vpack.c.bf16 %v3355_v53, %v3351_v25 }
 0x18d   :  { %v2836_v19 = vpack.c.bf16 %v3357_v44, %v3353_v40 }
 0x18e   :  { %1413 = vst [vmem:[#allocation6 + $0x70] sm:$0xff] %v2835_v63 }
 0x18f   :  { %1414 = vst [vmem:[#allocation6 + $0x78] sm:$0xff] %v2836_v19 }
 0x1f2   :  { %v1493_v21 = vpop.f32.mrb[32].mxu0  ;;  %v1582_v46 = vpop.f32.mrb[32].mxu1 }
 0x1f3   :  { %v4826_v61 = vadd.f32 %v1493_v21, %v4745_v32  ;;  %v4829_v47 = vadd.f32 %v1582_v46, %v4748_v26  ;;  %v1495_v56 = vpop.f32.mrb[33].mxu0  ;;  %v1584_v38 = vpop.f32.mrb[33].mxu1 }
 0x1f4   :  { %v4832_v9 = vadd.f32 %v1495_v56, %v4751_v17  ;;  %v4836_v60 = vadd.f32 %v1584_v38, %v4754_v31 }
 0x1f5   :  { %v1783_v14 = vand.u32 2147483647, %v4826_v61  ;;  %v1785_v28 = vand.u32 2147483647, %v4829_v47  ;;  %v2183_v38 = vmax.f32 %v4826_v61, 0.0  ;;  %vm1975_vm1 = vcmp.ge.f32.partialorder %v4826_v61, 0.0 }
 0x1f6   :  { %v1499_v18 = vpop.f32.mrb[34].mxu0  ;;  %v1588_v20 = vpop.f32.mrb[34].mxu1  ;;  %v1784_v49 = vand.u32 2147483647, %v4832_v9  ;;  %v1786_v29 = vand.u32 2147483647, %v4836_v60 }
 0x1f7   :  { %v1815_v27 = vsub.f32 0.0, %v1783_v14  ;;  %v1501_v24 = vpop.f32.mrb[35].mxu0  ;;  %v1590_v12 = vpop.f32.mrb[35].mxu1  ;;  %v1817_v1 = vsub.f32 0.0, %v1785_v28  ;;  %v4846_v51 = vadd.f32 %v1499_v18, %v4745_v32  ;;  %v4853_v25 = vadd.f32 %v1588_v20, %v4748_v26 }
 0x1f8   :  { %v1816_v8 = vsub.f32 0.0, %v1784_v49  ;;  %v1818_v62 = vsub.f32 0.0, %v1786_v29  ;;  %v4867_v28 = vadd.f32 %v1501_v24, %v4751_v17  ;;  %v2215_v18 = vmul.f32 %v4826_v61, %v4028_v10 }
 0x1f9   :  { %v1847_v11 = vmul.f32 1.442695, %v1815_v27  ;;  %v1851_v41 = vmul.f32 1.442695, %v1817_v1  ;;  %v1791_v53 = vand.u32 2147483647, %v4846_v51  ;;  %v2217_v27 = vmul.f32 %v4829_v47, %v4050_v16 }
 0x1fa   :  { %v4841_v59 = vpop.f32.mrb[36].mxu0  ;;  %v4843_v39 = vpop.f32.mrb[36].mxu1  ;;  %v1849_v42 = vmul.f32 1.442695, %v1816_v8  ;;  %v1853_v40 = vmul.f32 1.442695, %v1818_v62  ;;  %v2218_v10 = vmul.f32 %v4836_v60, %v3979_v57  ;;  %v2223_v16 = vmul.f32 %v4846_v51, %v4144_v3 }
 0x1fb   :  { %3358 = vpow2.f32 %v1847_v11  ;;  %v4848_v55 = vpop.f32.mrb[37].mxu0  ;;  %v4850_v13 = vpop.f32.mrb[37].mxu1  ;;  %v1793_v44 = vand.u32 2147483647, %v4853_v25  ;;  %v1823_v21 = vsub.f32 0.0, %v1791_v53  ;;  %v2185_v20 = vmax.f32 %v4829_v47, 0.0 }
 0x1fc   :  { %3360 = vpow2.f32 %v1851_v41  ;;  %v2184_v1 = vmax.f32 %v4832_v9, 0.0  ;;  %v2216_v11 = vmul.f32 %v4832_v9, %v3943_v43  ;;  %v2186_v8 = vmax.f32 %v4836_v60, 0.0 }
 0x1fd   :  { %3362 = vpow2.f32 %v1849_v42  ;;  %v1825_v14 = vsub.f32 0.0, %v1793_v44  ;;  %v1863_v49 = vmul.f32 1.442695, %v1823_v21  ;;  %v2191_v42 = vmax.f32 %v4846_v51, 0.0 }
 0x1fe   :  { %v4857_v63 = vpop.f32.mrb[38].mxu0  ;;  %v4859_v19 = vpop.f32.mrb[38].mxu1  ;;  %3364 = vpow2.f32 %v1853_v40  ;;  %v2193_v43 = vmax.f32 %v4853_v25, 0.0  ;;  %v2225_v53 = vmul.f32 %v4853_v25, %v4156_v6  ;;  %v1792_v44 = vand.u32 2147483647, %v4867_v28 }
 0x1ff   :  { %v4861_v46 = vpop.f32.mrb[39].mxu0  ;;  %v4863_v56 = vpop.f32.mrb[39].mxu1  ;;  %v1867_v29 = vmul.f32 1.442695, %v1825_v14  ;;  %3366 = vpow2.f32 %v1863_v49  ;;  %v4900_v49 = vsub.f32 %v2183_v38, %v2215_v18  ;;  %v4902_v3 = vsub.f32 %v2185_v20, %v2217_v27 }
 0x200   :  { %5861 = vst [vmem:[#allocation66_spill] sm:$0xff] %v4861_v46  ;;  %5862 = vst [vmem:[#allocation67_spill] sm:$0xff] %v4863_v56  ;;  %vm1977_vm2 = vcmp.ge.f32.partialorder %v4829_v47, 0.0  ;;  %v4916_v0 = vsub.f32 %v2186_v8, %v2218_v10  ;;  %v4918_v38 = vsub.f32 %v2191_v42, %v2223_v16  ;;  %v4923_v20 = vsub.f32 %v2193_v43, %v2225_v53 }
 0x201   :  { %3368 = vpow2.f32 %v1867_v29  ;;  %v1824_v27 = vsub.f32 0.0, %v1792_v44  ;;  %vm1976_vm3 = vcmp.ge.f32.partialorder %v4832_v9, 0.0  ;;  %v4936_v8 = vmul.f32 %v4867_v28, %v4141_v2 }
 0x202   :  { %v4878_v41 = vpop.f32.mrb[40].mxu0  ;;  %v4880_v24 = vpop.f32.mrb[40].mxu1  ;;  %vm1978_vm4 = vcmp.ge.f32.partialorder %v4836_v60, 0.0  ;;  %v4943_v16 = vadd.f32 %v4841_v59, %v4745_v32  ;;  %vm1983_vm9 = vcmp.ge.f32.partialorder %v4846_v51, 0.0  ;;  %vm1985_vm12 = vcmp.ge.f32.partialorder %v4853_v25, 0.0 }
 0x203   :  { %5863 = vst [vmem:[#allocation68_spill] sm:$0xff] %v4878_v41  ;;  %5864 = vst [vmem:[#allocation69_spill] sm:$0xff] %v4880_v24  ;;  %v4887_v62 = vpop.f32.mrb[41].mxu0  ;;  %v4889_v40 = vpop.f32.mrb[41].mxu1  ;;  %vm1984_vm13 = vcmp.ge.f32.partialorder %v4867_v28, 0.0 }
 0x204   :  { %5865 = vst [vmem:[#allocation70_spill] sm:$0xff] %v4887_v62  ;;  %5866 = vst [vmem:[#allocation71_spill] sm:$0xff] %v4889_v40  ;;  %v4905_v40 = vadd.f32 %v1590_v12, %v4754_v31  ;;  %v4914_v62 = vsub.f32 %v2184_v1, %v2216_v11 }
 0x205   :  { %v4895_v21 = vpop.eup %3358 }
 0x206   :  { %v4897_v57 = vpop.eup %3360  ;;  %v1911_v14 = vadd.f32 1.0, %v4895_v21  ;;  %v4907_v29 = vpop.f32.mrb[42].mxu0  ;;  %v2282_v1 = vmul.f32 -0.5, %v4895_v21  ;;  %v1794_v42 = vand.u32 2147483647, %v4905_v40  ;;  %vm1986_vm14 = vcmp.ge.f32.partialorder %v4905_v40, 0.0 }
 0x207   :  { %5867 = vst [vmem:[#allocation72_spill] sm:$0xff] %v4907_v29  ;;  %v4909_v23 = vpop.eup %3362  ;;  %v1913_v6 = vadd.f32 1.0, %v4897_v57  ;;  %v4920_v18 = vpop.f32.mrb[42].mxu1  ;;  %v2300_v10 = vmul.f32 -0.5, %v4897_v57  ;;  %v2285_v59 = vand.u32 2147483647, %v4895_v21 }
 0x208   :  { %5868 = vst [vmem:[#allocation73_spill] sm:$0xff] %v4920_v18  ;;  %3370 = vrcp.f32 %v1911_v14  ;;  %v1912_v12 = vadd.f32 1.0, %v4909_v23  ;;  %v4925_v29 = vpop.f32.mrb[43].mxu0  ;;  %v4927_v24 = vpop.f32.mrb[43].mxu1  ;;  %v2291_v44 = vmul.f32 -0.5, %v4909_v23  ;;  %v2008_v47 = vsel %vm1976_vm3, 1.0, %v4909_v23 }
 0x209   :  { %5869 = vst [vmem:[#allocation74_spill] sm:$0xff] %v4925_v29  ;;  %5870 = vst [vmem:[#allocation75_spill] sm:$0xff] %v4927_v24  ;;  %v4929_v33 = vpop.eup %3364  ;;  %3372 = vlog2.f32 %v1911_v14  ;;  %v4953_v14 = vadd.f32 %v4843_v39, %v4748_v26  ;;  %v1865_v29 = vmul.f32 1.442695, %v1824_v27  ;;  %v2303_v18 = vand.u32 2147483647, %v4897_v57 }
 0x20a   :  { %3374 = vrcp.f32 %v1913_v6  ;;  %v4945_v43 = vpop.f32.mrb[44].mxu0  ;;  %v4947_v53 = vpop.f32.mrb[44].mxu1  ;;  %v1914_v2 = vadd.f32 1.0, %v4929_v33  ;;  %v2309_v39 = vmul.f32 -0.5, %v4929_v33  ;;  %v1826_v27 = vsub.f32 0.0, %v1794_v42 }
 0x20b   :  { %5871 = vst [vmem:[#allocation76_spill] sm:$0xff] %v4945_v43  ;;  %5872 = vst [vmem:[#allocation77_spill] sm:$0xff] %v4947_v53  ;;  %3376 = vlog2.f32 %v1913_v6  ;;  %v4955_v11 = vpop.f32.mrb[45].mxu0  ;;  %v4957_v24 = vpop.f32.mrb[45].mxu1  ;;  %v4962_v53 = vadd.f32 %v4848_v55, %v4751_v17  ;;  %v2283_v43 = vadd.f32 1.0, %v2282_v1  ;;  %v2292_v55 = vadd.f32 1.0, %v2291_v44 }
 0x20c   :  { %5873 = vst [vmem:[#allocation78_spill] sm:$0xff] %v4955_v11  ;;  %5874 = vst [vmem:[#allocation79_spill] sm:$0xff] %v4957_v24  ;;  %3378 = vrcp.f32 %v1912_v12  ;;  %v4964_v6 = vpop.eup %3366  ;;  %v2301_v11 = vadd.f32 1.0, %v2300_v10  ;;  %v2294_v7 = vand.u32 2147483647, %v4909_v23  ;;  %v2009_v10 = vsel %vm1977_vm2, 1.0, %v4897_v57 }
 0x20d   :  { %3380 = vlog2.f32 %v1912_v12  ;;  %v4968_v36 = vpop.eup %3368  ;;  %v4971_v24 = vadd.f32 1.0, %v4964_v6  ;;  %v1799_v1 = vand.u32 2147483647, %v4943_v16  ;;  %v2007_v12 = vsel %vm1975_vm1, 1.0, %v4895_v21 }
 0x20e   :  { %3382 = vrcp.f32 %v1914_v2  ;;  %v4973_v41 = vpop.f32.mrb[46].mxu0  ;;  %vm4980_vm5 = vcmp.lt.f32.partialorder %v2285_v59, 0.0004427343  ;;  %v4988_v42 = vadd.f32 1.0, %v4968_v36  ;;  %vm4990_vm6 = vcmp.lt.f32.partialorder %v2303_v18, 0.0004427343 }
 0x20f   :  { %5875 = vst [vmem:[#allocation80_spill] sm:$0xff] %v4973_v41  ;;  %3384 = vlog2.f32 %v1914_v2  ;;  %v2310_v2 = vadd.f32 1.0, %v2309_v39  ;;  %v2312_v41 = vand.u32 2147483647, %v4929_v33  ;;  %v2284_v59 = vmul.f32 %v4895_v21, %v2283_v43  ;;  %v5010_v21 = vpop.f32.mrb[46].mxu1  ;;  %v5027_v45 = vpop.f32.mrb[47].mxu0 }
 0x210   :  { %3386 = vlog2.f32 %v4971_v24  ;;  %v2302_v56 = vmul.f32 %v4897_v57, %v2301_v11  ;;  %v1869_v22 = vmul.f32 1.442695, %v1826_v27  ;;  %v2293_v18 = vmul.f32 %v4909_v23, %v2292_v55  ;;  %5882 = vst [vmem:[#allocation81_spill] sm:$0xff] %v5010_v21 }
 0x211   :  { %vm5002_vm7 = vcmp.lt.f32.partialorder %v2294_v7, 0.0004427343  ;;  %v2010_v39 = vsel %vm1978_vm4, 1.0, %v4929_v33  ;;  %3388 = vlog2.f32 %v4988_v42  ;;  %v2354_v9 = vmul.f32 -0.5, %v4964_v6 }
 0x212   :  { %v3371_v61 = vpop.eup %3370  ;;  %3390 = vpow2.f32 %v1865_v29  ;;  %v1831_v43 = vsub.f32 0.0, %v1799_v1  ;;  %v2311_v7 = vmul.f32 %v4929_v33, %v2310_v2  ;;  %vm5014_vm8 = vcmp.lt.f32.partialorder %v2312_v41, 0.0004427343 }
 0x213   :  { %v3373_v46 = vpop.eup %3372  ;;  %v2039_v23 = vmul.f32 %v3371_v61, %v2007_v12  ;;  %3392 = vpow2.f32 %v1869_v22  ;;  %v1801_v33 = vand.u32 2147483647, %v4953_v14  ;;  %v2355_v61 = vadd.f32 1.0, %v2354_v9 }
 0x214   :  { %v3375_v57 = vpop.eup %3374  ;;  %v2281_v11 = vmul.f32 0.6931472, %v3373_v46  ;;  %v2372_v46 = vmul.f32 -0.5, %v4968_v36  ;;  %v1879_v37 = vmul.f32 1.442695, %v1831_v43  ;;  %vm1991_vm3 = vcmp.ge.f32.partialorder %v4943_v16, 0.0 }
 0x215   :  { %v3377_v27 = vpop.eup %3376  ;;  %v2041_v1 = vmul.f32 %v3375_v57, %v2009_v10  ;;  %v2357_v43 = vand.u32 2147483647, %v4964_v6  ;;  %v2356_v17 = vmul.f32 %v4964_v6, %v2355_v61  ;;  %vm1993_vm4 = vcmp.ge.f32.partialorder %v4953_v14, 0.0 }
 0x216   :  { %v3379_v60 = vpop.eup %3378  ;;  %v2287_v54 = vsel %vm4980_vm5, %v2284_v59, %v2281_v11  ;;  %v2299_v21 = vmul.f32 0.6931472, %v3377_v27  ;;  %3394 = vpow2.f32 %v1879_v37  ;;  %v2373_v10 = vadd.f32 1.0, %v2372_v46 }
 0x217   :  { %v3381_v15 = vpop.eup %3380  ;;  %v2567_v29 = vadd.f32 %v2287_v54, %v4900_v49  ;;  %v2040_v12 = vmul.f32 %v3379_v60, %v2008_v47  ;;  %v1833_v47 = vsub.f32 0.0, %v1801_v33  ;;  %3396 = vrcp.f32 %v4971_v24 }
 0x218   :  { %v3383_v41 = vpop.eup %3382  ;;  %v2305_v2 = vsel %vm4990_vm6, %v2302_v56, %v2299_v21  ;;  %v2290_v22 = vmul.f32 0.6931472, %v3381_v15  ;;  %v2375_v56 = vand.u32 2147483647, %v4968_v36  ;;  %vm2358_vm10 = vcmp.lt.f32.partialorder %v2357_v43, 0.0004427343 }
 0x219   :  { %v3385_v4 = vpop.eup %3384  ;;  %v2569_v59 = vadd.f32 %v2305_v2, %v4902_v3  ;;  %v2837_v11 = vpack.c.bf16 %v2040_v12, %v2039_v23  ;;  %v2042_v27 = vmul.f32 %v3383_v41, %v2010_v39  ;;  %3398 = vrcp.f32 %v4988_v42 }
 0x21a   :  { %v2296_v54 = vsel %vm5002_vm7, %v2293_v18, %v2290_v22  ;;  %v2308_v49 = vmul.f32 0.6931472, %v3385_v4  ;;  %v3387_v44 = vpop.eup %3386  ;;  %v1883_v18 = vmul.f32 1.442695, %v1833_v47  ;;  %v2194_v24 = vmax.f32 %v4905_v40, 0.0 }
 0x21b   :  { %2167 = vst [vmem:[#allocation4] sm:$0xff] %v2837_v11  ;;  %v5032_v15 = vadd.f32 %v2296_v54, %v4914_v62  ;;  %v2838_v37 = vpack.c.bf16 %v2042_v27, %v2041_v1  ;;  %v2353_v39 = vmul.f32 0.6931472, %v3387_v44  ;;  %v3389_v21 = vpop.eup %3388  ;;  %v5045_v62 = vpop.f32.mrb[47].mxu1  ;;  %v2374_v55 = vmul.f32 %v4968_v36, %v2373_v10 }
 0x21c   :  { %v2314_v3 = vsel %vm5014_vm8, %v2311_v7, %v2308_v49  ;;  %v3391_v9 = vpop.eup %3390  ;;  %v2371_v7 = vmul.f32 0.6931472, %v3389_v21  ;;  %3400 = vpow2.f32 %v1883_v18  ;;  %vm2376_vm11 = vcmp.lt.f32.partialorder %v2375_v56, 0.0004427343 }
 0x21d   :  { %2168 = vst [vmem:[#allocation4 + $0x8] sm:$0xff] %v2838_v37  ;;  %v5040_v57 = vadd.f32 %v2314_v3, %v4916_v0  ;;  %v2359_v23 = vsel %vm2358_vm10, %v2356_v17, %v2353_v39  ;;  %v5048_v60 = vpop.eup %3392  ;;  %v1920_v46 = vadd.f32 1.0, %v3391_v9  ;;  %v2226_v1 = vmul.f32 %v4905_v40, %v4153_v5 }
 0x21e   :  { %v2575_v0 = vadd.f32 %v2359_v23, %v4918_v38  ;;  %v2377_v42 = vsel %vm2376_vm11, %v2374_v55, %v2371_v7  ;;  %v2363_v12 = vmul.f32 -0.5, %v3391_v9  ;;  %v1922_v33 = vadd.f32 1.0, %v5048_v60 }
 0x21f   :  { %v2199_v41 = vmax.f32 %v4943_v16, 0.0  ;;  %v2599_v2 = vmul.f32 %v2567_v29, %v3962_v50  ;;  %v2577_v61 = vadd.f32 %v2377_v42, %v4923_v20  ;;  %3402 = vrcp.f32 %v1920_v46 }
 0x220   :  { %v2607_v22 = vmul.f32 %v2575_v0, %v4085_v30  ;;  %v5058_v4 = vpop.eup %3394  ;;  %3404 = vlog2.f32 %v1920_v46  ;;  %v2364_v38 = vadd.f32 1.0, %v2363_v12  ;;  %v2231_v5 = vmul.f32 %v4943_v16, %v4196_v35 }
 0x221   :  { %v1800_v11 = vand.u32 2147483647, %v4962_v53  ;;  %v2601_v27 = vmul.f32 %v2569_v59, %v3981_v58  ;;  %v2609_v50 = vmul.f32 %v2577_v61, %v4111_v48  ;;  %3406 = vrcp.f32 %v1922_v33  ;;  %v3397_v29 = vpop.eup %3396 }
 0x222   :  { %v5064_v43 = vadd.f32 %v2607_v22, %v2599_v2  ;;  %v2365_v30 = vmul.f32 %v3391_v9, %v2364_v38  ;;  %3408 = vlog2.f32 %v1922_v33  ;;  %v5069_v20 = vadd.f32 1.0, %v5058_v4 }
 0x223   :  { %v5071_v54 = vadd.f32 %v2609_v50, %v2601_v27  ;;  %v5885_v58 = vmax.f32 %v4867_v28, 0.0  ;;  %v2381_v59 = vmul.f32 -0.5, %v5048_v60  ;;  %v2015_v48 = vsel %vm1983_vm9, 1.0, %v4964_v6  ;;  %v3399_v10 = vpop.eup %3398 }
 0x224   :  { %v2258_v25 = vsub.f32 %v2194_v24, %v2226_v1  ;;  %v1832_v49 = vsub.f32 0.0, %v1800_v11  ;;  %v2017_v47 = vsel %vm1985_vm12, 1.0, %v4968_v36  ;;  %v2366_v44 = vand.u32 2147483647, %v3391_v9 }
 0x225   :  { %v2256_v35 = vsub.f32 %v5885_v58, %v4936_v8  ;;  %v5083_v37 = vsub.f32 %v2199_v41, %v2231_v5  ;;  %3410 = vlog2.f32 %v5069_v20  ;;  %v2384_v8 = vand.u32 2147483647, %v5048_v60 }
 0x226   :  { %v5086_v56 = vpop.eup %3400  ;;  %v2201_v3 = vmax.f32 %v4953_v14, 0.0  ;;  %v1881_v51 = vmul.f32 1.442695, %v1832_v49  ;;  %v5092_v6 = vadd.f32 %v4850_v13, %v4754_v31  ;;  %v2047_v39 = vmul.f32 %v3397_v29, %v2015_v48  ;;  %v5890_v29 = vld [vmem:[#allocation12_spill] sm:$0xff]  ;;  %v5893_v49 = vld [vmem:[#allocation13_spill] sm:$0xff] }
 0x227   :  { %v2382_v17 = vadd.f32 1.0, %v2381_v59  ;;  %v5095_v36 = vadd.f32 1.0, %v5086_v56  ;;  %v2233_v18 = vmul.f32 %v4953_v14, %v4214_v52  ;;  %v2600_v21 = vmul.f32 %v5032_v15, %v3927_v34 }
 0x228   :  { %v2426_v24 = vmul.f32 -0.5, %v5058_v4  ;;  %3412 = vpow2.f32 %v1881_v51  ;;  %v1802_v23 = vand.u32 2147483647, %v5092_v6  ;;  %v2049_v55 = vmul.f32 %v3399_v10, %v2017_v47 }
 0x229   :  { %v3403_v7 = vpop.eup %3402  ;;  %v2016_v13 = vsel %vm1984_vm13, 1.0, %v3391_v9  ;;  %vm5105_vm15 = vcmp.lt.f32.partialorder %v2366_v44, 0.0004427343  ;;  %v2018_v52 = vsel %vm1986_vm14, 1.0, %v5048_v60  ;;  %vm5112_vm0 = vcmp.lt.f32.partialorder %v2384_v8, 0.0004427343 }
 0x22a   :  { %v3405_v46 = vpop.eup %3404  ;;  %v2048_v34 = vmul.f32 %v3403_v7, %v2016_v13  ;;  %3414 = vlog2.f32 %v5095_v36  ;;  %v1834_v1 = vsub.f32 0.0, %v1802_v23  ;;  %v2383_v9 = vmul.f32 %v5048_v60, %v2382_v17  ;;  %v5895_v13 = vld [vmem:[#allocation16_spill] sm:$0xff] }
 0x22b   :  { %v3407_v42 = vpop.eup %3406  ;;  %v2362_v28 = vmul.f32 0.6931472, %v3405_v46  ;;  %v2429_v12 = vand.u32 2147483647, %v5058_v4  ;;  %v5121_v33 = vadd.f32 %v4857_v63, %v4745_v32  ;;  %v2427_v22 = vadd.f32 1.0, %v2426_v24 }
 0x22c   :  { %v3409_v40 = vpop.eup %3408  ;;  %v2841_v41 = vpack.c.bf16 %v2048_v34, %v2047_v39  ;;  %v2050_v2 = vmul.f32 %v3407_v42, %v2018_v52  ;;  %v1885_v61 = vmul.f32 1.442695, %v1834_v1  ;;  %v2444_v11 = vmul.f32 -0.5, %v5086_v56  ;;  %v5894_v39 = vld [vmem:[#allocation14_spill] sm:$0xff]  ;;  %v5896_v1 = vld [vmem:[#allocation61_spill] sm:$0xff] }
 0x22d   :  { %v2368_v38 = vsel %vm5105_vm15, %v2365_v30, %v2362_v28  ;;  %v2380_v5 = vmul.f32 0.6931472, %v3409_v40  ;;  %v1807_v27 = vand.u32 2147483647, %v5121_v33  ;;  %v5129_v32 = vadd.f32 %v4859_v19, %v4748_v26  ;;  %v5897_v42 = vld [vmem:[#allocation66_spill] sm:$0xff] }
 0x22e   :  { %2171 = vst [vmem:[#allocation4 + $0x20] sm:$0xff] %v2841_v41  ;;  %v2576_v60 = vadd.f32 %v2368_v38, %v2256_v35  ;;  %v2842_v50 = vpack.c.bf16 %v2050_v2, %v2049_v55  ;;  %3416 = vpow2.f32 %v1885_v61  ;;  %v2602_v58 = vmul.f32 %v5040_v57, %v5890_v29  ;;  %v5900_v61 = vld [vmem:[#allocation18_spill] sm:$0xff] }
 0x22f   :  { %v3411_v63 = vpop.eup %3410  ;;  %v2386_v30 = vsel %vm5112_vm0, %v2383_v9, %v2380_v5  ;;  %vm5135_vm1 = vcmp.lt.f32.partialorder %v2429_v12, 0.0004427343  ;;  %v1839_v48 = vsub.f32 0.0, %v1807_v27  ;;  %v2428_v26 = vmul.f32 %v5058_v4, %v2427_v22 }
 0x230   :  { %v2608_v35 = vmul.f32 %v2576_v60, %v5893_v49  ;;  %2172 = vst [vmem:[#allocation4 + $0x28] sm:$0xff] %v2842_v50  ;;  %v2578_v10 = vadd.f32 %v2386_v30, %v2258_v25  ;;  %v2425_v47 = vmul.f32 0.6931472, %v3411_v63  ;;  %3418 = vrcp.f32 %v5069_v20  ;;  %v5902_v49 = vld [vmem:[#allocation68_spill] sm:$0xff] }
 0x231   :  { %v2445_v19 = vadd.f32 1.0, %v2444_v11  ;;  %v2447_v57 = vand.u32 2147483647, %v5086_v56  ;;  %v1895_v44 = vmul.f32 1.442695, %v1839_v48  ;;  %v2265_v46 = vsub.f32 %v2201_v3, %v2233_v18  ;;  %v5898_v3 = vld [vmem:[#allocation19_spill] sm:$0xff] }
 0x232   :  { %v5143_v8 = vpop.eup %3412  ;;  %v5145_v51 = vadd.f32 %v2608_v35, %v2600_v21  ;;  %v2610_v17 = vmul.f32 %v2578_v10, %v5894_v39  ;;  %v2431_v24 = vsel %vm5135_vm1, %v2428_v26, %v2425_v47  ;;  %v1809_v25 = vand.u32 2147483647, %v5129_v32  ;;  %v5901_v48 = vld [vmem:[#allocation62_spill] sm:$0xff] }
 0x233   :  { %v2583_v23 = vadd.f32 %v2431_v24, %v5083_v37  ;;  %v1928_v7 = vadd.f32 1.0, %v5143_v8  ;;  %3420 = vpow2.f32 %v1895_v44  ;;  %v2446_v21 = vmul.f32 %v5086_v56, %v2445_v19  ;;  %v5903_v10 = vld [vmem:[#allocation22_spill] sm:$0xff] }
 0x234   :  { %v3415_v20 = vpop.eup %3414  ;;  %v5153_v55 = vadd.f32 %v2610_v17, %v2602_v58  ;;  %vm2448_vm2 = vcmp.lt.f32.partialorder %v2447_v57, 0.0004427343  ;;  %v1841_v34 = vsub.f32 0.0, %v1809_v25  ;;  %v5165_v28 = vadd.f32 %v5897_v42, %v5896_v1 }
 0x235   :  { %v2615_v0 = vmul.f32 %v2583_v23, %v5895_v13  ;;  %v2443_v52 = vmul.f32 0.6931472, %v3415_v20  ;;  %3422 = vrcp.f32 %v1928_v7  ;;  %v2200_v40 = vmax.f32 %v4962_v53, 0.0 }
 0x236   :  { %3424 = vlog2.f32 %v1928_v7  ;;  %v1899_v41 = vmul.f32 1.442695, %v1841_v34  ;;  %v2232_v18 = vmul.f32 %v4962_v53, %v5898_v3  ;;  %v2435_v2 = vmul.f32 -0.5, %v5143_v8 }
 0x237   :  { %v5160_v37 = vadd.f32 %v5064_v43, %v2615_v0  ;;  %3426 = vrcp.f32 %v5095_v36  ;;  %v2449_v15 = vsel %vm2448_vm2, %v2446_v21, %v2443_v52  ;;  %v5899_v36 = vld [vmem:[#allocation67_spill] sm:$0xff]  ;;  %v1808_v5 = vand.u32 2147483647, %v5165_v28 }
 0x238   :  { %v5167_v9 = vpop.eup %3416  ;;  %v2585_v12 = vadd.f32 %v2449_v15, %v2265_v46  ;;  %v5176_v22 = vadd.f32 %v5899_v36, %v4754_v31  ;;  %3428 = vpow2.f32 %v1899_v41  ;;  %v2023_v27 = vsel %vm1991_vm3, 1.0, %v5058_v4 }
 0x239   :  { %v1930_v43 = vadd.f32 1.0, %v5167_v9  ;;  %vm1992_vm5 = vcmp.ge.f32.partialorder %v4962_v53, 0.0  ;;  %v2025_v60 = vsel %vm1993_vm4, 1.0, %v5086_v56  ;;  %v1840_v16 = vsub.f32 0.0, %v1808_v5 }
 0x23a   :  { %v2617_v38 = vmul.f32 %v2585_v12, %v5900_v61  ;;  %v3419_v11 = vpop.eup %3418  ;;  %v2264_v50 = vsub.f32 %v2200_v40, %v2232_v18  ;;  %v2436_v63 = vadd.f32 1.0, %v2435_v2  ;;  %v2438_v29 = vand.u32 2147483647, %v5143_v8  ;;  %v5904_v12 = vld [vmem:[#allocation26_spill] sm:$0xff]  ;;  %v5905_v2 = vld [vmem:[#allocation15_spill] sm:$0xff] }
 0x23b   :  { %3430 = vrcp.f32 %v1930_v43  ;;  %v1810_v58 = vand.u32 2147483647, %v5176_v22  ;;  %v2055_v4 = vmul.f32 %v3419_v11, %v2023_v27  ;;  %v2202_v14 = vmax.f32 %v5092_v6, 0.0 }
 0x23c   :  { %v5186_v31 = vadd.f32 %v5071_v54, %v2617_v38  ;;  %3432 = vlog2.f32 %v1930_v43  ;;  %v1897_v59 = vmul.f32 1.442695, %v1840_v16  ;;  %v5195_v56 = vadd.f32 %v5902_v49, %v5901_v48  ;;  %v5908_v16 = vld [vmem:[#allocation63_spill] sm:$0xff] }
 0x23d   :  { %v5190_v30 = vpop.eup %3420  ;;  %v2024_v35 = vsel %vm1992_vm5, 1.0, %v5143_v8  ;;  %v2234_v47 = vmul.f32 %v5092_v6, %v5903_v10  ;;  %v2453_v26 = vmul.f32 -0.5, %v5167_v9  ;;  %vm1994_vm6 = vcmp.ge.f32.partialorder %v5092_v6, 0.0 }
 0x23e   :  { %v1935_v19 = vadd.f32 1.0, %v5190_v30  ;;  %3434 = vpow2.f32 %v1897_v59  ;;  %v1842_v39 = vsub.f32 0.0, %v1810_v58  ;;  %v2437_v25 = vmul.f32 %v5143_v8, %v2436_v63 }
 0x23f   :  { %v3423_v54 = vpop.eup %3422  ;;  %vm2439_vm7 = vcmp.lt.f32.partialorder %v2438_v29, 0.0004427343  ;;  %v2456_v53 = vand.u32 2147483647, %v5167_v9  ;;  %v1787_v20 = vand.u32 2147483647, %v5195_v56  ;;  %v2266_v0 = vsub.f32 %v2202_v14, %v2234_v47 }
 0x240   :  { %v3425_v57 = vpop.eup %3424  ;;  %v2056_v44 = vmul.f32 %v3423_v54, %v2024_v35  ;;  %3436 = vlog2.f32 %v1935_v19  ;;  %v1901_v7 = vmul.f32 1.442695, %v1842_v39  ;;  %v2454_v52 = vadd.f32 1.0, %v2453_v26  ;;  %v5910_v54 = vld [vmem:[#allocation28_spill] sm:$0xff]  ;;  %v5911_v26 = vld [vmem:[#allocation25_spill] sm:$0xff] }
 0x241   :  { %v3427_v17 = vpop.eup %3426  ;;  %v2434_v24 = vmul.f32 0.6931472, %v3425_v57  ;;  %v2207_v21 = vmax.f32 %v5121_v33, 0.0  ;;  %v1819_v8 = vsub.f32 0.0, %v1787_v20  ;;  %v2026_v42 = vsel %vm1994_vm6, 1.0, %v5167_v9 }
 0x242   :  { %v2845_v23 = vpack.c.bf16 %v2056_v44, %v2055_v4  ;;  %v5209_v46 = vpop.eup %3428  ;;  %v2057_v34 = vmul.f32 %v3427_v17, %v2025_v60  ;;  %3438 = vpow2.f32 %v1901_v7  ;;  %v2239_v40 = vmul.f32 %v5121_v33, %v5904_v12  ;;  %v5912_v44 = vld [vmem:[#allocation17_spill] sm:$0xff] }
 0x243   :  { %v2440_v13 = vsel %vm2439_vm7, %v2437_v25, %v2434_v24  ;;  %v2498_v41 = vmul.f32 -0.5, %v5190_v30  ;;  %v1937_v3 = vadd.f32 1.0, %v5209_v46  ;;  %vm5219_vm8 = vcmp.lt.f32.partialorder %v2456_v53, 0.0004427343 }
 0x244   :  { %2175 = vst [vmem:[#allocation4 + $0x40] sm:$0xff] %v2845_v23  ;;  %v2584_v15 = vadd.f32 %v2440_v13, %v2264_v50  ;;  %v1855_v38 = vmul.f32 1.442695, %v1819_v8  ;;  %v2455_v6 = vmul.f32 %v5167_v9, %v2454_v52  ;;  %3440 = vrcp.f32 %v1935_v19  ;;  %v5909_v50 = vld [vmem:[#allocation69_spill] sm:$0xff] }
 0x245   :  { %v3431_v1 = vpop.eup %3430  ;;  %v2501_v11 = vand.u32 2147483647, %v5190_v30  ;;  %3442 = vlog2.f32 %v1937_v3  ;;  %v5230_v63 = vadd.f32 %v5909_v50, %v5908_v16  ;;  %v2499_v58 = vadd.f32 1.0, %v2498_v41 }
 0x246   :  { %v3433_v18 = vpop.eup %3432  ;;  %v2616_v43 = vmul.f32 %v2584_v15, %v5905_v2  ;;  %v2058_v36 = vmul.f32 %v3431_v1, %v2026_v42  ;;  %v2209_v4 = vmax.f32 %v5129_v32, 0.0  ;;  %3444 = vpow2.f32 %v1855_v38 }
 0x247   :  { %v2452_v5 = vmul.f32 0.6931472, %v3433_v18  ;;  %v2271_v59 = vsub.f32 %v2207_v21, %v2239_v40  ;;  %v1789_v49 = vand.u32 2147483647, %v5230_v63  ;;  %vm1999_vm9 = vcmp.ge.f32.partialorder %v5121_v33, 0.0 }
 0x248   :  { %v5226_v27 = vadd.f32 %v5145_v51, %v2616_v43  ;;  %v2846_v60 = vpack.c.bf16 %v2058_v36, %v2057_v34  ;;  %v5235_v9 = vpop.eup %3434  ;;  %v2516_v51 = vmul.f32 -0.5, %v5209_v46  ;;  %v2241_v35 = vmul.f32 %v5129_v32, %v5910_v54 }
 0x249   :  { %v2458_v29 = vsel %vm5219_vm8, %v2455_v6, %v2452_v5  ;;  %v1936_v10 = vadd.f32 1.0, %v5235_v9  ;;  %v2208_v47 = vmax.f32 %v5165_v28, 0.0  ;;  %v2240_v19 = vmul.f32 %v5165_v28, %v5911_v26 }
 0x24a   :  { %2176 = vst [vmem:[#allocation4 + $0x48] sm:$0xff] %v2846_v60  ;;  %v2586_v14 = vadd.f32 %v2458_v29, %v2266_v0  ;;  %v3437_v57 = vpop.eup %3436  ;;  %vm5247_vm10 = vcmp.lt.f32.partialorder %v2501_v11, 0.0004427343  ;;  %3446 = vrcp.f32 %v1937_v3  ;;  %v1821_v24 = vsub.f32 0.0, %v1789_v49 }
 0x24c   :  { %v2618_v39 = vmul.f32 %v2586_v14, %v5912_v44 }
 0x24d   :  { %3561 = shalt.err (!%p3558_p4)
}
 0x24e   :  { %s3562_s1 = scalar_lea.hbm %s5742_s7, 512 }
 0x24f   :  { %p3563_p5 = scmp.ne.s32.totalorder %s5742_s7, %s3562_s1  ;;  %p3566_p6 = scmp.lt.u32.totalorder %s3562_s1, %s5742_s7 }
 0x251   :  { %p3568_p7 = pnand %p3566_p6, %p3563_p5 }
 0x253   :  { %3571 = shalt.err (!%p3568_p7)
}
 0x254   :  { %s3646_s26 = smov 128   ;;  %s3647_s27 = smov 8   ;;  %v2497_v25 = vmul.f32 0.6931472, %v3437_v57  ;;  %v2500_v53 = vmul.f32 %v5190_v30, %v2499_v58  ;;  %vm2001_vm11 = vcmp.ge.f32.partialorder %v5129_v32, 0.0  ;;  %3448 = vrcp.f32 %v1936_v10  ;;  %v5915_v23 = vld [vmem:[#allocation64_spill] sm:$0xff]  ;;  %v5269_v13 = vpop.eup %3438 }
 0x255   :  { %2674 = dma.vmem_to_hbm [thread:$0]  %s2669_s18, 512, %s5742_s7, [#allocation3], %s3646_s26, %s3646_s26, %s3647_s27   ;;  %v5916_v7 = vld [vmem:[#allocation70_spill] sm:$0xff]  ;;  %v5272_v0 = vadd.f32 %v5153_v55, %v2618_v39  ;;  %v2517_v52 = vadd.f32 1.0, %v2516_v51  ;;  %3450 = vlog2.f32 %v1936_v10  ;;  %v1859_v21 = vmul.f32 1.442695, %v1821_v24  ;;  %v3441_v40 = vpop.eup %3440 }
 0x256   :  { %v5267_v20 = vadd.f32 %v5916_v7, %v5915_v23  ;;  %v2503_v34 = vsel %vm5247_vm10, %v2500_v53, %v2497_v25  ;;  %v2273_v15 = vsub.f32 %v2209_v4, %v2241_v35  ;;  %v2507_v8 = vmul.f32 -0.5, %v5235_v9  ;;  %v5917_v41 = vld [vmem:[#allocation27_spill] sm:$0xff]  ;;  %v3443_v2 = vpop.eup %3442  ;;  %v5918_v43 = vld [vmem:[#allocation21_spill] sm:$0xff]  ;;  %v5923_v32 = vld [vmem:[#allocation24_spill] sm:$0xff]  ;;  %s3648_s7 = smov [#allocation4]   ;;  %s3649_s30 = smov [#allocation6]  }
 0x257   :  { %v1938_v1 = vadd.f32 1.0, %v5269_v13  ;;  %v2591_v42 = vadd.f32 %v2503_v34, %v2271_v59  ;;  %v2519_v12 = vand.u32 2147483647, %v5209_v46  ;;  %vm2000_vm12 = vcmp.ge.f32.partialorder %v5165_v28, 0.0  ;;  %v5287_v5 = vpop.eup %3444  ;;  %v5919_v33 = vld [vmem:[#allocation65_spill] sm:$0xff]  ;;  %s2680_s29 = sshll.u32 %s3648_s7, 4  ;;  %s5678_s29 = int_to_ptr.vmem [resolvable:$true] %s2680_s29 }
 0x258   :  { %3452 = vpow2.f32 %v1859_v21  ;;  %v2210_v55 = vmax.f32 %v5176_v22, 0.0  ;;  %v2242_v3 = vmul.f32 %v5176_v22, %v5917_v41  ;;  %v1788_v18 = vand.u32 2147483647, %v5267_v20  ;;  %v3447_v54 = vpop.eup %3446  ;;  %s2692_s11 = sshll.u32 %s3649_s30, 4  ;;  %s3650_s12 = smov [#allocation7]   ;;  %s5681_s11 = int_to_ptr.vmem [resolvable:$true] %s2692_s11 }
 0x259   :  { %3454 = vrcp.f32 %v1938_v1  ;;  %v2623_v36 = vmul.f32 %v2591_v42, %v5918_v43  ;;  %v2518_v61 = vmul.f32 %v5209_v46, %v2517_v52  ;;  %v2272_v38 = vsub.f32 %v2208_v47, %v2240_v19  ;;  %s5684_s13 = sshll.u32 %s3650_s12, 4  ;;  %s3572_s14 = scalar_lea.vmem %s5678_s29, 2048  ;;  %s2706_s13 = int_to_ptr.vmem [resolvable:$true] %s5684_s13 }
 0x25a   :  { %vm2002_vm13 = vcmp.ge.f32.partialorder %v5176_v22, 0.0  ;;  %3456 = vlog2.f32 %v1938_v1  ;;  %v2515_v6 = vmul.f32 0.6931472, %v3443_v2  ;;  %v2508_v11 = vadd.f32 1.0, %v2507_v8  ;;  %v5925_v22 = vld [vmem:[#allocation38_spill] sm:$0xff]  ;;  %p3573_p8 = scmp.ne.s32.totalorder %s5678_s29, %s3572_s14  ;;  %p3577_p9 = scmp.lt.s32.totalorder %s5678_s29, %s5678_s29 }
 0x25b   :  { %v2510_v60 = vand.u32 2147483647, %v5235_v9  ;;  %v1820_v50 = vsub.f32 0.0, %v1788_v18  ;;  %v2031_v29 = vsel %vm1999_vm9, 1.0, %v5190_v30  ;;  %v2633_v58 = vadd.f32 %v5160_v37, %v2623_v36  ;;  %v5920_v30 = vld [vmem:[#allocation71_spill] sm:$0xff]  ;;  %p3578_p10 = scmp.lt.s32.totalorder %s3572_s14, %s3572_s14 }
 0x25c   :  { %vm2520_vm14 = vcmp.lt.f32.partialorder %v2519_v12, 0.0004427343  ;;  %v1915_v4 = vadd.f32 1.0, %v5287_v5  ;;  %v2274_v59 = vsub.f32 %v2210_v55, %v2242_v3  ;;  %v2525_v51 = vmul.f32 -0.5, %v5269_v13 }
 0x25d   :  { %v2521_v14 = vsel %vm2520_vm14, %v2518_v61, %v2515_v6  ;;  %v1857_v49 = vmul.f32 1.442695, %v1820_v50  ;;  %v2063_v35 = vmul.f32 %v3441_v40, %v2031_v29  ;;  %2655 = vst [vmem:[#allocation7] sm:$0xff] %v2633_v58  ;;  %v2033_v10 = vsel %vm2001_vm11, 1.0, %v5209_v46  ;;  %v5924_v40 = vld [vmem:[#allocation72_spill] sm:$0xff]  ;;  %p3579_p11 = por %p3578_p10, %p3577_p9 }
 0x25e   :  { %v2593_v47 = vadd.f32 %v2521_v14, %v2273_v15  ;;  %v5301_v26 = vadd.f32 %v5920_v30, %v5919_v33  ;;  %v3449_v37 = vpop.eup %3448  ;;  %v2032_v19 = vsel %vm2000_vm12, 1.0, %v5235_v9  ;;  %v2509_v57 = vmul.f32 %v5235_v9, %v2508_v11  ;;  %v5926_v6 = vld [vmem:[#allocation20_spill] sm:$0xff] }
 0x25f   :  { %vm5307_vm15 = vcmp.lt.f32.partialorder %v2510_v60, 0.0004427343  ;;  %3458 = vlog2.f32 %v1915_v4  ;;  %v3451_v39 = vpop.eup %3450  ;;  %v2064_v17 = vmul.f32 %v3449_v37, %v2032_v19  ;;  %v2065_v25 = vmul.f32 %v3447_v54, %v2033_v10  ;;  %v5927_v54 = vld [vmem:[#allocation39_spill] sm:$0xff]  ;;  %p3580_p12 = pnand %p3579_p11, %p3573_p8 }
 0x260   :  { %v2625_v46 = vmul.f32 %v2593_v47, %v5923_v32  ;;  %3460 = vpow2.f32 %v1857_v49  ;;  %v1790_v24 = vand.u32 2147483647, %v5301_v26  ;;  %v2506_v53 = vmul.f32 0.6931472, %v3451_v39  ;;  %v5928_v37 = vld [vmem:[#allocation23_spill] sm:$0xff] }
 0x261   :  { %v2526_v7 = vadd.f32 1.0, %v2525_v51  ;;  %v2528_v28 = vand.u32 2147483647, %v5269_v13  ;;  %v2849_v21 = vpack.c.bf16 %v2064_v17, %v2063_v35  ;;  %v2318_v34 = vmul.f32 -0.5, %v5287_v5 }
 0x262   :  { %v5314_v52 = vpop.eup %3452  ;;  %v2639_v9 = vadd.f32 %v5186_v31, %v2625_v46  ;;  %v1822_v15 = vsub.f32 0.0, %v1790_v24  ;;  %v2512_v1 = vsel %vm5307_vm15, %v2509_v57, %v2506_v53  ;;  %v2034_v42 = vsel %vm2002_vm13, 1.0, %v5269_v13  ;;  %v5930_v24 = vld [vmem:[#allocation74_spill] sm:$0xff] }
 0x263   :  { %v3455_v8 = vpop.eup %3454  ;;  %v1917_v12 = vadd.f32 1.0, %v5314_v52  ;;  %v5326_v55 = vadd.f32 %v5924_v40, %v5901_v48  ;;  %2179 = vst [vmem:[#allocation4 + $0x60] sm:$0xff] %v2849_v21  ;;  %v2592_v31 = vadd.f32 %v2512_v1, %v2272_v38  ;;  %v2187_v18 = vmax.f32 %v5195_v56, 0.0 }
 0x264   :  { %v3457_v41 = vpop.eup %3456  ;;  %2657 = vst [vmem:[#allocation7 + $0x10] sm:$0xff] %v2639_v9  ;;  %v2066_v3 = vmul.f32 %v3455_v8, %v2034_v42  ;;  %v1861_v2 = vmul.f32 1.442695, %v1822_v15  ;;  %v2527_v36 = vmul.f32 %v5269_v13, %v2526_v7  ;;  %vm2529_vm0 = vcmp.lt.f32.partialorder %v2528_v28, 0.0004427343 }
 0x265   :  { %v2524_v43 = vmul.f32 0.6931472, %v3457_v41  ;;  %v2219_v61 = vmul.f32 %v5195_v56, %v5925_v22  ;;  %v2624_v11 = vmul.f32 %v2592_v31, %v5926_v6  ;;  %v2319_v50 = vadd.f32 1.0, %v2318_v34  ;;  %v5931_v34 = vld [vmem:[#allocation31_spill] sm:$0xff] }
 0x266   :  { %v2850_v60 = vpack.c.bf16 %v2066_v3, %v2065_v25  ;;  %3462 = vlog2.f32 %v1917_v12  ;;  %v2321_v58 = vand.u32 2147483647, %v5287_v5  ;;  %v1795_v38 = vand.u32 2147483647, %v5326_v55 }
 0x267   :  { %v2530_v29 = vsel %vm2529_vm0, %v2527_v36, %v2524_v43  ;;  %3464 = vpow2.f32 %v1861_v2  ;;  %v2636_v14 = vadd.f32 %v5226_v27, %v2624_v11  ;;  %v2189_v13 = vmax.f32 %v5230_v63, 0.0  ;;  %v5932_v2 = vld [vmem:[#allocation75_spill] sm:$0xff] }
 0x268   :  { %2180 = vst [vmem:[#allocation4 + $0x68] sm:$0xff] %v2850_v60  ;;  %v2594_v51 = vadd.f32 %v2530_v29, %v2274_v59  ;;  %3466 = vrcp.f32 %v1915_v4  ;;  %v2221_v35 = vmul.f32 %v5230_v63, %v5927_v54  ;;  %v2336_v10 = vmul.f32 -0.5, %v5314_v52  ;;  %v5929_v59 = vld [vmem:[#allocation73_spill] sm:$0xff] }
 0x269   :  { %v3459_v49 = vpop.eup %3458  ;;  %v1827_v47 = vsub.f32 0.0, %v1795_v38  ;;  %2656 = vst [vmem:[#allocation7 + $0x8] sm:$0xff] %v2636_v14  ;;  %v2320_v27 = vmul.f32 %v5287_v5, %v2319_v50  ;;  %v5346_v44 = vadd.f32 %v5929_v59, %v5908_v16  ;;  %vm1979_vm1 = vcmp.ge.f32.partialorder %v5195_v56, 0.0  ;;  %v5937_v59 = vld [vmem:[#allocation41_spill] sm:$0xff] }
 0x26a   :  { %v5340_v30 = vpop.eup %3460  ;;  %v2626_v19 = vmul.f32 %v2594_v51, %v5928_v37  ;;  %v2317_v57 = vmul.f32 0.6931472, %v3459_v49  ;;  %v2251_v4 = vsub.f32 %v2187_v18, %v2219_v61  ;;  %vm2322_vm2 = vcmp.lt.f32.partialorder %v2321_v58, 0.0004427343 }
 0x26b   :  { %v1916_v39 = vadd.f32 1.0, %v5340_v30  ;;  %v1871_v17 = vmul.f32 1.442695, %v1827_v47  ;;  %v5353_v25 = vadd.f32 %v5930_v24, %v5915_v23  ;;  %vm1981_vm3 = vcmp.ge.f32.partialorder %v5230_v63, 0.0 }
 0x26c   :  { %v2642_v32 = vadd.f32 %v5272_v0, %v2626_v19  ;;  %v2323_v46 = vsel %vm2322_vm2, %v2320_v27, %v2317_v57  ;;  %v2337_v7 = vadd.f32 1.0, %v2336_v10  ;;  %v2253_v28 = vsub.f32 %v2189_v13, %v2221_v35  ;;  %v5934_v10 = vld [vmem:[#allocation76_spill] sm:$0xff] }
 0x26d   :  { %v5355_v53 = vadd.f32 %v2323_v46, %v2251_v4  ;;  %3468 = vrcp.f32 %v1916_v39  ;;  %v2339_v9 = vand.u32 2147483647, %v5314_v52  ;;  %v1797_v21 = vand.u32 2147483647, %v5346_v44 }
 0x26e   :  { %2658 = vst [vmem:[#allocation7 + $0x18] sm:$0xff] %v2642_v32  ;;  %3470 = vlog2.f32 %v1916_v39  ;;  %vm1980_vm4 = vcmp.ge.f32.partialorder %v5267_v20, 0.0  ;;  %v2188_v0 = vmax.f32 %v5267_v20, 0.0  ;;  %v2220_v15 = vmul.f32 %v5267_v20, %v5931_v34 }
 0x26f   :  { %3472 = vpow2.f32 %v1871_v17  ;;  %v2011_v1 = vsel %vm1979_vm1, 1.0, %v5287_v5  ;;  %v1829_v42 = vsub.f32 0.0, %v1797_v21  ;;  %v1796_v40 = vand.u32 2147483647, %v5353_v25  ;;  %v5933_v5 = vld [vmem:[#allocation32_spill] sm:$0xff]  ;;  %v5938_v21 = vld [vmem:[#allocation47_spill] sm:$0xff] }
 0x270   :  { %v3463_v8 = vpop.eup %3462  ;;  %3474 = vrcp.f32 %v1917_v12  ;;  %v2338_v3 = vmul.f32 %v5314_v52, %v2337_v7  ;;  %v2327_v18 = vmul.f32 -0.5, %v5340_v30  ;;  %v5374_v43 = vadd.f32 %v5932_v2, %v5919_v33 }
 0x271   :  { %v5368_v41 = vpop.eup %3464  ;;  %v2335_v31 = vmul.f32 0.6931472, %v3463_v8  ;;  %vm2340_vm5 = vcmp.lt.f32.partialorder %v2339_v9, 0.0004427343  ;;  %v2190_v56 = vmax.f32 %v5301_v26, 0.0  ;;  %v2222_v12 = vmul.f32 %v5301_v26, %v5933_v5  ;;  %v5939_v8 = vld [vmem:[#allocation77_spill] sm:$0xff] }
 0x272   :  { %v1918_v36 = vadd.f32 1.0, %v5368_v41  ;;  %v3467_v22 = vpop.eup %3466  ;;  %v2252_v6 = vsub.f32 %v2188_v0, %v2220_v15  ;;  %v1875_v11 = vmul.f32 1.442695, %v1829_v42  ;;  %v1828_v60 = vsub.f32 0.0, %v1796_v40 }
 0x273   :  { %v2341_v61 = vsel %vm2340_vm5, %v2338_v3, %v2335_v31  ;;  %v2013_v50 = vsel %vm1981_vm3, 1.0, %v5314_v52  ;;  %v2330_v58 = vand.u32 2147483647, %v5340_v30  ;;  %v2328_v38 = vadd.f32 1.0, %v2327_v18  ;;  %v5940_v3 = vld [vmem:[#allocation33_spill] sm:$0xff] }
 0x274   :  { %v5383_v29 = vadd.f32 %v2341_v61, %v2253_v28  ;;  %3476 = vrcp.f32 %v1918_v36  ;;  %vm1982_vm6 = vcmp.ge.f32.partialorder %v5301_v26, 0.0  ;;  %v1873_v14 = vmul.f32 1.442695, %v1828_v60  ;;  %v5941_v61 = vld [vmem:[#allocation40_spill] sm:$0xff] }
 0x275   :  { %3478 = vlog2.f32 %v1918_v36  ;;  %v1798_v51 = vand.u32 2147483647, %v5374_v43  ;;  %v2043_v13 = vmul.f32 %v3467_v22, %v2011_v1  ;;  %v5388_v49 = vsub.f32 %v2190_v56, %v2222_v12 }
 0x276   :  { %v2195_v54 = vmax.f32 %v5326_v55, 0.0  ;;  %3480 = vpow2.f32 %v1875_v11  ;;  %v2012_v52 = vsel %vm1980_vm4, 1.0, %v5340_v30  ;;  %v5396_v47 = vadd.f32 %v5934_v10, %v5901_v48 }
 0x277   :  { %v3469_v63 = vpop.eup %3468  ;;  %3482 = vpow2.f32 %v1873_v14  ;;  %v1830_v35 = vsub.f32 0.0, %v1798_v51  ;;  %vm5398_vm7 = vcmp.lt.f32.partialorder %v2330_v58, 0.0004427343  ;;  %v2345_v27 = vmul.f32 -0.5, %v5368_v41 }
 0x278   :  { %v3471_v37 = vpop.eup %3470  ;;  %v2044_v19 = vmul.f32 %v3469_v63, %v2012_v52  ;;  %v2227_v4 = vmul.f32 %v5326_v55, %v5937_v59  ;;  %v2329_v32 = vmul.f32 %v5340_v30, %v2328_v38  ;;  %v1803_v17 = vand.u32 2147483647, %v5396_v47  ;;  %v5942_v63 = vld [vmem:[#allocation43_spill] sm:$0xff]  ;;  %v5943_v59 = vld [vmem:[#allocation34_spill] sm:$0xff] }
 0x279   :  { %v5405_v39 = vpop.eup %3472  ;;  %v2326_v20 = vmul.f32 0.6931472, %v3471_v37  ;;  %v1877_v46 = vmul.f32 1.442695, %v1830_v35  ;;  %v2197_v9 = vmax.f32 %v5346_v44, 0.0  ;;  %v2229_v0 = vmul.f32 %v5346_v44, %v5938_v21 }
 0x27a   :  { %v3475_v24 = vpop.eup %3474  ;;  %v2839_v7 = vpack.c.bf16 %v2044_v19, %v2043_v13  ;;  %v1923_v28 = vadd.f32 1.0, %v5405_v39  ;;  %v1835_v15 = vsub.f32 0.0, %v1803_v17  ;;  %v5417_v30 = vadd.f32 %v5939_v8, %v5908_v16 }
 0x27b   :  { %v2332_v34 = vsel %vm5398_vm7, %v2329_v32, %v2326_v20  ;;  %3484 = vpow2.f32 %v1877_v46  ;;  %v2346_v42 = vadd.f32 1.0, %v2345_v27  ;;  %v2348_v40 = vand.u32 2147483647, %v5368_v41  ;;  %v5944_v32 = vld [vmem:[#allocation78_spill] sm:$0xff] }
 0x27c   :  { %2169 = vst [vmem:[#allocation4 + $0x10] sm:$0xff] %v2839_v7  ;;  %v5419_v1 = vadd.f32 %v2332_v34, %v2252_v6  ;;  %vm1987_vm8 = vcmp.ge.f32.partialorder %v5326_v55, 0.0  ;;  %v5423_v31 = vsub.f32 %v2195_v54, %v2227_v4  ;;  %v5427_v18 = vmul.f32 %v5355_v53, %v5940_v3 }
 0x27d   :  { %v2045_v2 = vmul.f32 %v3475_v24, %v2013_v50  ;;  %3486 = vlog2.f32 %v1923_v28  ;;  %v1887_v36 = vmul.f32 1.442695, %v1835_v15  ;;  %v2014_v5 = vsel %vm1982_vm6, 1.0, %v5368_v41 }
 0x27e   :  { %v3477_v56 = vpop.eup %3476  ;;  %v5432_v12 = vsub.f32 %v2197_v9, %v2229_v0  ;;  %v2196_v22 = vmax.f32 %v5353_v25, 0.0  ;;  %v2228_v6 = vmul.f32 %v5353_v25, %v5941_v61  ;;  %v2390_v53 = vmul.f32 -0.5, %v5405_v39 }
 0x27f   :  { %v3479_v11 = vpop.eup %3478  ;;  %v2046_v60 = vmul.f32 %v3477_v56, %v2014_v5  ;;  %3488 = vpow2.f32 %v1887_v36  ;;  %v1805_v50 = vand.u32 2147483647, %v5417_v30  ;;  %v2347_v14 = vmul.f32 %v5368_v41, %v2346_v42  ;;  %v5948_v36 = vld [vmem:[#allocation29_spill] sm:$0xff] }
 0x280   :  { %v3481_v58 = vpop.eup %3480  ;;  %v2344_v38 = vmul.f32 0.6931472, %v3479_v11  ;;  %vm2349_vm9 = vcmp.lt.f32.partialorder %v2348_v40, 0.0004427343  ;;  %v2198_v26 = vmax.f32 %v5374_v43, 0.0  ;;  %3490 = vrcp.f32 %v1923_v28 }
 0x281   :  { %v5441_v51 = vpop.eup %3482  ;;  %v2840_v13 = vpack.c.bf16 %v2046_v60, %v2045_v2  ;;  %v1925_v54 = vadd.f32 1.0, %v3481_v58  ;;  %vm1989_vm10 = vcmp.ge.f32.partialorder %v5346_v44, 0.0  ;;  %v2230_v52 = vmul.f32 %v5374_v43, %v5942_v63  ;;  %v5952_v63 = vld [vmem:[#allocation36_spill] sm:$0xff] }
 0x282   :  { %v2350_v35 = vsel %vm2349_vm9, %v2347_v14, %v2344_v38  ;;  %v2393_v10 = vand.u32 2147483647, %v5405_v39  ;;  %v1924_v37 = vadd.f32 1.0, %v5441_v51  ;;  %vm1988_vm11 = vcmp.ge.f32.partialorder %v5353_v25, 0.0 }
 0x283   :  { %v5449_v41 = vsub.f32 %v2196_v22, %v2228_v6  ;;  %2170 = vst [vmem:[#allocation4 + $0x18] sm:$0xff] %v2840_v13  ;;  %v5452_v19 = vadd.f32 %v2350_v35, %v5388_v49  ;;  %v2391_v57 = vadd.f32 1.0, %v2390_v53  ;;  %3492 = vrcp.f32 %v1925_v54  ;;  %v5949_v22 = vld [vmem:[#allocation53_spill] sm:$0xff]  ;;  %v5961_v35 = vld [vmem:[#allocation30_spill] sm:$0xff] }
 0x284   :  { %v1837_v27 = vsub.f32 0.0, %v1805_v50  ;;  %v5456_v4 = vmul.f32 %v5383_v29, %v5943_v59  ;;  %3494 = vlog2.f32 %v1925_v54  ;;  %v2408_v20 = vmul.f32 -0.5, %v3481_v58  ;;  %v5945_v29 = vld [vmem:[#allocation79_spill] sm:$0xff] }
 0x285   :  { %vm1990_vm12 = vcmp.ge.f32.partialorder %v5374_v43, 0.0  ;;  %v5461_v46 = vadd.f32 %v5944_v32, %v5915_v23  ;;  %v5463_v17 = vpop.eup %3484  ;;  %v2019_v49 = vsel %vm1987_vm8, 1.0, %v5405_v39  ;;  %3496 = vrcp.f32 %v1924_v37 }
 0x286   :  { %v5468_v24 = vsub.f32 %v2198_v26, %v2230_v52  ;;  %v5472_v7 = vadd.f32 %v5945_v29, %v5919_v33  ;;  %vm5474_vm13 = vcmp.lt.f32.partialorder %v2393_v10, 0.0004427343  ;;  %3498 = vlog2.f32 %v1924_v37 }
 0x287   :  { %v1926_v9 = vadd.f32 1.0, %v5463_v17  ;;  %v2203_v21 = vmax.f32 %v5396_v47, 0.0  ;;  %v3487_v0 = vpop.eup %3486  ;;  %v2392_v55 = vmul.f32 %v5405_v39, %v2391_v57  ;;  %v2411_v34 = vand.u32 2147483647, %v3481_v58 }
 0x288   :  { %v2399_v15 = vmul.f32 -0.5, %v5441_v51  ;;  %v1891_v8 = vmul.f32 1.442695, %v1837_v27  ;;  %v2389_v42 = vmul.f32 0.6931472, %v3487_v0  ;;  %v2409_v40 = vadd.f32 1.0, %v2408_v20 }
 0x289   :  { %3500 = vrcp.f32 %v1926_v9  ;;  %v1804_v3 = vand.u32 2147483647, %v5461_v46  ;;  %v5483_v2 = vpop.eup %3488  ;;  %v5487_v56 = vmul.f32 %v5419_v1, %v5948_v36  ;;  %v2402_v5 = vand.u32 2147483647, %v5441_v51 }
 0x28a   :  { %3502 = vlog2.f32 %v1926_v9  ;;  %v5492_v39 = vmul.f32 %v5396_v47, %v5949_v22  ;;  %v2395_v61 = vsel %vm5474_vm13, %v2392_v55, %v2389_v42  ;;  %v2021_v6 = vsel %vm1989_vm10, 1.0, %v3481_v58  ;;  %v3491_v1 = vpop.eup %3490 }
 0x28b   :  { %v2417_v11 = vmul.f32 -0.5, %v5463_v17  ;;  %v5500_v60 = vadd.f32 1.0, %v5483_v2  ;;  %v2579_v53 = vadd.f32 %v2395_v61, %v5423_v31  ;;  %v2020_v50 = vsel %vm1988_vm11, 1.0, %v5441_v51 }
 0x28c   :  { %v2400_v38 = vadd.f32 1.0, %v2399_v15  ;;  %3504 = vpow2.f32 %v1891_v8  ;;  %v2410_v14 = vmul.f32 %v3481_v58, %v2409_v40  ;;  %vm5506_vm14 = vcmp.lt.f32.partialorder %v2411_v34, 0.0004427343 }
 0x28d   :  { %v2420_v44 = vand.u32 2147483647, %v5463_v17  ;;  %v1836_v13 = vsub.f32 0.0, %v1804_v3  ;;  %v3493_v54 = vpop.eup %3492  ;;  %v2611_v52 = vmul.f32 %v2579_v53, %v5952_v63  ;;  %vm5512_vm15 = vcmp.lt.f32.partialorder %v2402_v5, 0.0004427343 }
 0x28e   :  { %v2022_v25 = vsel %vm1990_vm12, 1.0, %v5463_v17  ;;  %3506 = vlog2.f32 %v5500_v60  ;;  %v3495_v31 = vpop.eup %3494  ;;  %v2051_v58 = vmul.f32 %v3491_v1, %v2019_v49  ;;  %v2418_v10 = vadd.f32 1.0, %v2417_v11  ;;  %v5958_v11 = vld [vmem:[#allocation42_spill] sm:$0xff] }
 0x28f   :  { %v1889_v37 = vmul.f32 1.442695, %v1836_v13  ;;  %v1806_v57 = vand.u32 2147483647, %v5472_v7  ;;  %v3497_v27 = vpop.eup %3496  ;;  %v5522_v59 = vadd.f32 %v2611_v52, %v5427_v18  ;;  %v2407_v20 = vmul.f32 0.6931472, %v3495_v31 }
 0x290   :  { %v2401_v32 = vmul.f32 %v5441_v51, %v2400_v38  ;;  %v2462_v29 = vmul.f32 -0.5, %v5483_v2  ;;  %v3499_v28 = vpop.eup %3498  ;;  %v2052_v43 = vmul.f32 %v3497_v27, %v2020_v50  ;;  %vm5526_vm0 = vcmp.lt.f32.partialorder %v2420_v44, 0.0004427343  ;;  %v5957_v18 = vld [vmem:[#allocation80_spill] sm:$0xff]  ;;  %v5960_v13 = vld [vmem:[#allocation35_spill] sm:$0xff] }
 0x291   :  { %3508 = vpow2.f32 %v1889_v37  ;;  %v1838_v49 = vsub.f32 0.0, %v1806_v57  ;;  %v2053_v0 = vmul.f32 %v3493_v54, %v2021_v6  ;;  %v2413_v55 = vsel %vm5506_vm14, %v2410_v14, %v2407_v20  ;;  %v5959_v14 = vld [vmem:[#allocation81_spill] sm:$0xff] }
 0x292   :  { %v2398_v34 = vmul.f32 0.6931472, %v3499_v28  ;;  %v5534_v15 = vadd.f32 %v5957_v18, %v5901_v48  ;;  %v2581_v8 = vadd.f32 %v2413_v55, %v5432_v12  ;;  %v2843_v42 = vpack.c.bf16 %v2052_v43, %v2051_v58  ;;  %v5962_v37 = vld [vmem:[#allocation37_spill] sm:$0xff]  ;;  %v5964_v43 = vld [vmem:[#allocation55_spill] sm:$0xff]  ;;  %v5965_v18 = vld [vmem:[#allocation48_spill] sm:$0xff] }
 0x293   :  { %v3501_v51 = vpop.eup %3500  ;;  %v2419_v40 = vmul.f32 %v5463_v17, %v2418_v10  ;;  %v1893_v3 = vmul.f32 1.442695, %v1838_v49  ;;  %v2463_v61 = vadd.f32 1.0, %v2462_v29  ;;  %v2465_v17 = vand.u32 2147483647, %v5483_v2  ;;  %v5963_v29 = vld [vmem:[#allocation46_spill] sm:$0xff] }
 0x294   :  { %v3503_v36 = vpop.eup %3502  ;;  %v2404_v5 = vsel %vm5512_vm15, %v2401_v32, %v2398_v34  ;;  %v2054_v22 = vmul.f32 %v3501_v51, %v2022_v25  ;;  %v1811_v6 = vand.u32 2147483647, %v5534_v15  ;;  %v2613_v1 = vmul.f32 %v2581_v8, %v5958_v11  ;;  %2173 = vst [vmem:[#allocation4 + $0x30] sm:$0xff] %v2843_v42 }
 0x295   :  { %v2580_v48 = vadd.f32 %v2404_v5, %v5449_v41  ;;  %v2416_v53 = vmul.f32 0.6931472, %v3503_v36  ;;  %3510 = vpow2.f32 %v1893_v3  ;;  %v5548_v26 = vadd.f32 %v5959_v14, %v5908_v16 }
 0x296   :  { %v5543_v12 = vpop.eup %3504  ;;  %v2844_v50 = vpack.c.bf16 %v2054_v22, %v2053_v0  ;;  %v1843_v38 = vsub.f32 0.0, %v1811_v6  ;;  %v5551_v44 = vadd.f32 %v2613_v1, %v5456_v4  ;;  %v2606_v25 = vmul.f32 %v5452_v19, %v5961_v35 }
 0x297   :  { %v2612_v54 = vmul.f32 %v2580_v48, %v5960_v13  ;;  %v2422_v41 = vsel %vm5526_vm0, %v2419_v40, %v2416_v53  ;;  %v1933_v63 = vadd.f32 1.0, %v5543_v12  ;;  %v2267_v16 = vsub.f32 %v2203_v21, %v5492_v39 }
 0x298   :  { %v3507_v52 = vpop.eup %3506  ;;  %2174 = vst [vmem:[#allocation4 + $0x38] sm:$0xff] %v2844_v50  ;;  %v2582_v31 = vadd.f32 %v2422_v41, %v5468_v24  ;;  %3512 = vrcp.f32 %v5500_v60  ;;  %v2464_v10 = vmul.f32 %v5483_v2, %v2463_v61  ;;  %vm2466_vm1 = vcmp.lt.f32.partialorder %v2465_v17, 0.0004427343  ;;  %v5966_v17 = vld [vmem:[#allocation51_spill] sm:$0xff] }
 0x299   :  { %v5564_v4 = vadd.f32 %v2612_v54, %v5487_v56  ;;  %v2461_v58 = vmul.f32 0.6931472, %v3507_v52  ;;  %3514 = vlog2.f32 %v1933_v63  ;;  %v1903_v19 = vmul.f32 1.442695, %v1843_v38 }
 0x29a   :  { %v2614_v57 = vmul.f32 %v2582_v31, %v5962_v37  ;;  %v1813_v24 = vand.u32 2147483647, %v5548_v26  ;;  %3516 = vrcp.f32 %v1933_v63  ;;  %v2205_v39 = vmax.f32 %v5417_v30, 0.0 }
 0x29b   :  { %v3509_v27 = vpop.eup %3508  ;;  %v2467_v20 = vsel %vm2466_vm1, %v2464_v10, %v2461_v58  ;;  %v2480_v60 = vmul.f32 -0.5, %v5543_v12  ;;  %3518 = vpow2.f32 %v1903_v19  ;;  %v2237_v9 = vmul.f32 %v5417_v30, %v5964_v43  ;;  %v5969_v19 = vld [vmem:[#allocation49_spill] sm:$0xff] }
 0x29c   :  { %v5570_v32 = vadd.f32 %v2614_v57, %v2606_v25  ;;  %v2587_v21 = vadd.f32 %v2467_v20, %v2267_v16  ;;  %v1932_v56 = vadd.f32 1.0, %v3509_v27  ;;  %v1845_v49 = vsub.f32 0.0, %v1813_v24 }
 0x29d   :  { %vm1995_vm2 = vcmp.ge.f32.partialorder %v5396_v47, 0.0  ;;  %v2204_v34 = vmax.f32 %v5461_v46, 0.0  ;;  %v2236_v51 = vmul.f32 %v5461_v46, %v5965_v18  ;;  %vm1997_vm3 = vcmp.ge.f32.partialorder %v5417_v30, 0.0 }
 0x29e   :  { %v2619_v28 = vmul.f32 %v2587_v21, %v5963_v29  ;;  %3520 = vrcp.f32 %v1932_v56  ;;  %v2481_v42 = vadd.f32 1.0, %v2480_v60  ;;  %v2471_v40 = vmul.f32 -0.5, %v3509_v27 }
 0x29f   :  { %v5577_v0 = vpop.eup %3510  ;;  %3522 = vlog2.f32 %v1932_v56  ;;  %v1907_v3 = vmul.f32 1.442695, %v1845_v49  ;;  %v2269_v36 = vsub.f32 %v2205_v39, %v2237_v9  ;;  %v2483_v5 = vand.u32 2147483647, %v5543_v12 }
 0x2a0   :  { %v5581_v55 = vadd.f32 %v5522_v59, %v2619_v28  ;;  %v1934_v8 = vadd.f32 1.0, %v5577_v0  ;;  %v5591_v47 = vadd.f32 %v5027_v45, %v5915_v23  ;;  %v2027_v22 = vsel %vm1995_vm2, 1.0, %v5483_v2 }
 0x2a1   :  { %vm1996_vm4 = vcmp.ge.f32.partialorder %v5461_v46, 0.0  ;;  %v5597_v61 = vadd.f32 %v5045_v62, %v5919_v33  ;;  %v2268_v11 = vsub.f32 %v2204_v34, %v2236_v51  ;;  %v2474_v1 = vand.u32 2147483647, %v3509_v27 }
 0x2a2   :  { %3524 = vrcp.f32 %v1934_v8  ;;  %v3513_v59 = vpop.eup %3512  ;;  %vm1998_vm5 = vcmp.ge.f32.partialorder %v5472_v7, 0.0  ;;  %v2482_v45 = vmul.f32 %v5543_v12, %v2481_v42  ;;  %v2472_v23 = vadd.f32 1.0, %v2471_v40  ;;  %v5970_v42 = vld [vmem:[#allocation44_spill] sm:$0xff] }
 0x2a3   :  { %3526 = vlog2.f32 %v1934_v8  ;;  %v3515_v6 = vpop.eup %3514  ;;  %v1812_v53 = vand.u32 2147483647, %v5591_v47  ;;  %vm2484_vm6 = vcmp.lt.f32.partialorder %v2483_v5, 0.0004427343  ;;  %v2206_v50 = vmax.f32 %v5472_v7, 0.0 }
 0x2a4   :  { %3528 = vpow2.f32 %v1907_v3  ;;  %v2479_v48 = vmul.f32 0.6931472, %v3515_v6  ;;  %v3517_v2 = vpop.eup %3516  ;;  %v2238_v62 = vmul.f32 %v5472_v7, %v5966_v17  ;;  %v2489_v33 = vmul.f32 -0.5, %v5577_v0  ;;  %v5971_v6 = vld [vmem:[#allocation45_spill] sm:$0xff] }
 0x2a5   :  { %v5606_v38 = vpop.eup %3518  ;;  %v2059_v14 = vmul.f32 %v3513_v59, %v2027_v22  ;;  %v1844_v54 = vsub.f32 0.0, %v1812_v53  ;;  %v1814_v41 = vand.u32 2147483647, %v5597_v61  ;;  %v2029_v52 = vsel %vm1997_vm3, 1.0, %v5543_v12 }
 0x2a6   :  { %v2485_v13 = vsel %vm2484_vm6, %v2482_v45, %v2479_v48  ;;  %v2028_v25 = vsel %vm1996_vm4, 1.0, %v3509_v27  ;;  %v1939_v31 = vadd.f32 1.0, %v5606_v38  ;;  %v2473_v10 = vmul.f32 %v3509_v27, %v2472_v23 }
 0x2a7   :  { %v2589_v35 = vadd.f32 %v2485_v13, %v2269_v36  ;;  %vm5615_vm7 = vcmp.lt.f32.partialorder %v2474_v1, 0.0004427343  ;;  %v1905_v57 = vmul.f32 1.442695, %v1844_v54  ;;  %v2490_v21 = vadd.f32 1.0, %v2489_v33  ;;  %v5972_v1 = vld [vmem:[#allocation59_spill] sm:$0xff] }
 0x2a8   :  { %v3521_v63 = vpop.eup %3520  ;;  %v2492_v30 = vand.u32 2147483647, %v5577_v0  ;;  %v2061_v12 = vmul.f32 %v3517_v2, %v2029_v52  ;;  %3530 = vlog2.f32 %v1939_v31  ;;  %v1846_v46 = vsub.f32 0.0, %v1814_v41  ;;  %v5973_v52 = vld [vmem:[#allocation60_spill] sm:$0xff] }
 0x2a9   :  { %v3523_v16 = vpop.eup %3522  ;;  %v2060_v58 = vmul.f32 %v3521_v63, %v2028_v25  ;;  %v2621_v20 = vmul.f32 %v2589_v35, %v5969_v19  ;;  %v2030_v29 = vsel %vm1998_vm5, 1.0, %v5577_v0  ;;  %3532 = vpow2.f32 %v1905_v57  ;;  %v5974_v25 = vld [vmem:[#allocation54_spill] sm:$0xff] }
 0x2aa   :  { %v2470_v24 = vmul.f32 0.6931472, %v3523_v16  ;;  %v1909_v49 = vmul.f32 1.442695, %v1846_v46  ;;  %v2270_v18 = vsub.f32 %v2206_v50, %v2238_v62  ;;  %v2534_v8 = vmul.f32 -0.5, %v5606_v38 }
 0x2ab   :  { %v2847_v56 = vpack.c.bf16 %v2060_v58, %v2059_v14  ;;  %v5622_v60 = vadd.f32 %v5551_v44, %v2621_v20  ;;  %v2491_v44 = vmul.f32 %v5577_v0, %v2490_v21  ;;  %vm2493_vm8 = vcmp.lt.f32.partialorder %v2492_v30, 0.0004427343 }
 0x2ac   :  { %v3525_v39 = vpop.eup %3524  ;;  %v2476_v27 = vsel %vm5615_vm7, %v2473_v10, %v2470_v24  ;;  %3534 = vpow2.f32 %v1909_v49  ;;  %v2535_v22 = vadd.f32 1.0, %v2534_v8  ;;  %v2211_v0 = vmax.f32 %v5534_v15, 0.0 }
 0x2ad   :  { %v3527_v28 = vpop.eup %3526  ;;  %2177 = vst [vmem:[#allocation4 + $0x50] sm:$0xff] %v2847_v56  ;;  %v2588_v43 = vadd.f32 %v2476_v27, %v2268_v11  ;;  %v2062_v9 = vmul.f32 %v3525_v39, %v2030_v29  ;;  %v2243_v48 = vmul.f32 %v5534_v15, %v5972_v1  ;;  %v2537_v45 = vand.u32 2147483647, %v5606_v38  ;;  %v5975_v56 = vld [vmem:[#allocation56_spill] sm:$0xff] }
 0x2ae   :  { %v5629_v34 = vpop.eup %3528  ;;  %v2488_v51 = vmul.f32 0.6931472, %v3527_v28  ;;  %v2536_v17 = vmul.f32 %v5606_v38, %v2535_v22  ;;  %v2213_v63 = vmax.f32 %v5548_v26, 0.0  ;;  %vm2003_vm11 = vcmp.ge.f32.partialorder %v5534_v15, 0.0 }
 0x2af   :  { %v2620_v40 = vmul.f32 %v2588_v43, %v5970_v42  ;;  %v2848_v3 = vpack.c.bf16 %v2062_v9, %v2061_v12  ;;  %v1941_v7 = vadd.f32 1.0, %v5629_v34  ;;  %v2552_v23 = vmul.f32 -0.5, %v5629_v34  ;;  %v5976_v43 = vld [vmem:[#allocation57_spill] sm:$0xff] }
 0x2b0   :  { %v2494_v36 = vsel %vm2493_vm8, %v2491_v44, %v2488_v51  ;;  %v2275_v62 = vsub.f32 %v2211_v0, %v2243_v48  ;;  %vm2538_vm9 = vcmp.lt.f32.partialorder %v2537_v45, 0.0004427343  ;;  %v2555_v35 = vand.u32 2147483647, %v5629_v34 }
 0x2b1   :  { %v5636_v5 = vadd.f32 %v5564_v4, %v2620_v40  ;;  %2178 = vst [vmem:[#allocation4 + $0x58] sm:$0xff] %v2848_v3  ;;  %v2590_v59 = vadd.f32 %v2494_v36, %v2270_v18  ;;  %3536 = vlog2.f32 %v1941_v7  ;;  %v2553_v13 = vadd.f32 1.0, %v2552_v23  ;;  %v5977_v40 = vld [vmem:[#allocation58_spill] sm:$0xff] }
 0x2b2   :  { %v3531_v53 = vpop.eup %3530  ;;  %3538 = vrcp.f32 %v1939_v31  ;;  %vm2556_vm10 = vcmp.lt.f32.partialorder %v2555_v35, 0.0004427343  ;;  %v2212_v12 = vmax.f32 %v5591_v47, 0.0  ;;  %v2244_v46 = vmul.f32 %v5591_v47, %v5975_v56 }
 0x2b3   :  { %v2622_v11 = vmul.f32 %v2590_v59, %v5971_v6  ;;  %v3533_v4 = vpop.eup %3532  ;;  %v2533_v50 = vmul.f32 0.6931472, %v3531_v53  ;;  %3540 = vrcp.f32 %v1941_v7  ;;  %v2554_v10 = vmul.f32 %v5629_v34, %v2553_v13  ;;  %v5978_v53 = vld [vmem:[#allocation50_spill] sm:$0xff] }
 0x2b4   :  { %v1940_v33 = vadd.f32 1.0, %v3533_v4  ;;  %v2543_v19 = vmul.f32 -0.5, %v3533_v4  ;;  %v2035_v39 = vsel %vm2003_vm11, 1.0, %v5606_v38  ;;  %vm2004_vm12 = vcmp.ge.f32.partialorder %v5591_v47, 0.0 }
 0x2b5   :  { %v5645_v2 = vadd.f32 %v5570_v32, %v2622_v11  ;;  %v2539_v14 = vsel %vm2538_vm9, %v2536_v17, %v2533_v50  ;;  %v2245_v32 = vmul.f32 %v5548_v26, %v5973_v52  ;;  %v2546_v49 = vand.u32 2147483647, %v3533_v4 }
 0x2b6   :  { %v2595_v54 = vadd.f32 %v2539_v14, %v2275_v62  ;;  %3542 = vrcp.f32 %v1940_v33  ;;  %v5648_v41 = vpop.eup %3534  ;;  %vm2005_vm13 = vcmp.ge.f32.partialorder %v5548_v26, 0.0  ;;  %v2036_v15 = vsel %vm2004_vm12, 1.0, %v3533_v4 }
 0x2b7   :  { %3544 = vlog2.f32 %v1940_v33  ;;  %v1942_v16 = vadd.f32 1.0, %v5648_v41  ;;  %v2277_v20 = vsub.f32 %v2213_v63, %v2245_v32  ;;  %v2561_v27 = vmul.f32 -0.5, %v5648_v41 }
 0x2b8   :  { %v2627_v31 = vmul.f32 %v2595_v54, %v5974_v25  ;;  %vm2006_vm14 = vcmp.ge.f32.partialorder %v5597_v61, 0.0  ;;  %v2214_v51 = vmax.f32 %v5597_v61, 0.0  ;;  %v2276_v42 = vsub.f32 %v2212_v12, %v2244_v46 }
 0x2b9   :  { %3546 = vrcp.f32 %v1942_v16  ;;  %v2246_v3 = vmul.f32 %v5597_v61, %v5977_v40  ;;  %v2037_v7 = vsel %vm2005_vm13, 1.0, %v5629_v34  ;;  %v2562_v59 = vadd.f32 1.0, %v2561_v27 }
 0x2ba   :  { %v2645_v37 = vadd.f32 %v5581_v55, %v2627_v31  ;;  %3548 = vlog2.f32 %v1942_v16  ;;  %v2544_v55 = vadd.f32 1.0, %v2543_v19  ;;  %vm2547_vm15 = vcmp.lt.f32.partialorder %v2546_v49, 0.0004427343 }
 0x2bb   :  { %v3537_v58 = vpop.eup %3536  ;;  %v2564_v6 = vand.u32 2147483647, %v5648_v41  ;;  %v2038_v0 = vsel %vm2006_vm14, 1.0, %v5648_v41  ;;  %v2563_v23 = vmul.f32 %v5648_v41, %v2562_v59  ;;  %v2278_v17 = vsub.f32 %v2214_v51, %v2246_v3 }
 0x2bc   :  { %v2551_v57 = vmul.f32 0.6931472, %v3537_v58  ;;  %v3539_v24 = vpop.eup %3538  ;;  %2659 = vst [vmem:[#allocation7 + $0x20] sm:$0xff] %v2645_v37  ;;  %v2545_v36 = vmul.f32 %v3533_v4, %v2544_v55 }
 0x2bd   :  { %v3541_v29 = vpop.eup %3540  ;;  %v2067_v28 = vmul.f32 %v3539_v24, %v2035_v39  ;;  %vm2565_vm0 = vcmp.lt.f32.partialorder %v2564_v6, 0.0004427343 }
 0x2be   :  { %v2557_v21 = vsel %vm2556_vm10, %v2554_v10, %v2551_v57  ;;  %v2069_v22 = vmul.f32 %v3541_v29, %v2037_v7 }
 0x2bf   :  { %v2597_v30 = vadd.f32 %v2557_v21, %v2277_v20 }
 0x2c0   :  { %v3543_v18 = vpop.eup %3542 }
 0x2c1   :  { %v2629_v9 = vmul.f32 %v2597_v30, %v5976_v43  ;;  %v3545_v44 = vpop.eup %3544  ;;  %v2068_v8 = vmul.f32 %v3543_v18, %v2036_v15 }
 0x2c2   :  { %v2542_v47 = vmul.f32 0.6931472, %v3545_v44 }
 0x2c3   :  { %v2651_v38 = vadd.f32 %v5622_v60, %v2629_v9  ;;  %v2851_v26 = vpack.c.bf16 %v2068_v8, %v2067_v28  ;;  %v3547_v11 = vpop.eup %3546 }
 0x2c4   :  { %v2548_v60 = vsel %vm2547_vm15, %v2545_v36, %v2542_v47  ;;  %v3549_v1 = vpop.eup %3548  ;;  %v2070_v48 = vmul.f32 %v3547_v11, %v2038_v0 }
 0x2c5   :  { %2661 = vst [vmem:[#allocation7 + $0x30] sm:$0xff] %v2651_v38  ;;  %2181 = vst [vmem:[#allocation4 + $0x70] sm:$0xff] %v2851_v26  ;;  %v2596_v34 = vadd.f32 %v2548_v60, %v2276_v42  ;;  %v2560_v45 = vmul.f32 0.6931472, %v3549_v1 }
 0x2c6   :  { %v2852_v50 = vpack.c.bf16 %v2070_v48, %v2069_v22 }
 0x2c7   :  { %v2628_v4 = vmul.f32 %v2596_v34, %v5978_v53  ;;  %v2566_v61 = vsel %vm2565_vm0, %v2563_v23, %v2560_v45 }
 0x2c8   :  { %2182 = vst [vmem:[#allocation4 + $0x78] sm:$0xff] %v2852_v50  ;;  %v2598_v33 = vadd.f32 %v2566_v61, %v2278_v17 }
 0x2c9   :  { %v2648_v62 = vadd.f32 %v5636_v5, %v2628_v4 }
 0x2ca   :  { %3583 = shalt.err (!%p3580_p12)
}
 0x2cb   :  { %s3584_s0 = scalar_lea.hbm %s5743_s8, 2048 }
 0x2cc   :  { %p3585_p13 = scmp.ne.s32.totalorder %s5743_s8, %s3584_s0  ;;  %p3588_p0 = scmp.lt.u32.totalorder %s3584_s0, %s5743_s8 }
 0x2ce   :  { %p3590_p1 = pnand %p3588_p0, %p3585_p13 }
 0x2d0   :  { %3593 = shalt.err (!%p3590_p1)
}
 0x2d1   :  { %s3651_s6 = smov 512   ;;  %s3652_s18 = smov 32   ;;  %2660 = vst [vmem:[#allocation7 + $0x28] sm:$0xff] %v2648_v62  ;;  %v5979_v5 = vld [vmem:[#allocation52_spill] sm:$0xff] }
 0x2d2   :  { %2686 = dma.vmem_to_hbm [thread:$0]  %s5678_s29, 2048, %s5743_s8, [#allocation5], %s3651_s6, %s3651_s6, %s3652_s18   ;;  %v2630_v14 = vmul.f32 %v2598_v33, %v5979_v5 }
 0x2d3   :  { %s3594_s21 = scalar_lea.vmem %s5681_s11, 2048  ;;  %p3599_p3 = scmp.lt.s32.totalorder %s5681_s11, %s5681_s11 }
 0x2d4   :  { %p3595_p2 = scmp.ne.s32.totalorder %s5681_s11, %s3594_s21  ;;  %p3600_p4 = scmp.lt.s32.totalorder %s3594_s21, %s3594_s21 }
 0x2d6   :  { %p3601_p5 = por %p3600_p4, %p3599_p3 }
 0x2d8   :  { %p3602_p6 = pnand %p3601_p5, %p3595_p2 }
 0x2da   :  { %3605 = shalt.err (!%p3602_p6)
}
 0x2db   :  { %s3606_s23 = scalar_lea.hbm %s5744_s9, 2048 }
 0x2dc   :  { %p3607_p7 = scmp.ne.s32.totalorder %s5744_s9, %s3606_s23  ;;  %p3610_p8 = scmp.lt.u32.totalorder %s3606_s23, %s5744_s9 }
 0x2de   :  { %p3612_p9 = pnand %p3610_p8, %p3607_p7 }
 0x2e0   :  { %3615 = shalt.err (!%p3612_p9)
}
 0x2e1   :  { %2698 = dma.vmem_to_hbm [thread:$0]  %s5681_s11, 2048, %s5744_s9, [#allocation5], %s3651_s6, %s3651_s6, %s3652_s18   ;;  %v2654_v13 = vadd.f32 %v5645_v2, %v2630_v14 }
 0x2e2   :  { %s3616_s28 = scalar_lea.vmem %s2706_s13, 1024  ;;  %p3621_p11 = scmp.lt.s32.totalorder %s2706_s13, %s2706_s13 }
 0x2e3   :  { %2662 = vst [vmem:[#allocation7 + $0x38] sm:$0xff] %v2654_v13  ;;  %p3617_p10 = scmp.ne.s32.totalorder %s2706_s13, %s3616_s28  ;;  %p3622_p12 = scmp.lt.s32.totalorder %s3616_s28, %s3616_s28 }
 0x2e5   :  { %p3623_p13 = por %p3622_p12, %p3621_p11 }
 0x2e7   :  { %p3624_p0 = pnand %p3623_p13, %p3617_p10 }
 0x2e9   :  { %3627 = shalt.err (!%p3624_p0)
}
 0x2ea   :  { %s3628_s30 = scalar_lea.hbm %s5745_s10, 1024 }
 0x2eb   :  { %p3629_p1 = scmp.ne.s32.totalorder %s5745_s10, %s3628_s30  ;;  %p3632_p2 = scmp.lt.u32.totalorder %s3628_s30, %s5745_s10 }
 0x2ed   :  { %p3634_p3 = pnand %p3632_p2, %p3629_p1 }
 0x2ef   :  { %3637 = shalt.err (!%p3634_p3)
}
 0x2f0   :  { %2708 = dma.vmem_to_hbm [thread:$0]  %s2706_s13, 1024, %s5745_s10, [#allocation8]  }
 0x2f1   :  { %3638 = dma.done.wait [#allocation3], 512  }
 0x2f2   :  { %3639 = vsyncadd [#allocation3], 4294966784 }
 0x2f3   :  { %3640 = dma.done.wait [#allocation5], 4096  }
 0x2f4   :  { %3641 = vsyncadd [#allocation5], 4294963200 }
 0x2f5   :  { %3642 = dma.done.wait [#allocation8], 1024  }
 0x2f6   :  { %3643 = vsyncadd [#allocation8], 4294966272 }
 0x2f7   :  { %2721 = vsyncpa [#allocation3], 1 }
 0x2f8   :  { %2722 = vsyncpa [#allocation5], 1 }
 0x2f9   :  { %2723 = vsyncpa [#allocation8], 1 }

</bundles_post_ra>
